<compile_context>
chip_gen: v7x
topology: tpu7x:2x2x1
jax: 0.10.0
libtpu: 0.0.40
codegen_flags: <defaults>
</compile_context>

<pallas_src>
import math
from functools import partial

import jax
import jax.numpy as jnp
from jax.experimental import pallas as pl
from jax.experimental.pallas import tpu as pltpu

LN_EPS_PROJ = 1e-5    # torch.nn.LayerNorm default (cate_proj / embedding_cont / comb_proj)
LN_EPS_BERT = 1e-12   # BertConfig default layer_norm_eps
_SQRT1_2 = 0.7071067811865476


def _vmem_limit_bytes():
    # Derive per-generation VMEM budget (v7x has 64 MiB physical vs 128 MiB).
    try:
        cap = int(pltpu.get_tpu_info().vmem_capacity_bytes)
        return min((cap * 3) // 4, 96 * 1024 * 1024)
    except Exception:
        return 32 * 1024 * 1024


# ----------------------------------------------------------------------------
# In-kernel math helpers (all f32)
# ----------------------------------------------------------------------------
def _layer_norm(x, gamma, beta, eps):
    mu = jnp.mean(x, axis=-1, keepdims=True)
    xc = x - mu
    var = jnp.mean(xc * xc, axis=-1, keepdims=True)
    inv = jax.lax.rsqrt(var + eps)
    return xc * inv * gamma + beta


def _erf(x):
    # TODO(synk): A&S 7.1.26 rational approximation (~1.5e-7 abs err) instead of
    # exact erf; built from exp/div only so it lowers everywhere on Mosaic.
    a1, a2, a3, a4, a5 = 0.254829592, -0.284496736, 1.421413741, -1.453152027, 1.061405429
    pc = 0.3275911
    sgn = jnp.where(x >= 0.0, 1.0, -1.0)
    ax = jnp.abs(x)
    t = 1.0 / (1.0 + pc * ax)
    poly = ((((a5 * t + a4) * t + a3) * t + a2) * t + a1) * t
    return sgn * (1.0 - poly * jnp.exp(-ax * ax))


def _gelu_exact(x):
    # TODO(synk): on v6e/v7x this polynomial could run in bf16; kept f32 for v5e.
    return 0.5 * x * (1.0 + _erf(x * _SQRT1_2))


def _bf16(x):
    return x.astype(jnp.bfloat16)


# ----------------------------------------------------------------------------
# Single fused kernel: frontend (l==0) -> encoder layer l -> head (l==L-1)
# Grid = (batch_chunk, layer).  Activation X is carried in VMEM scratch.
# ----------------------------------------------------------------------------
def bert_fused_kernel(cate_ref, cont_ref, mask_ref, pos_ref,
                      cpw_ref, cpb_ref, cpg_ref, cpbe_ref,
                      knw_ref, knb_ref, kng_ref, knbe_ref,
                      cbw1_ref, cbw2_ref, cbb_ref, cbg_ref, cbbe_ref,
                      eg_ref, ebe_ref,
                      wqkv_ref, bqkv_ref, wo_ref, bo_ref, ln1g_ref, ln1b_ref,
                      w1_ref, b1_ref, w2_ref, b2_ref, ln2g_ref, ln2b_ref,
                      fcw_ref, fcb_ref,
                      out_ref, x_scr,
                      *, num_heads, scale, Bc, S):
    l = pl.program_id(1)
    last_l = pl.num_programs(1) - 1
    nh = num_heads

    # ------------------------- frontend (layer 0 only) -----------------------
    @pl.when(l == 0)
    def _frontend():
        cate = cate_ref[0]                                    # (M, 5*H/4) f32
        cont = cont_ref[0]                                    # (M, n_cont) f32
        ec = jnp.dot(_bf16(cate), cpw_ref[...],
                     preferred_element_type=jnp.float32) + cpb_ref[...]
        ec = _layer_norm(ec, cpg_ref[...], cpbe_ref[...], LN_EPS_PROJ)
        en = jnp.dot(_bf16(cont), knw_ref[...],
                     preferred_element_type=jnp.float32) + knb_ref[...]
        en = _layer_norm(en, kng_ref[...], knbe_ref[...], LN_EPS_PROJ)
        # comb_proj on concat([ec, en]) done as two matmuls (no lane concat):
        x = (jnp.dot(_bf16(jnp.maximum(ec, 0.0)), cbw1_ref[...],
                     preferred_element_type=jnp.float32)
             + jnp.dot(_bf16(jnp.maximum(en, 0.0)), cbw2_ref[...],
                       preferred_element_type=jnp.float32)
             + cbb_ref[...])
        x = _layer_norm(x, cbg_ref[...], cbbe_ref[...], LN_EPS_PROJ)
        # BERT embeddings: + position + token_type(0), LayerNorm(eps=1e-12)
        x = _layer_norm(x + pos_ref[...], eg_ref[...], ebe_ref[...], LN_EPS_BERT)
        x_scr[...] = x

    # --------------------------- encoder layer l ------------------------------
    x = x_scr[...]                                            # (M, H) f32, M = Bc*S
    M, H = x.shape
    dh = H // nh

    # additive attention-mask bias expanded in-kernel: (nh*Bc, 1, S)
    bias = (1.0 - mask_ref[0]) * -10000.0                     # (Bc, S)
    bias = jnp.broadcast_to(bias[None, :, None, :], (nh, Bc, 1, S)).reshape(nh * Bc, 1, S)

    # head-wise fused QKV projection: (3nh, M, H) @ (3nh, H, dh) -> (3nh, M, dh)
    xb = _bf16(x)
    xh = jnp.broadcast_to(xb[None], (3 * nh, M, H))
    qkv = jax.lax.dot_general(xh, wqkv_ref[0], (((2,), (1,)), ((0,), (0,))),
                              preferred_element_type=jnp.float32) + bqkv_ref[0]
    q = qkv[0:nh].reshape(nh * Bc, S, dh)                     # leading-dim reshapes only
    k = qkv[nh:2 * nh].reshape(nh * Bc, S, dh)
    v = qkv[2 * nh:3 * nh].reshape(nh * Bc, S, dh)

    s = jax.lax.dot_general(_bf16(q), _bf16(k), (((2,), (2,)), ((0,), (0,))),
                            preferred_element_type=jnp.float32)        # (nh*Bc, S, S)
    s = s * scale + bias
    s = s - jnp.max(s, axis=-1, keepdims=True)
    p = jnp.exp(s)
    p = p * pl.reciprocal(jnp.sum(p, axis=-1, keepdims=True), approx=True)

    ctx = jax.lax.dot_general(_bf16(p), _bf16(v), (((2,), (1,)), ((0,), (0,))),
                              preferred_element_type=jnp.float32)      # (nh*Bc, S, dh)
    ctx = ctx.reshape(nh, Bc * S, dh)
    # head-wise output projection + sum over heads (== concat-heads @ Wo)
    yo = jax.lax.dot_general(_bf16(ctx), wo_ref[0], (((2,), (1,)), ((0,), (0,))),
                             preferred_element_type=jnp.float32)       # (nh, M, H)
    y = jnp.sum(yo, axis=0) + bo_ref[0]
    x = _layer_norm(y + x, ln1g_ref[0], ln1b_ref[0], LN_EPS_BERT)

    # FFN (H -> I -> H, gelu)  # TODO(synk): tile the I axis for v7x at large S
    h = jnp.dot(_bf16(x), w1_ref[0], preferred_element_type=jnp.float32) + b1_ref[0]
    h = _gelu_exact(h)
    y = jnp.dot(_bf16(h), w2_ref[0], preferred_element_type=jnp.float32) + b2_ref[0]
    x = _layer_norm(y + x, ln2g_ref[0], ln2b_ref[0], LN_EPS_BERT)
    x_scr[...] = x

    # ------------------------- head (last layer only) -------------------------
    @pl.when(l == last_l)
    def _head():
        xf = x_scr[...].reshape(Bc, S, H)
        # Linear(H, 1) as a VPU broadcast-multiply + lane reduce (no N=1 matmul)
        logits = jnp.sum(xf * fcw_ref[...][None], axis=-1) + fcb_ref[...]
        out_ref[0] = jax.nn.sigmoid(logits)                   # (Bc, S) lane-dense


# ----------------------------------------------------------------------------
# BlockSpec helpers
# ----------------------------------------------------------------------------
def _chunk_spec(shape):
    """Arrays with a leading batch-chunk axis; last two dims full."""
    rest = tuple(shape[1:])
    zeros = (0,) * len(rest)

    def imap(b, l):
        return (b,) + zeros

    return pl.BlockSpec((1,) + rest, imap)


def _pinned_spec(shape):
    """Whole array pinned at (0,...); stays VMEM-resident across the grid."""
    shape = tuple(shape)
    zeros = (0,) * len(shape)

    def imap(b, l):
        return zeros

    return pl.BlockSpec(shape, imap)


def _layer_spec(shape):
    """Per-layer stacked weights; blocked over the leading L axis."""
    rest = tuple(shape[1:])
    zeros = (0,) * len(rest)

    def imap(b, l):
        return (l,) + zeros

    return pl.BlockSpec((1,) + rest, imap)


# ----------------------------------------------------------------------------
# Parameters (deterministic synthetic init; mirrors the module's __init__ shapes)
# ----------------------------------------------------------------------------
def _stack_layers(layers, nh):
    """Convert natural per-layer weights to stacked, head-wise layouts."""
    H = layers[0]["wo"].shape[0]
    dh = H // nh

    def hw(w):   # (H, H) -> (nh, H, dh)
        return jnp.transpose(w.reshape(H, nh, dh), (1, 0, 2))

    def hb(b):   # (1, H) -> (nh, 1, dh)
        return jnp.transpose(b.reshape(1, nh, dh), (1, 0, 2))

    keys = ["w_qkv", "b_qkv", "w_o", "b_o", "ln1_g", "ln1_b",
            "w1", "b1", "w2", "b2", "ln2_g", "ln2_b"]
    acc = {k: [] for k in keys}
    for lp in layers:
        wq, wk, wv = (lp["w_qkv"][:, i * H:(i + 1) * H] for i in range(3))
        bq, bk, bv = (lp["b_qkv"][:, i * H:(i + 1) * H] for i in range(3))
        acc["w_qkv"].append(jnp.concatenate([hw(wq), hw(wk), hw(wv)], axis=0))
        acc["b_qkv"].append(jnp.concatenate([hb(bq), hb(bk), hb(bv)], axis=0))
        acc["w_o"].append(lp["wo"].reshape(nh, dh, H))
        acc["b_o"].append(lp["bo"])
        acc["ln1_g"].append(lp["ln1_g"]); acc["ln1_b"].append(lp["ln1_b"])
        acc["w1"].append(lp["w1"]); acc["b1"].append(lp["b1"])
        acc["w2"].append(lp["w2"]); acc["b2"].append(lp["b2"])
        acc["ln2_g"].append(lp["ln2_g"]); acc["ln2_b"].append(lp["ln2_b"])
    return {k: jnp.stack(v, axis=0) for k, v in acc.items()}


def init_params(key, cfg):
    H = cfg["hidden"]
    Q = H // 4
    I = cfg["intermediate"]
    nh = cfg["heads"]
    BF = jnp.bfloat16

    def nrm(k, shape, dtype=jnp.float32, scale=0.02):
        return (scale * jax.random.normal(k, shape)).astype(dtype)

    keys = iter(jax.random.split(key, 64))
    p = {
        "emb_interaction": nrm(next(keys), (3, Q)),
        "emb_test": nrm(next(keys), (cfg["n_test"] + 1, Q)),
        "emb_question": nrm(next(keys), (cfg["n_questions"] + 1, Q)),
        "emb_tag": nrm(next(keys), (cfg["n_tag"] + 1, Q)),
        "emb_grade": nrm(next(keys), (cfg["n_grade"] + 1, Q)),
        # cate_proj: Linear(5*Q, H) + LayerNorm(H)
        "cate_w": nrm(next(keys), (5 * Q, H), BF),
        "cate_b": jnp.zeros((1, H), jnp.float32),
        "cate_g": jnp.ones((1, H), jnp.float32),
        "cate_be": jnp.zeros((1, H), jnp.float32),
        # embedding_cont: Linear(n_cont, H) + LayerNorm(H)
        "cont_w": nrm(next(keys), (cfg["n_cont"], H), BF),
        "cont_b": jnp.zeros((1, H), jnp.float32),
        "cont_g": jnp.ones((1, H), jnp.float32),
        "cont_be": jnp.zeros((1, H), jnp.float32),
        # comb_proj: ReLU -> Linear(2H, H) + LayerNorm(H); weight kept as two
        # (H, H) halves so the kernel never lane-concatenates [ec, en]
        "comb_w_top": nrm(next(keys), (H, H), BF),
        "comb_w_bot": nrm(next(keys), (H, H), BF),
        "comb_b": jnp.zeros((1, H), jnp.float32),
        "comb_g": jnp.ones((1, H), jnp.float32),
        "comb_be": jnp.zeros((1, H), jnp.float32),
        # BertEmbeddings (word embeddings unused: inputs_embeds path)
        "pos_emb": nrm(next(keys), (cfg["max_seq"], H)),
        "tok_emb": nrm(next(keys), (2, H)),
        "emb_g": jnp.ones((1, H), jnp.float32),
        "emb_be": jnp.zeros((1, H), jnp.float32),
        # final head Linear(H, 1)
        "fc_w": nrm(next(keys), (1, H)),
        "fc_b": jnp.zeros((1, 1), jnp.float32),
    }
    layers = []
    for _ in range(cfg["layers"]):
        lk = iter(jax.random.split(next(keys), 8))
        layers.append({
            "w_qkv": nrm(next(lk), (H, 3 * H), BF),          # columns [Q | K | V]
            "b_qkv": jnp.zeros((1, 3 * H), jnp.float32),
            "wo": nrm(next(lk), (H, H), BF),
            "bo": jnp.zeros((1, H), jnp.float32),
            "ln1_g": jnp.ones((1, H), jnp.float32),
            "ln1_b": jnp.zeros((1, H), jnp.float32),
            "w1": nrm(next(lk), (H, I), BF),
            "b1": jnp.zeros((1, I), jnp.float32),
            "w2": nrm(next(lk), (I, H), BF),
            "b2": jnp.zeros((1, H), jnp.float32),
            "ln2_g": jnp.ones((1, H), jnp.float32),
            "ln2_b": jnp.zeros((1, H), jnp.float32),
        })
    p["stacked"] = _stack_layers(layers, nh)
    return p


# ----------------------------------------------------------------------------
# Forward pass: one fused pallas_call for the whole network
# ----------------------------------------------------------------------------
def bert_forward(params, inputs, cfg):
    B, S = inputs["interaction"].shape
    H = cfg["hidden"]
    nh = cfg["heads"]
    L = cfg["layers"]
    Q = H // 4
    dh = H // nh
    scale = 1.0 / math.sqrt(dh)
    n_cont = cfg["n_cont"]

    # >=2-way "parallel" batch-chunk axis keeps both v7x TensorCores busy; on
    # single-TC chips this is just two serial chunks of the folded batch rows.
    NB = 2 if (B >= 2 and B % 2 == 0) else 1
    Bc = B // NB
    M = Bc * S

    # --- categorical embedding gathers + continuous stack (plain JAX glue) ---
    # TODO(synk): could be folded in-kernel via PrefetchScalarGridSpec gathers.
    cate_cat = jnp.concatenate([
        params["emb_interaction"][inputs["interaction"]],
        params["emb_test"][inputs["testId"]],
        params["emb_question"][inputs["assessmentItemID"]],
        params["emb_tag"][inputs["KnowledgeTag"]],
        params["emb_grade"][inputs["grade"]],
    ], axis=2).reshape(NB, M, 5 * Q)                                  # (NB, M, 5Q)
    cont = jnp.stack([inputs[c].astype(jnp.float32) for c in cfg["cont_col"]],
                     axis=2).reshape(NB, M, n_cont)                   # (NB, M, nc)
    mask = inputs["mask"].astype(jnp.float32).reshape(NB, Bc, S)      # (NB, Bc, S)
    pos_tiled = jnp.tile(params["pos_emb"][:S] + params["tok_emb"][0][None, :],
                         (Bc, 1))                                     # (M, H)

    st = params["stacked"]
    args = [cate_cat, cont, mask, pos_tiled,
            params["cate_w"], params["cate_b"], params["cate_g"], params["cate_be"],
            params["cont_w"], params["cont_b"], params["cont_g"], params["cont_be"],
            params["comb_w_top"], params["comb_w_bot"], params["comb_b"],
            params["comb_g"], params["comb_be"],
            params["emb_g"], params["emb_be"],
            st["w_qkv"], st["b_qkv"], st["w_o"], st["b_o"], st["ln1_g"], st["ln1_b"],
            st["w1"], st["b1"], st["w2"], st["b2"], st["ln2_g"], st["ln2_b"],
            params["fc_w"], params["fc_b"]]
    in_specs = ([_chunk_spec(a.shape) for a in args[:3]]
                + [_pinned_spec(a.shape) for a in args[3:19]]
                + [_layer_spec(a.shape) for a in args[19:31]]
                + [_pinned_spec(a.shape) for a in args[31:]])

    kernel = partial(bert_fused_kernel, num_heads=nh, scale=scale, Bc=Bc, S=S)
    out = pl.pallas_call(
        kernel,
        grid=(NB, L),
        in_specs=in_specs,
        out_specs=_chunk_spec((NB, Bc, S)),
        out_shape=jax.ShapeDtypeStruct((NB, Bc, S), jnp.float32),
        scratch_shapes=[pltpu.VMEM((M, H), jnp.float32)],   # X carried across layers
        compiler_params=pltpu.CompilerParams(
            dimension_semantics=("parallel", "arbitrary"),
            vmem_limit_bytes=_vmem_limit_bytes()),
    )(*args)
    return out.reshape(B, S)


# ----------------------------------------------------------------------------
# Demo
# ----------------------------------------------------------------------------
if __name__ == "__main__":
    cfg = dict(
        hidden=32, heads=4, layers=2, max_seq=8,
        n_test=10, n_questions=20, n_tag=5, n_grade=3,
        n_cont=4, cont_col=["cont0", "cont1", "cont2", "cont3"],
        intermediate=3072,   # BertConfig default intermediate_size
    )
    B, S = 2, 8

    key = jax.random.PRNGKey(0)
    kp, k1, k2, k3, k4, k5, kc = jax.random.split(key, 7)
    params = init_params(kp, cfg)

    inputs = {
        "interaction": jax.random.randint(k1, (B, S), 0, 3),
        "testId": jax.random.randint(k2, (B, S), 0, cfg["n_test"] + 1),
        "assessmentItemID": jax.random.randint(k3, (B, S), 0, cfg["n_questions"] + 1),
        "KnowledgeTag": jax.random.randint(k4, (B, S), 0, cfg["n_tag"] + 1),
        "grade": jax.random.randint(k5, (B, S), 0, cfg["n_grade"] + 1),
        "mask": jnp.array([[1, 1, 1, 1, 1, 1, 1, 1],
                           [1, 1, 1, 1, 1, 0, 0, 0]], jnp.float32),
    }
    cont_vals = jax.random.normal(kc, (cfg["n_cont"], B, S)).astype(jnp.float32)
    for i, c in enumerate(cfg["cont_col"]):
        inputs[c] = cont_vals[i]

    preds = bert_forward(params, inputs, cfg)
    preds = jax.block_until_ready(preds)
    assert preds.shape == (B, S)
    assert bool(jnp.all(jnp.isfinite(preds)))
    assert bool(jnp.all((preds >= 0.0) & (preds <= 1.0)))
    print("KERNEL_OK")
</pallas_src>

<mosaic_0001>
module attributes {stable_mosaic.version = 11 : i64} {
  func.func @bert_fused_kernel(%arg0: i32, %arg1: i32, %arg2: memref<1x8x40xf32, #tpu.memory_space<vmem>>, %arg3: memref<1x8x4xf32, #tpu.memory_space<vmem>>, %arg4: memref<1x1x8xf32, #tpu.memory_space<vmem>>, %arg5: memref<8x32xf32, #tpu.memory_space<vmem>>, %arg6: memref<40x32xbf16, #tpu.memory_space<vmem>>, %arg7: memref<1x32xf32, #tpu.memory_space<vmem>>, %arg8: memref<1x32xf32, #tpu.memory_space<vmem>>, %arg9: memref<1x32xf32, #tpu.memory_space<vmem>>, %arg10: memref<4x32xbf16, #tpu.memory_space<vmem>>, %arg11: memref<1x32xf32, #tpu.memory_space<vmem>>, %arg12: memref<1x32xf32, #tpu.memory_space<vmem>>, %arg13: memref<1x32xf32, #tpu.memory_space<vmem>>, %arg14: memref<32x32xbf16, #tpu.memory_space<vmem>>, %arg15: memref<32x32xbf16, #tpu.memory_space<vmem>>, %arg16: memref<1x32xf32, #tpu.memory_space<vmem>>, %arg17: memref<1x32xf32, #tpu.memory_space<vmem>>, %arg18: memref<1x32xf32, #tpu.memory_space<vmem>>, %arg19: memref<1x32xf32, #tpu.memory_space<vmem>>, %arg20: memref<1x32xf32, #tpu.memory_space<vmem>>, %arg21: memref<1x12x32x8xbf16, #tpu.memory_space<vmem>>, %arg22: memref<1x12x1x8xf32, #tpu.memory_space<vmem>>, %arg23: memref<1x4x8x32xbf16, #tpu.memory_space<vmem>>, %arg24: memref<1x1x32xf32, #tpu.memory_space<vmem>>, %arg25: memref<1x1x32xf32, #tpu.memory_space<vmem>>, %arg26: memref<1x1x32xf32, #tpu.memory_space<vmem>>, %arg27: memref<1x32x3072xbf16, #tpu.memory_space<vmem>>, %arg28: memref<1x1x3072xf32, #tpu.memory_space<vmem>>, %arg29: memref<1x3072x32xbf16, #tpu.memory_space<vmem>>, %arg30: memref<1x1x32xf32, #tpu.memory_space<vmem>>, %arg31: memref<1x1x32xf32, #tpu.memory_space<vmem>>, %arg32: memref<1x1x32xf32, #tpu.memory_space<vmem>>, %arg33: memref<1x32xf32, #tpu.memory_space<vmem>>, %arg34: memref<1x1xf32, #tpu.memory_space<vmem>>, %arg35: memref<1x1x8xf32, #tpu.memory_space<vmem>>, %arg36: memref<8x32xf32, #tpu.memory_space<vmem>>) attributes {dimension_semantics = [#tpu.dimension_semantics<parallel>, #tpu.dimension_semantics<arbitrary>], iteration_bounds = array<i64: 2, 2>, scalar_prefetch = 0 : i64, scratch_operands = 1 : i64, tpu.core_type = #tpu.core_type<tc>, window_params = [{transform_indices = @transform_0, window_bounds = array<i64: 1, 8, 40>}, {transform_indices = @transform_1, window_bounds = array<i64: 1, 8, 4>}, {transform_indices = @transform_2, window_bounds = array<i64: 1, 1, 8>}, {pipeline_mode = #tpu.pipeline_mode<synchronous>, transform_indices = @transform_3, window_bounds = array<i64: 8, 32>}, {pipeline_mode = #tpu.pipeline_mode<synchronous>, transform_indices = @transform_4, window_bounds = array<i64: 40, 32>}, {pipeline_mode = #tpu.pipeline_mode<synchronous>, transform_indices = @transform_5, window_bounds = array<i64: 1, 32>}, {pipeline_mode = #tpu.pipeline_mode<synchronous>, transform_indices = @transform_6, window_bounds = array<i64: 1, 32>}, {pipeline_mode = #tpu.pipeline_mode<synchronous>, transform_indices = @transform_7, window_bounds = array<i64: 1, 32>}, {pipeline_mode = #tpu.pipeline_mode<synchronous>, transform_indices = @transform_8, window_bounds = array<i64: 4, 32>}, {pipeline_mode = #tpu.pipeline_mode<synchronous>, transform_indices = @transform_9, window_bounds = array<i64: 1, 32>}, {pipeline_mode = #tpu.pipeline_mode<synchronous>, transform_indices = @transform_10, window_bounds = array<i64: 1, 32>}, {pipeline_mode = #tpu.pipeline_mode<synchronous>, transform_indices = @transform_11, window_bounds = array<i64: 1, 32>}, {pipeline_mode = #tpu.pipeline_mode<synchronous>, transform_indices = @transform_12, window_bounds = array<i64: 32, 32>}, {pipeline_mode = #tpu.pipeline_mode<synchronous>, transform_indices = @transform_13, window_bounds = array<i64: 32, 32>}, {pipeline_mode = #tpu.pipeline_mode<synchronous>, transform_indices = @transform_14, window_bounds = array<i64: 1, 32>}, {pipeline_mode = #tpu.pipeline_mode<synchronous>, transform_indices = @transform_15, window_bounds = array<i64: 1, 32>}, {pipeline_mode = #tpu.pipeline_mode<synchronous>, transform_indices = @transform_16, window_bounds = array<i64: 1, 32>}, {pipeline_mode = #tpu.pipeline_mode<synchronous>, transform_indices = @transform_17, window_bounds = array<i64: 1, 32>}, {pipeline_mode = #tpu.pipeline_mode<synchronous>, transform_indices = @transform_18, window_bounds = array<i64: 1, 32>}, {transform_indices = @transform_19, window_bounds = array<i64: 1, 12, 32, 8>}, {transform_indices = @transform_20, window_bounds = array<i64: 1, 12, 1, 8>}, {transform_indices = @transform_21, window_bounds = array<i64: 1, 4, 8, 32>}, {transform_indices = @transform_22, window_bounds = array<i64: 1, 1, 32>}, {transform_indices = @transform_23, window_bounds = array<i64: 1, 1, 32>}, {transform_indices = @transform_24, window_bounds = array<i64: 1, 1, 32>}, {transform_indices = @transform_25, window_bounds = array<i64: 1, 32, 3072>}, {transform_indices = @transform_26, window_bounds = array<i64: 1, 1, 3072>}, {transform_indices = @transform_27, window_bounds = array<i64: 1, 3072, 32>}, {transform_indices = @transform_28, window_bounds = array<i64: 1, 1, 32>}, {transform_indices = @transform_29, window_bounds = array<i64: 1, 1, 32>}, {transform_indices = @transform_30, window_bounds = array<i64: 1, 1, 32>}, {pipeline_mode = #tpu.pipeline_mode<synchronous>, transform_indices = @transform_31, window_bounds = array<i64: 1, 32>}, {pipeline_mode = #tpu.pipeline_mode<synchronous>, transform_indices = @transform_32, window_bounds = array<i64: 1, 1>}, {transform_indices = @transform_33, window_bounds = array<i64: 1, 1, 8>}]} {
    %c0_i32 = arith.constant 0 : i32
    %0 = arith.cmpi eq, %arg1, %c0_i32 : i32
    %1 = arith.extui %0 : i1 to i32
    %c0_i32_0 = arith.constant 0 : i32
    %2 = arith.cmpi ne, %1, %c0_i32_0 : i32
    scf.if %2 {
      %c0_84 = arith.constant 0 : index
      %c0_85 = arith.constant 0 : index
      %c0_86 = arith.constant 0 : index
      %168 = vector.load %arg2[%c0_84, %c0_85, %c0_86] : memref<1x8x40xf32, #tpu.memory_space<vmem>>, vector<1x8x40xf32>
      %169 = vector.shape_cast %168 : vector<1x8x40xf32> to vector<8x40xf32>
      %c0_87 = arith.constant 0 : index
      %c0_88 = arith.constant 0 : index
      %c0_89 = arith.constant 0 : index
      %170 = vector.load %arg3[%c0_87, %c0_88, %c0_89] : memref<1x8x4xf32, #tpu.memory_space<vmem>>, vector<1x8x4xf32>
      %171 = vector.shape_cast %170 : vector<1x8x4xf32> to vector<8x4xf32>
      %172 = arith.truncf %169 : vector<8x40xf32> to vector<8x40xbf16>
      %c0_90 = arith.constant 0 : index
      %c0_91 = arith.constant 0 : index
      %173 = vector.load %arg6[%c0_90, %c0_91] : memref<40x32xbf16, #tpu.memory_space<vmem>>, vector<40x32xbf16>
      %cst_92 = arith.constant dense<0.000000e+00> : vector<8x32xf32>
      %174 = tpu.matmul %172, %173, %cst_92 {dimension_numbers = #tpu.dot_dimension_numbers<[1], [0], [0], [1], [0, 0, 1, 1], [], []>} : vector<8x40xbf16>, vector<40x32xbf16>, vector<8x32xf32> -> vector<8x32xf32>
      %c0_93 = arith.constant 0 : index
      %c0_94 = arith.constant 0 : index
      %175 = vector.load %arg7[%c0_93, %c0_94] : memref<1x32xf32, #tpu.memory_space<vmem>>, vector<1x32xf32>
      %176 = vector.broadcast %175 : vector<1x32xf32> to vector<8x32xf32>
      %177 = arith.addf %174, %176 : vector<8x32xf32>
      %c0_95 = arith.constant 0 : index
      %c0_96 = arith.constant 0 : index
      %178 = vector.load %arg8[%c0_95, %c0_96] : memref<1x32xf32, #tpu.memory_space<vmem>>, vector<1x32xf32>
      %c0_97 = arith.constant 0 : index
      %c0_98 = arith.constant 0 : index
      %179 = vector.load %arg9[%c0_97, %c0_98] : memref<1x32xf32, #tpu.memory_space<vmem>>, vector<1x32xf32>
      %cst_99 = arith.constant dense<0.000000e+00> : vector<8xf32>
      %180 = vector.multi_reduction <add>, %177, %cst_99 [1] : vector<8x32xf32> to vector<8xf32>
      %181 = vector.shape_cast %180 : vector<8xf32> to vector<8x1xf32>
      %cst_100 = arith.constant 3.200000e+01 : f32
      %182 = vector.broadcast %cst_100 : f32 to vector<8x1xf32>
      %183 = arith.divf %181, %182 : vector<8x1xf32>
      %184 = vector.broadcast %183 : vector<8x1xf32> to vector<8x32xf32>
      %185 = arith.subf %177, %184 : vector<8x32xf32>
      %186 = arith.mulf %185, %185 : vector<8x32xf32>
      %cst_101 = arith.constant dense<0.000000e+00> : vector<8xf32>
      %187 = vector.multi_reduction <add>, %186, %cst_101 [1] : vector<8x32xf32> to vector<8xf32>
      %188 = vector.shape_cast %187 : vector<8xf32> to vector<8x1xf32>
      %cst_102 = arith.constant 3.200000e+01 : f32
      %189 = vector.broadcast %cst_102 : f32 to vector<8x1xf32>
      %190 = arith.divf %188, %189 : vector<8x1xf32>
      %cst_103 = arith.constant 9.99999974E-6 : f32
      %191 = vector.broadcast %cst_103 : f32 to vector<8x1xf32>
      %192 = arith.addf %190, %191 : vector<8x1xf32>
      %193 = math.rsqrt %192 : vector<8x1xf32>
      %194 = vector.broadcast %193 : vector<8x1xf32> to vector<8x32xf32>
      %195 = arith.mulf %185, %194 : vector<8x32xf32>
      %196 = vector.broadcast %178 : vector<1x32xf32> to vector<8x32xf32>
      %197 = arith.mulf %195, %196 : vector<8x32xf32>
      %198 = vector.broadcast %179 : vector<1x32xf32> to vector<8x32xf32>
      %199 = arith.addf %197, %198 : vector<8x32xf32>
      %200 = arith.truncf %171 : vector<8x4xf32> to vector<8x4xbf16>
      %c0_104 = arith.constant 0 : index
      %c0_105 = arith.constant 0 : index
      %201 = vector.load %arg10[%c0_104, %c0_105] : memref<4x32xbf16, #tpu.memory_space<vmem>>, vector<4x32xbf16>
      %cst_106 = arith.constant dense<0.000000e+00> : vector<8x32xf32>
      %202 = tpu.matmul %200, %201, %cst_106 {dimension_numbers = #tpu.dot_dimension_numbers<[1], [0], [0], [1], [0, 0, 1, 1], [], []>} : vector<8x4xbf16>, vector<4x32xbf16>, vector<8x32xf32> -> vector<8x32xf32>
      %c0_107 = arith.constant 0 : index
      %c0_108 = arith.constant 0 : index
      %203 = vector.load %arg11[%c0_107, %c0_108] : memref<1x32xf32, #tpu.memory_space<vmem>>, vector<1x32xf32>
      %204 = vector.broadcast %203 : vector<1x32xf32> to vector<8x32xf32>
      %205 = arith.addf %202, %204 : vector<8x32xf32>
      %c0_109 = arith.constant 0 : index
      %c0_110 = arith.constant 0 : index
      %206 = vector.load %arg12[%c0_109, %c0_110] : memref<1x32xf32, #tpu.memory_space<vmem>>, vector<1x32xf32>
      %c0_111 = arith.constant 0 : index
      %c0_112 = arith.constant 0 : index
      %207 = vector.load %arg13[%c0_111, %c0_112] : memref<1x32xf32, #tpu.memory_space<vmem>>, vector<1x32xf32>
      %cst_113 = arith.constant dense<0.000000e+00> : vector<8xf32>
      %208 = vector.multi_reduction <add>, %205, %cst_113 [1] : vector<8x32xf32> to vector<8xf32>
      %209 = vector.shape_cast %208 : vector<8xf32> to vector<8x1xf32>
      %cst_114 = arith.constant 3.200000e+01 : f32
      %210 = vector.broadcast %cst_114 : f32 to vector<8x1xf32>
      %211 = arith.divf %209, %210 : vector<8x1xf32>
      %212 = vector.broadcast %211 : vector<8x1xf32> to vector<8x32xf32>
      %213 = arith.subf %205, %212 : vector<8x32xf32>
      %214 = arith.mulf %213, %213 : vector<8x32xf32>
      %cst_115 = arith.constant dense<0.000000e+00> : vector<8xf32>
      %215 = vector.multi_reduction <add>, %214, %cst_115 [1] : vector<8x32xf32> to vector<8xf32>
      %216 = vector.shape_cast %215 : vector<8xf32> to vector<8x1xf32>
      %cst_116 = arith.constant 3.200000e+01 : f32
      %217 = vector.broadcast %cst_116 : f32 to vector<8x1xf32>
      %218 = arith.divf %216, %217 : vector<8x1xf32>
      %cst_117 = arith.constant 9.99999974E-6 : f32
      %219 = vector.broadcast %cst_117 : f32 to vector<8x1xf32>
      %220 = arith.addf %218, %219 : vector<8x1xf32>
      %221 = math.rsqrt %220 : vector<8x1xf32>
      %222 = vector.broadcast %221 : vector<8x1xf32> to vector<8x32xf32>
      %223 = arith.mulf %213, %222 : vector<8x32xf32>
      %224 = vector.broadcast %206 : vector<1x32xf32> to vector<8x32xf32>
      %225 = arith.mulf %223, %224 : vector<8x32xf32>
      %226 = vector.broadcast %207 : vector<1x32xf32> to vector<8x32xf32>
      %227 = arith.addf %225, %226 : vector<8x32xf32>
      %cst_118 = arith.constant 0.000000e+00 : f32
      %228 = vector.broadcast %cst_118 : f32 to vector<8x32xf32>
      %229 = arith.maximumf %199, %228 : vector<8x32xf32>
      %230 = arith.truncf %229 : vector<8x32xf32> to vector<8x32xbf16>
      %c0_119 = arith.constant 0 : index
      %c0_120 = arith.constant 0 : index
      %231 = vector.load %arg14[%c0_119, %c0_120] : memref<32x32xbf16, #tpu.memory_space<vmem>>, vector<32x32xbf16>
      %cst_121 = arith.constant dense<0.000000e+00> : vector<8x32xf32>
      %232 = tpu.matmul %230, %231, %cst_121 {dimension_numbers = #tpu.dot_dimension_numbers<[1], [0], [0], [1], [0, 0, 1, 1], [], []>} : vector<8x32xbf16>, vector<32x32xbf16>, vector<8x32xf32> -> vector<8x32xf32>
      %cst_122 = arith.constant 0.000000e+00 : f32
      %233 = vector.broadcast %cst_122 : f32 to vector<8x32xf32>
      %234 = arith.maximumf %227, %233 : vector<8x32xf32>
      %235 = arith.truncf %234 : vector<8x32xf32> to vector<8x32xbf16>
      %c0_123 = arith.constant 0 : index
      %c0_124 = arith.constant 0 : index
      %236 = vector.load %arg15[%c0_123, %c0_124] : memref<32x32xbf16, #tpu.memory_space<vmem>>, vector<32x32xbf16>
      %cst_125 = arith.constant dense<0.000000e+00> : vector<8x32xf32>
      %237 = tpu.matmul %235, %236, %cst_125 {dimension_numbers = #tpu.dot_dimension_numbers<[1], [0], [0], [1], [0, 0, 1, 1], [], []>} : vector<8x32xbf16>, vector<32x32xbf16>, vector<8x32xf32> -> vector<8x32xf32>
      %238 = arith.addf %232, %237 : vector<8x32xf32>
      %c0_126 = arith.constant 0 : index
      %c0_127 = arith.constant 0 : index
      %239 = vector.load %arg16[%c0_126, %c0_127] : memref<1x32xf32, #tpu.memory_space<vmem>>, vector<1x32xf32>
      %240 = vector.broadcast %239 : vector<1x32xf32> to vector<8x32xf32>
      %241 = arith.addf %238, %240 : vector<8x32xf32>
      %c0_128 = arith.constant 0 : index
      %c0_129 = arith.constant 0 : index
      %242 = vector.load %arg17[%c0_128, %c0_129] : memref<1x32xf32, #tpu.memory_space<vmem>>, vector<1x32xf32>
      %c0_130 = arith.constant 0 : index
      %c0_131 = arith.constant 0 : index
      %243 = vector.load %arg18[%c0_130, %c0_131] : memref<1x32xf32, #tpu.memory_space<vmem>>, vector<1x32xf32>
      %cst_132 = arith.constant dense<0.000000e+00> : vector<8xf32>
      %244 = vector.multi_reduction <add>, %241, %cst_132 [1] : vector<8x32xf32> to vector<8xf32>
      %245 = vector.shape_cast %244 : vector<8xf32> to vector<8x1xf32>
      %cst_133 = arith.constant 3.200000e+01 : f32
      %246 = vector.broadcast %cst_133 : f32 to vector<8x1xf32>
      %247 = arith.divf %245, %246 : vector<8x1xf32>
      %248 = vector.broadcast %247 : vector<8x1xf32> to vector<8x32xf32>
      %249 = arith.subf %241, %248 : vector<8x32xf32>
      %250 = arith.mulf %249, %249 : vector<8x32xf32>
      %cst_134 = arith.constant dense<0.000000e+00> : vector<8xf32>
      %251 = vector.multi_reduction <add>, %250, %cst_134 [1] : vector<8x32xf32> to vector<8xf32>
      %252 = vector.shape_cast %251 : vector<8xf32> to vector<8x1xf32>
      %cst_135 = arith.constant 3.200000e+01 : f32
      %253 = vector.broadcast %cst_135 : f32 to vector<8x1xf32>
      %254 = arith.divf %252, %253 : vector<8x1xf32>
      %cst_136 = arith.constant 9.99999974E-6 : f32
      %255 = vector.broadcast %cst_136 : f32 to vector<8x1xf32>
      %256 = arith.addf %254, %255 : vector<8x1xf32>
      %257 = math.rsqrt %256 : vector<8x1xf32>
      %258 = vector.broadcast %257 : vector<8x1xf32> to vector<8x32xf32>
      %259 = arith.mulf %249, %258 : vector<8x32xf32>
      %260 = vector.broadcast %242 : vector<1x32xf32> to vector<8x32xf32>
      %261 = arith.mulf %259, %260 : vector<8x32xf32>
      %262 = vector.broadcast %243 : vector<1x32xf32> to vector<8x32xf32>
      %263 = arith.addf %261, %262 : vector<8x32xf32>
      %c0_137 = arith.constant 0 : index
      %c0_138 = arith.constant 0 : index
      %264 = vector.load %arg5[%c0_137, %c0_138] : memref<8x32xf32, #tpu.memory_space<vmem>>, vector<8x32xf32>
      %265 = arith.addf %263, %264 : vector<8x32xf32>
      %c0_139 = arith.constant 0 : index
      %c0_140 = arith.constant 0 : index
      %266 = vector.load %arg19[%c0_139, %c0_140] : memref<1x32xf32, #tpu.memory_space<vmem>>, vector<1x32xf32>
      %c0_141 = arith.constant 0 : index
      %c0_142 = arith.constant 0 : index
      %267 = vector.load %arg20[%c0_141, %c0_142] : memref<1x32xf32, #tpu.memory_space<vmem>>, vector<1x32xf32>
      %cst_143 = arith.constant dense<0.000000e+00> : vector<8xf32>
      %268 = vector.multi_reduction <add>, %265, %cst_143 [1] : vector<8x32xf32> to vector<8xf32>
      %269 = vector.shape_cast %268 : vector<8xf32> to vector<8x1xf32>
      %cst_144 = arith.constant 3.200000e+01 : f32
      %270 = vector.broadcast %cst_144 : f32 to vector<8x1xf32>
      %271 = arith.divf %269, %270 : vector<8x1xf32>
      %272 = vector.broadcast %271 : vector<8x1xf32> to vector<8x32xf32>
      %273 = arith.subf %265, %272 : vector<8x32xf32>
      %274 = arith.mulf %273, %273 : vector<8x32xf32>
      %cst_145 = arith.constant dense<0.000000e+00> : vector<8xf32>
      %275 = vector.multi_reduction <add>, %274, %cst_145 [1] : vector<8x32xf32> to vector<8xf32>
      %276 = vector.shape_cast %275 : vector<8xf32> to vector<8x1xf32>
      %cst_146 = arith.constant 3.200000e+01 : f32
      %277 = vector.broadcast %cst_146 : f32 to vector<8x1xf32>
      %278 = arith.divf %276, %277 : vector<8x1xf32>
      %cst_147 = arith.constant 9.99999996E-13 : f32
      %279 = vector.broadcast %cst_147 : f32 to vector<8x1xf32>
      %280 = arith.addf %278, %279 : vector<8x1xf32>
      %281 = math.rsqrt %280 : vector<8x1xf32>
      %282 = vector.broadcast %281 : vector<8x1xf32> to vector<8x32xf32>
      %283 = arith.mulf %273, %282 : vector<8x32xf32>
      %284 = vector.broadcast %266 : vector<1x32xf32> to vector<8x32xf32>
      %285 = arith.mulf %283, %284 : vector<8x32xf32>
      %286 = vector.broadcast %267 : vector<1x32xf32> to vector<8x32xf32>
      %287 = arith.addf %285, %286 : vector<8x32xf32>
      %c0_148 = arith.constant 0 : index
      %c0_149 = arith.constant 0 : index
      %288 = vector.load %arg36[%c0_148, %c0_149] : memref<8x32xf32, #tpu.memory_space<vmem>>, vector<8x32xf32>
      tpu.vector_store %arg36[%c0_148, %c0_149], %287 {strides = array<i32>} : memref<8x32xf32, #tpu.memory_space<vmem>>, vector<8x32xf32>,
    } else {
    }
    %c0 = arith.constant 0 : index
    %c0_1 = arith.constant 0 : index
    %3 = vector.load %arg36[%c0, %c0_1] : memref<8x32xf32, #tpu.memory_space<vmem>>, vector<8x32xf32>
    %c0_2 = arith.constant 0 : index
    %c0_3 = arith.constant 0 : index
    %c0_4 = arith.constant 0 : index
    %4 = vector.load %arg4[%c0_2, %c0_3, %c0_4] : memref<1x1x8xf32, #tpu.memory_space<vmem>>, vector<1x1x8xf32>
    %5 = vector.shape_cast %4 : vector<1x1x8xf32> to vector<1x8xf32>
    %cst = arith.constant 1.000000e+00 : f32
    %6 = vector.broadcast %cst : f32 to vector<1x8xf32>
    %7 = arith.subf %6, %5 : vector<1x8xf32>
    %cst_5 = arith.constant -1.000000e+04 : f32
    %8 = vector.broadcast %cst_5 : f32 to vector<1x8xf32>
    %9 = arith.mulf %7, %8 : vector<1x8xf32>
    %10 = vector.shape_cast %9 : vector<1x8xf32> to vector<1x1x1x8xf32>
    %11 = vector.shape_cast %10 : vector<1x1x1x8xf32> to vector<1x1x1x8xf32>
    %12 = vector.broadcast %11 : vector<1x1x1x8xf32> to vector<4x1x1x8xf32>
    %13 = vector.shape_cast %12 : vector<4x1x1x8xf32> to vector<4x1x8xf32>
    %14 = arith.truncf %3 : vector<8x32xf32> to vector<8x32xbf16>
    %15 = vector.shape_cast %14 : vector<8x32xbf16> to vector<1x8x32xbf16>
    %16 = vector.shape_cast %15 : vector<1x8x32xbf16> to vector<1x8x32xbf16>
    %17 = vector.broadcast %16 : vector<1x8x32xbf16> to vector<12x8x32xbf16>
    %c0_6 = arith.constant 0 : index
    %c0_7 = arith.constant 0 : index
    %c0_8 = arith.constant 0 : index
    %c0_9 = arith.constant 0 : index
    %18 = vector.load %arg21[%c0_6, %c0_7, %c0_8, %c0_9] : memref<1x12x32x8xbf16, #tpu.memory_space<vmem>>, vector<1x12x32x8xbf16>
    %19 = vector.shape_cast %18 : vector<1x12x32x8xbf16> to vector<12x32x8xbf16>
    %cst_10 = arith.constant dense<0.000000e+00> : vector<12x8x8xf32>
    %20 = tpu.matmul %17, %19, %cst_10 {dimension_numbers = #tpu.dot_dimension_numbers<[2], [1], [1], [2], [0, 0, 0, 1, 1, 2], [0], [0]>} : vector<12x8x32xbf16>, vector<12x32x8xbf16>, vector<12x8x8xf32> -> vector<12x8x8xf32>
    %c0_11 = arith.constant 0 : index
    %c0_12 = arith.constant 0 : index
    %c0_13 = arith.constant 0 : index
    %c0_14 = arith.constant 0 : index
    %21 = vector.load %arg22[%c0_11, %c0_12, %c0_13, %c0_14] : memref<1x12x1x8xf32, #tpu.memory_space<vmem>>, vector<1x12x1x8xf32>
    %22 = vector.shape_cast %21 : vector<1x12x1x8xf32> to vector<12x1x8xf32>
    %23 = vector.broadcast %22 : vector<12x1x8xf32> to vector<12x8x8xf32>
    %24 = arith.addf %20, %23 : vector<12x8x8xf32>
    %25 = vector.extract_strided_slice %24 {offsets = [0, 0, 0], sizes = [4, 8, 8], strides = [1, 1, 1]} : vector<12x8x8xf32> to vector<4x8x8xf32>
    %26 = vector.extract_strided_slice %24 {offsets = [4, 0, 0], sizes = [4, 8, 8], strides = [1, 1, 1]} : vector<12x8x8xf32> to vector<4x8x8xf32>
    %27 = vector.extract_strided_slice %24 {offsets = [8, 0, 0], sizes = [4, 8, 8], strides = [1, 1, 1]} : vector<12x8x8xf32> to vector<4x8x8xf32>
    %28 = arith.truncf %25 : vector<4x8x8xf32> to vector<4x8x8xbf16>
    %29 = arith.truncf %26 : vector<4x8x8xf32> to vector<4x8x8xbf16>
    %cst_15 = arith.constant dense<0.000000e+00> : vector<4x8x8xf32>
    %30 = tpu.matmul %28, %29, %cst_15 {dimension_numbers = #tpu.dot_dimension_numbers<[2], [2], [1], [1], [0, 0, 0, 1, 1, 1], [0], [0]>} : vector<4x8x8xbf16>, vector<4x8x8xbf16>, vector<4x8x8xf32> -> vector<4x8x8xf32>
    %cst_16 = arith.constant 0.353553385 : f32
    %31 = vector.broadcast %cst_16 : f32 to vector<4x8x8xf32>
    %32 = arith.mulf %30, %31 : vector<4x8x8xf32>
    %33 = vector.broadcast %13 : vector<4x1x8xf32> to vector<4x8x8xf32>
    %34 = arith.addf %32, %33 : vector<4x8x8xf32>
    %cst_17 = arith.constant dense<0xFF800000> : vector<4x8xf32>
    %35 = vector.multi_reduction <maximumf>, %34, %cst_17 [2] : vector<4x8x8xf32> to vector<4x8xf32>
    %36 = vector.shape_cast %35 : vector<4x8xf32> to vector<4x8x1xf32>
    %37 = vector.broadcast %36 : vector<4x8x1xf32> to vector<4x8x8xf32>
    %38 = arith.subf %34, %37 : vector<4x8x8xf32>
    %39 = math.exp %38 : vector<4x8x8xf32>
    %cst_18 = arith.constant dense<0.000000e+00> : vector<4x8xf32>
    %40 = vector.multi_reduction <add>, %39, %cst_18 [2] : vector<4x8x8xf32> to vector<4x8xf32>
    %41 = vector.shape_cast %40 : vector<4x8xf32> to vector<4x8x1xf32>
    %42 = tpu.reciprocal %41 {approx = true} : vector<4x8x1xf32> -> vector<4x8x1xf32>
    %43 = vector.broadcast %42 : vector<4x8x1xf32> to vector<4x8x8xf32>
    %44 = arith.mulf %39, %43 : vector<4x8x8xf32>
    %45 = arith.truncf %44 : vector<4x8x8xf32> to vector<4x8x8xbf16>
    %46 = arith.truncf %27 : vector<4x8x8xf32> to vector<4x8x8xbf16>
    %cst_19 = arith.constant dense<0.000000e+00> : vector<4x8x8xf32>
    %47 = tpu.matmul %45, %46, %cst_19 {dimension_numbers = #tpu.dot_dimension_numbers<[2], [1], [1], [2], [0, 0, 0, 1, 1, 2], [0], [0]>} : vector<4x8x8xbf16>, vector<4x8x8xbf16>, vector<4x8x8xf32> -> vector<4x8x8xf32>
    %48 = arith.truncf %47 : vector<4x8x8xf32> to vector<4x8x8xbf16>
    %c0_20 = arith.constant 0 : index
    %c0_21 = arith.constant 0 : index
    %c0_22 = arith.constant 0 : index
    %c0_23 = arith.constant 0 : index
    %49 = vector.load %arg23[%c0_20, %c0_21, %c0_22, %c0_23] : memref<1x4x8x32xbf16, #tpu.memory_space<vmem>>, vector<1x4x8x32xbf16>
    %50 = vector.shape_cast %49 : vector<1x4x8x32xbf16> to vector<4x8x32xbf16>
    %cst_24 = arith.constant dense<0.000000e+00> : vector<4x8x32xf32>
    %51 = tpu.matmul %48, %50, %cst_24 {dimension_numbers = #tpu.dot_dimension_numbers<[2], [1], [1], [2], [0, 0, 0, 1, 1, 2], [0], [0]>} : vector<4x8x8xbf16>, vector<4x8x32xbf16>, vector<4x8x32xf32> -> vector<4x8x32xf32>
    %cst_25 = arith.constant dense<0.000000e+00> : vector<8x32xf32>
    %52 = vector.multi_reduction <add>, %51, %cst_25 [0] : vector<4x8x32xf32> to vector<8x32xf32>
    %c0_26 = arith.constant 0 : index
    %c0_27 = arith.constant 0 : index
    %c0_28 = arith.constant 0 : index
    %53 = vector.load %arg24[%c0_26, %c0_27, %c0_28] : memref<1x1x32xf32, #tpu.memory_space<vmem>>, vector<1x1x32xf32>
    %54 = vector.shape_cast %53 : vector<1x1x32xf32> to vector<1x32xf32>
    %55 = vector.broadcast %54 : vector<1x32xf32> to vector<8x32xf32>
    %56 = arith.addf %52, %55 : vector<8x32xf32>
    %57 = arith.addf %56, %3 : vector<8x32xf32>
    %c0_29 = arith.constant 0 : index
    %c0_30 = arith.constant 0 : index
    %c0_31 = arith.constant 0 : index
    %58 = vector.load %arg25[%c0_29, %c0_30, %c0_31] : memref<1x1x32xf32, #tpu.memory_space<vmem>>, vector<1x1x32xf32>
    %59 = vector.shape_cast %58 : vector<1x1x32xf32> to vector<1x32xf32>
    %c0_32 = arith.constant 0 : index
    %c0_33 = arith.constant 0 : index
    %c0_34 = arith.constant 0 : index
    %60 = vector.load %arg26[%c0_32, %c0_33, %c0_34] : memref<1x1x32xf32, #tpu.memory_space<vmem>>, vector<1x1x32xf32>
    %61 = vector.shape_cast %60 : vector<1x1x32xf32> to vector<1x32xf32>
    %cst_35 = arith.constant dense<0.000000e+00> : vector<8xf32>
    %62 = vector.multi_reduction <add>, %57, %cst_35 [1] : vector<8x32xf32> to vector<8xf32>
    %63 = vector.shape_cast %62 : vector<8xf32> to vector<8x1xf32>
    %cst_36 = arith.constant 3.200000e+01 : f32
    %64 = vector.broadcast %cst_36 : f32 to vector<8x1xf32>
    %65 = arith.divf %63, %64 : vector<8x1xf32>
    %66 = vector.broadcast %65 : vector<8x1xf32> to vector<8x32xf32>
    %67 = arith.subf %57, %66 : vector<8x32xf32>
    %68 = arith.mulf %67, %67 : vector<8x32xf32>
    %cst_37 = arith.constant dense<0.000000e+00> : vector<8xf32>
    %69 = vector.multi_reduction <add>, %68, %cst_37 [1] : vector<8x32xf32> to vector<8xf32>
    %70 = vector.shape_cast %69 : vector<8xf32> to vector<8x1xf32>
    %cst_38 = arith.constant 3.200000e+01 : f32
    %71 = vector.broadcast %cst_38 : f32 to vector<8x1xf32>
    %72 = arith.divf %70, %71 : vector<8x1xf32>
    %cst_39 = arith.constant 9.99999996E-13 : f32
    %73 = vector.broadcast %cst_39 : f32 to vector<8x1xf32>
    %74 = arith.addf %72, %73 : vector<8x1xf32>
    %75 = math.rsqrt %74 : vector<8x1xf32>
    %76 = vector.broadcast %75 : vector<8x1xf32> to vector<8x32xf32>
    %77 = arith.mulf %67, %76 : vector<8x32xf32>
    %78 = vector.broadcast %59 : vector<1x32xf32> to vector<8x32xf32>
    %79 = arith.mulf %77, %78 : vector<8x32xf32>
    %80 = vector.broadcast %61 : vector<1x32xf32> to vector<8x32xf32>
    %81 = arith.addf %79, %80 : vector<8x32xf32>
    %82 = arith.truncf %81 : vector<8x32xf32> to vector<8x32xbf16>
    %c0_40 = arith.constant 0 : index
    %c0_41 = arith.constant 0 : index
    %c0_42 = arith.constant 0 : index
    %83 = vector.load %arg27[%c0_40, %c0_41, %c0_42] : memref<1x32x3072xbf16, #tpu.memory_space<vmem>>, vector<1x32x3072xbf16>
    %84 = vector.shape_cast %83 : vector<1x32x3072xbf16> to vector<32x3072xbf16>
    %cst_43 = arith.constant dense<0.000000e+00> : vector<8x3072xf32>
    %85 = tpu.matmul %82, %84, %cst_43 {dimension_numbers = #tpu.dot_dimension_numbers<[1], [0], [0], [1], [0, 0, 1, 1], [], []>} : vector<8x32xbf16>, vector<32x3072xbf16>, vector<8x3072xf32> -> vector<8x3072xf32>
    %c0_44 = arith.constant 0 : index
    %c0_45 = arith.constant 0 : index
    %c0_46 = arith.constant 0 : index
    %86 = vector.load %arg28[%c0_44, %c0_45, %c0_46] : memref<1x1x3072xf32, #tpu.memory_space<vmem>>, vector<1x1x3072xf32>
    %87 = vector.shape_cast %86 : vector<1x1x3072xf32> to vector<1x3072xf32>
    %88 = vector.broadcast %87 : vector<1x3072xf32> to vector<8x3072xf32>
    %89 = arith.addf %85, %88 : vector<8x3072xf32>
    %cst_47 = arith.constant 5.000000e-01 : f32
    %90 = vector.broadcast %cst_47 : f32 to vector<8x3072xf32>
    %91 = arith.mulf %90, %89 : vector<8x3072xf32>
    %cst_48 = arith.constant 0.707106769 : f32
    %92 = vector.broadcast %cst_48 : f32 to vector<8x3072xf32>
    %93 = arith.mulf %89, %92 : vector<8x3072xf32>
    %cst_49 = arith.constant 0.000000e+00 : f32
    %94 = vector.broadcast %cst_49 : f32 to vector<8x3072xf32>
    %95 = arith.cmpf oge, %93, %94 : vector<8x3072xf32>
    %cst_50 = arith.constant 1.000000e+00 : f32
    %cst_51 = arith.constant -1.000000e+00 : f32
    %96 = vector.broadcast %cst_50 : f32 to vector<8x3072xf32>
    %97 = vector.broadcast %cst_51 : f32 to vector<8x3072xf32>
    %98 = arith.select %95, %96, %97 : vector<8x3072xi1>, vector<8x3072xf32>
    %99 = math.absf %93 : vector<8x3072xf32>
    %cst_52 = arith.constant 0.327591091 : f32
    %100 = vector.broadcast %cst_52 : f32 to vector<8x3072xf32>
    %101 = arith.mulf %100, %99 : vector<8x3072xf32>
    %cst_53 = arith.constant 1.000000e+00 : f32
    %102 = vector.broadcast %cst_53 : f32 to vector<8x3072xf32>
    %103 = arith.addf %102, %101 : vector<8x3072xf32>
    %cst_54 = arith.constant 1.000000e+00 : f32
    %104 = vector.broadcast %cst_54 : f32 to vector<8x3072xf32>
    %105 = arith.divf %104, %103 : vector<8x3072xf32>
    %cst_55 = arith.constant 1.06140542 : f32
    %106 = vector.broadcast %cst_55 : f32 to vector<8x3072xf32>
    %107 = arith.mulf %106, %105 : vector<8x3072xf32>
    %cst_56 = arith.constant -1.45315206 : f32
    %108 = vector.broadcast %cst_56 : f32 to vector<8x3072xf32>
    %109 = arith.addf %107, %108 : vector<8x3072xf32>
    %110 = arith.mulf %109, %105 : vector<8x3072xf32>
    %cst_57 = arith.constant 1.42141378 : f32
    %111 = vector.broadcast %cst_57 : f32 to vector<8x3072xf32>
    %112 = arith.addf %110, %111 : vector<8x3072xf32>
    %113 = arith.mulf %112, %105 : vector<8x3072xf32>
    %cst_58 = arith.constant -0.284496725 : f32
    %114 = vector.broadcast %cst_58 : f32 to vector<8x3072xf32>
    %115 = arith.addf %113, %114 : vector<8x3072xf32>
    %116 = arith.mulf %115, %105 : vector<8x3072xf32>
    %cst_59 = arith.constant 0.254829586 : f32
    %117 = vector.broadcast %cst_59 : f32 to vector<8x3072xf32>
    %118 = arith.addf %116, %117 : vector<8x3072xf32>
    %119 = arith.mulf %118, %105 : vector<8x3072xf32>
    %cst_60 = arith.constant 0.000000e+00 : f32
    %120 = vector.broadcast %cst_60 : f32 to vector<8x3072xf32>
    %121 = arith.subf %120, %99 : vector<8x3072xf32>
    %122 = arith.mulf %121, %99 : vector<8x3072xf32>
    %123 = math.exp %122 : vector<8x3072xf32>
    %124 = arith.mulf %119, %123 : vector<8x3072xf32>
    %cst_61 = arith.constant 1.000000e+00 : f32
    %125 = vector.broadcast %cst_61 : f32 to vector<8x3072xf32>
    %126 = arith.subf %125, %124 : vector<8x3072xf32>
    %127 = arith.mulf %98, %126 : vector<8x3072xf32>
    %cst_62 = arith.constant 1.000000e+00 : f32
    %128 = vector.broadcast %cst_62 : f32 to vector<8x3072xf32>
    %129 = arith.addf %128, %127 : vector<8x3072xf32>
    %130 = arith.mulf %91, %129 : vector<8x3072xf32>
    %131 = arith.truncf %130 : vector<8x3072xf32> to vector<8x3072xbf16>
    %c0_63 = arith.constant 0 : index
    %c0_64 = arith.constant 0 : index
    %c0_65 = arith.constant 0 : index
    %132 = vector.load %arg29[%c0_63, %c0_64, %c0_65] : memref<1x3072x32xbf16, #tpu.memory_space<vmem>>, vector<1x3072x32xbf16>
    %133 = vector.shape_cast %132 : vector<1x3072x32xbf16> to vector<3072x32xbf16>
    %cst_66 = arith.constant dense<0.000000e+00> : vector<8x32xf32>
    %134 = tpu.matmul %131, %133, %cst_66 {dimension_numbers = #tpu.dot_dimension_numbers<[1], [0], [0], [1], [0, 0, 1, 1], [], []>} : vector<8x3072xbf16>, vector<3072x32xbf16>, vector<8x32xf32> -> vector<8x32xf32>
    %c0_67 = arith.constant 0 : index
    %c0_68 = arith.constant 0 : index
    %c0_69 = arith.constant 0 : index
    %135 = vector.load %arg30[%c0_67, %c0_68, %c0_69] : memref<1x1x32xf32, #tpu.memory_space<vmem>>, vector<1x1x32xf32>
    %136 = vector.shape_cast %135 : vector<1x1x32xf32> to vector<1x32xf32>
    %137 = vector.broadcast %136 : vector<1x32xf32> to vector<8x32xf32>
    %138 = arith.addf %134, %137 : vector<8x32xf32>
    %139 = arith.addf %138, %81 : vector<8x32xf32>
    %c0_70 = arith.constant 0 : index
    %c0_71 = arith.constant 0 : index
    %c0_72 = arith.constant 0 : index
    %140 = vector.load %arg31[%c0_70, %c0_71, %c0_72] : memref<1x1x32xf32, #tpu.memory_space<vmem>>, vector<1x1x32xf32>
    %141 = vector.shape_cast %140 : vector<1x1x32xf32> to vector<1x32xf32>
    %c0_73 = arith.constant 0 : index
    %c0_74 = arith.constant 0 : index
    %c0_75 = arith.constant 0 : index
    %142 = vector.load %arg32[%c0_73, %c0_74, %c0_75] : memref<1x1x32xf32, #tpu.memory_space<vmem>>, vector<1x1x32xf32>
    %143 = vector.shape_cast %142 : vector<1x1x32xf32> to vector<1x32xf32>
    %cst_76 = arith.constant dense<0.000000e+00> : vector<8xf32>
    %144 = vector.multi_reduction <add>, %139, %cst_76 [1] : vector<8x32xf32> to vector<8xf32>
    %145 = vector.shape_cast %144 : vector<8xf32> to vector<8x1xf32>
    %cst_77 = arith.constant 3.200000e+01 : f32
    %146 = vector.broadcast %cst_77 : f32 to vector<8x1xf32>
    %147 = arith.divf %145, %146 : vector<8x1xf32>
    %148 = vector.broadcast %147 : vector<8x1xf32> to vector<8x32xf32>
    %149 = arith.subf %139, %148 : vector<8x32xf32>
    %150 = arith.mulf %149, %149 : vector<8x32xf32>
    %cst_78 = arith.constant dense<0.000000e+00> : vector<8xf32>
    %151 = vector.multi_reduction <add>, %150, %cst_78 [1] : vector<8x32xf32> to vector<8xf32>
    %152 = vector.shape_cast %151 : vector<8xf32> to vector<8x1xf32>
    %cst_79 = arith.constant 3.200000e+01 : f32
    %153 = vector.broadcast %cst_79 : f32 to vector<8x1xf32>
    %154 = arith.divf %152, %153 : vector<8x1xf32>
    %cst_80 = arith.constant 9.99999996E-13 : f32
    %155 = vector.broadcast %cst_80 : f32 to vector<8x1xf32>
    %156 = arith.addf %154, %155 : vector<8x1xf32>
    %157 = math.rsqrt %156 : vector<8x1xf32>
    %158 = vector.broadcast %157 : vector<8x1xf32> to vector<8x32xf32>
    %159 = arith.mulf %149, %158 : vector<8x32xf32>
    %160 = vector.broadcast %141 : vector<1x32xf32> to vector<8x32xf32>
    %161 = arith.mulf %159, %160 : vector<8x32xf32>
    %162 = vector.broadcast %143 : vector<1x32xf32> to vector<8x32xf32>
    %163 = arith.addf %161, %162 : vector<8x32xf32>
    %c0_81 = arith.constant 0 : index
    %c0_82 = arith.constant 0 : index
    %164 = vector.load %arg36[%c0_81, %c0_82] : memref<8x32xf32, #tpu.memory_space<vmem>>, vector<8x32xf32>
    tpu.vector_store %arg36[%c0_81, %c0_82], %163 {strides = array<i32>} : memref<8x32xf32, #tpu.memory_space<vmem>>, vector<8x32xf32>,
    %c1_i32 = arith.constant 1 : i32
    %165 = arith.cmpi eq, %arg1, %c1_i32 : i32
    %166 = arith.extui %165 : i1 to i32
    %c0_i32_83 = arith.constant 0 : i32
    %167 = arith.cmpi ne, %166, %c0_i32_83 : i32
    scf.if %167 {
      %c0_84 = arith.constant 0 : index
      %c0_85 = arith.constant 0 : index
      %168 = vector.load %arg36[%c0_84, %c0_85] : memref<8x32xf32, #tpu.memory_space<vmem>>, vector<8x32xf32>
      %169 = vector.shape_cast %168 : vector<8x32xf32> to vector<1x8x32xf32>
      %c0_86 = arith.constant 0 : index
      %c0_87 = arith.constant 0 : index
      %170 = vector.load %arg33[%c0_86, %c0_87] : memref<1x32xf32, #tpu.memory_space<vmem>>, vector<1x32xf32>
      %171 = vector.shape_cast %170 : vector<1x32xf32> to vector<1x1x32xf32>
      %172 = vector.broadcast %171 : vector<1x1x32xf32> to vector<1x8x32xf32>
      %173 = arith.mulf %169, %172 : vector<1x8x32xf32>
      %cst_88 = arith.constant dense<0.000000e+00> : vector<1x8xf32>
      %174 = vector.multi_reduction <add>, %173, %cst_88 [2] : vector<1x8x32xf32> to vector<1x8xf32>
      %c0_89 = arith.constant 0 : index
      %c0_90 = arith.constant 0 : index
      %175 = vector.load %arg34[%c0_89, %c0_90] : memref<1x1xf32, #tpu.memory_space<vmem>>, vector<1x1xf32>
      %176 = vector.broadcast %175 : vector<1x1xf32> to vector<1x8xf32>
      %177 = arith.addf %174, %176 : vector<1x8xf32>
      %178 = arith.negf %177 : vector<1x8xf32>
      %179 = math.exp %178 : vector<1x8xf32>
      %cst_91 = arith.constant 1.000000e+00 : f32
      %180 = vector.broadcast %cst_91 : f32 to vector<1x8xf32>
      %181 = arith.addf %180, %179 : vector<1x8xf32>
      %182 = arith.divf %180, %181 : vector<1x8xf32>
      %c0_92 = arith.constant 0 : index
      %c0_93 = arith.constant 0 : index
      %c0_94 = arith.constant 0 : index
      %183 = vector.load %arg35[%c0_92, %c0_93, %c0_94] : memref<1x1x8xf32, #tpu.memory_space<vmem>>, vector<1x1x8xf32>
      %184 = vector.shape_cast %183 : vector<1x1x8xf32> to vector<1x8xf32>
      %185 = vector.shape_cast %182 : vector<1x8xf32> to vector<1x1x8xf32>
      tpu.vector_store %arg35[%c0_92, %c0_93, %c0_94], %185 {strides = array<i32>} : memref<1x1x8xf32, #tpu.memory_space<vmem>>, vector<1x1x8xf32>,
    } else {
    }
    return
  }
  func.func @transform_0(%arg0: i32, %arg1: i32) -> (i32, i32, i32) {
    %c0_i32 = arith.constant 0 : i32
    %c0_i32_0 = arith.constant 0 : i32
    %c0_i32_1 = arith.constant 0 : i32
    return %arg0, %c0_i32, %c0_i32_0 : i32, i32, i32
  }
  func.func @transform_1(%arg0: i32, %arg1: i32) -> (i32, i32, i32) {
    %c0_i32 = arith.constant 0 : i32
    %c0_i32_0 = arith.constant 0 : i32
    %c0_i32_1 = arith.constant 0 : i32
    return %arg0, %c0_i32, %c0_i32_0 : i32, i32, i32
  }
  func.func @transform_2(%arg0: i32, %arg1: i32) -> (i32, i32, i32) {
    %c0_i32 = arith.constant 0 : i32
    %c0_i32_0 = arith.constant 0 : i32
    %c0_i32_1 = arith.constant 0 : i32
    return %arg0, %c0_i32, %c0_i32_0 : i32, i32, i32
  }
  func.func @transform_3(%arg0: i32, %arg1: i32) -> (i32, i32) {
    %c0_i32 = arith.constant 0 : i32
    %c0_i32_0 = arith.constant 0 : i32
    %c0_i32_1 = arith.constant 0 : i32
    return %c0_i32, %c0_i32_0 : i32, i32
  }
  func.func @transform_4(%arg0: i32, %arg1: i32) -> (i32, i32) {
    %c0_i32 = arith.constant 0 : i32
    %c0_i32_0 = arith.constant 0 : i32
    %c0_i32_1 = arith.constant 0 : i32
    return %c0_i32, %c0_i32_0 : i32, i32
  }
  func.func @transform_5(%arg0: i32, %arg1: i32) -> (i32, i32) {
    %c0_i32 = arith.constant 0 : i32
    %c0_i32_0 = arith.constant 0 : i32
    %c0_i32_1 = arith.constant 0 : i32
    return %c0_i32, %c0_i32_0 : i32, i32
  }
  func.func @transform_6(%arg0: i32, %arg1: i32) -> (i32, i32) {
    %c0_i32 = arith.constant 0 : i32
    %c0_i32_0 = arith.constant 0 : i32
    %c0_i32_1 = arith.constant 0 : i32
    return %c0_i32, %c0_i32_0 : i32, i32
  }
  func.func @transform_7(%arg0: i32, %arg1: i32) -> (i32, i32) {
    %c0_i32 = arith.constant 0 : i32
    %c0_i32_0 = arith.constant 0 : i32
    %c0_i32_1 = arith.constant 0 : i32
    return %c0_i32, %c0_i32_0 : i32, i32
  }
  func.func @transform_8(%arg0: i32, %arg1: i32) -> (i32, i32) {
    %c0_i32 = arith.constant 0 : i32
    %c0_i32_0 = arith.constant 0 : i32
    %c0_i32_1 = arith.constant 0 : i32
    return %c0_i32, %c0_i32_0 : i32, i32
  }
  func.func @transform_9(%arg0: i32, %arg1: i32) -> (i32, i32) {
    %c0_i32 = arith.constant 0 : i32
    %c0_i32_0 = arith.constant 0 : i32
    %c0_i32_1 = arith.constant 0 : i32
    return %c0_i32, %c0_i32_0 : i32, i32
  }
  func.func @transform_10(%arg0: i32, %arg1: i32) -> (i32, i32) {
    %c0_i32 = arith.constant 0 : i32
    %c0_i32_0 = arith.constant 0 : i32
    %c0_i32_1 = arith.constant 0 : i32
    return %c0_i32, %c0_i32_0 : i32, i32
  }
  func.func @transform_11(%arg0: i32, %arg1: i32) -> (i32, i32) {
    %c0_i32 = arith.constant 0 : i32
    %c0_i32_0 = arith.constant 0 : i32
    %c0_i32_1 = arith.constant 0 : i32
    return %c0_i32, %c0_i32_0 : i32, i32
  }
  func.func @transform_12(%arg0: i32, %arg1: i32) -> (i32, i32) {
    %c0_i32 = arith.constant 0 : i32
    %c0_i32_0 = arith.constant 0 : i32
    %c0_i32_1 = arith.constant 0 : i32
    return %c0_i32, %c0_i32_0 : i32, i32
  }
  func.func @transform_13(%arg0: i32, %arg1: i32) -> (i32, i32) {
    %c0_i32 = arith.constant 0 : i32
    %c0_i32_0 = arith.constant 0 : i32
    %c0_i32_1 = arith.constant 0 : i32
    return %c0_i32, %c0_i32_0 : i32, i32
  }
  func.func @transform_14(%arg0: i32, %arg1: i32) -> (i32, i32) {
    %c0_i32 = arith.constant 0 : i32
    %c0_i32_0 = arith.constant 0 : i32
    %c0_i32_1 = arith.constant 0 : i32
    return %c0_i32, %c0_i32_0 : i32, i32
  }
  func.func @transform_15(%arg0: i32, %arg1: i32) -> (i32, i32) {
    %c0_i32 = arith.constant 0 : i32
    %c0_i32_0 = arith.constant 0 : i32
    %c0_i32_1 = arith.constant 0 : i32
    return %c0_i32, %c0_i32_0 : i32, i32
  }
  func.func @transform_16(%arg0: i32, %arg1: i32) -> (i32, i32) {
    %c0_i32 = arith.constant 0 : i32
    %c0_i32_0 = arith.constant 0 : i32
    %c0_i32_1 = arith.constant 0 : i32
    return %c0_i32, %c0_i32_0 : i32, i32
  }
  func.func @transform_17(%arg0: i32, %arg1: i32) -> (i32, i32) {
    %c0_i32 = arith.constant 0 : i32
    %c0_i32_0 = arith.constant 0 : i32
    %c0_i32_1 = arith.constant 0 : i32
    return %c0_i32, %c0_i32_0 : i32, i32
  }
  func.func @transform_18(%arg0: i32, %arg1: i32) -> (i32, i32) {
    %c0_i32 = arith.constant 0 : i32
    %c0_i32_0 = arith.constant 0 : i32
    %c0_i32_1 = arith.constant 0 : i32
    return %c0_i32, %c0_i32_0 : i32, i32
  }
  func.func @transform_19(%arg0: i32, %arg1: i32) -> (i32, i32, i32, i32) {
    %c0_i32 = arith.constant 0 : i32
    %c0_i32_0 = arith.constant 0 : i32
    %c0_i32_1 = arith.constant 0 : i32
    %c0_i32_2 = arith.constant 0 : i32
    return %arg1, %c0_i32, %c0_i32_0, %c0_i32_1 : i32, i32, i32, i32
  }
  func.func @transform_20(%arg0: i32, %arg1: i32) -> (i32, i32, i32, i32) {
    %c0_i32 = arith.constant 0 : i32
    %c0_i32_0 = arith.constant 0 : i32
    %c0_i32_1 = arith.constant 0 : i32
    %c0_i32_2 = arith.constant 0 : i32
    return %arg1, %c0_i32, %c0_i32_0, %c0_i32_1 : i32, i32, i32, i32
  }
  func.func @transform_21(%arg0: i32, %arg1: i32) -> (i32, i32, i32, i32) {
    %c0_i32 = arith.constant 0 : i32
    %c0_i32_0 = arith.constant 0 : i32
    %c0_i32_1 = arith.constant 0 : i32
    %c0_i32_2 = arith.constant 0 : i32
    return %arg1, %c0_i32, %c0_i32_0, %c0_i32_1 : i32, i32, i32, i32
  }
  func.func @transform_22(%arg0: i32, %arg1: i32) -> (i32, i32, i32) {
    %c0_i32 = arith.constant 0 : i32
    %c0_i32_0 = arith.constant 0 : i32
    %c0_i32_1 = arith.constant 0 : i32
    return %arg1, %c0_i32, %c0_i32_0 : i32, i32, i32
  }
  func.func @transform_23(%arg0: i32, %arg1: i32) -> (i32, i32, i32) {
    %c0_i32 = arith.constant 0 : i32
    %c0_i32_0 = arith.constant 0 : i32
    %c0_i32_1 = arith.constant 0 : i32
    return %arg1, %c0_i32, %c0_i32_0 : i32, i32, i32
  }
  func.func @transform_24(%arg0: i32, %arg1: i32) -> (i32, i32, i32) {
    %c0_i32 = arith.constant 0 : i32
    %c0_i32_0 = arith.constant 0 : i32
    %c0_i32_1 = arith.constant 0 : i32
    return %arg1, %c0_i32, %c0_i32_0 : i32, i32, i32
  }
  func.func @transform_25(%arg0: i32, %arg1: i32) -> (i32, i32, i32) {
    %c0_i32 = arith.constant 0 : i32
    %c0_i32_0 = arith.constant 0 : i32
    %c0_i32_1 = arith.constant 0 : i32
    return %arg1, %c0_i32, %c0_i32_0 : i32, i32, i32
  }
  func.func @transform_26(%arg0: i32, %arg1: i32) -> (i32, i32, i32) {
    %c0_i32 = arith.constant 0 : i32
    %c0_i32_0 = arith.constant 0 : i32
    %c0_i32_1 = arith.constant 0 : i32
    return %arg1, %c0_i32, %c0_i32_0 : i32, i32, i32
  }
  func.func @transform_27(%arg0: i32, %arg1: i32) -> (i32, i32, i32) {
    %c0_i32 = arith.constant 0 : i32
    %c0_i32_0 = arith.constant 0 : i32
    %c0_i32_1 = arith.constant 0 : i32
    return %arg1, %c0_i32, %c0_i32_0 : i32, i32, i32
  }
  func.func @transform_28(%arg0: i32, %arg1: i32) -> (i32, i32, i32) {
    %c0_i32 = arith.constant 0 : i32
    %c0_i32_0 = arith.constant 0 : i32
    %c0_i32_1 = arith.constant 0 : i32
    return %arg1, %c0_i32, %c0_i32_0 : i32, i32, i32
  }
  func.func @transform_29(%arg0: i32, %arg1: i32) -> (i32, i32, i32) {
    %c0_i32 = arith.constant 0 : i32
    %c0_i32_0 = arith.constant 0 : i32
    %c0_i32_1 = arith.constant 0 : i32
    return %arg1, %c0_i32, %c0_i32_0 : i32, i32, i32
  }
  func.func @transform_30(%arg0: i32, %arg1: i32) -> (i32, i32, i32) {
    %c0_i32 = arith.constant 0 : i32
    %c0_i32_0 = arith.constant 0 : i32
    %c0_i32_1 = arith.constant 0 : i32
    return %arg1, %c0_i32, %c0_i32_0 : i32, i32, i32
  }
  func.func @transform_31(%arg0: i32, %arg1: i32) -> (i32, i32) {
    %c0_i32 = arith.constant 0 : i32
    %c0_i32_0 = arith.constant 0 : i32
    %c0_i32_1 = arith.constant 0 : i32
    return %c0_i32, %c0_i32_0 : i32, i32
  }
  func.func @transform_32(%arg0: i32, %arg1: i32) -> (i32, i32) {
    %c0_i32 = arith.constant 0 : i32
    %c0_i32_0 = arith.constant 0 : i32
    %c0_i32_1 = arith.constant 0 : i32
    return %c0_i32, %c0_i32_0 : i32, i32
  }
  func.func @transform_33(%arg0: i32, %arg1: i32) -> (i32, i32, i32) {
    %c0_i32 = arith.constant 0 : i32
    %c0_i32_0 = arith.constant 0 : i32
    %c0_i32_1 = arith.constant 0 : i32
    return %arg0, %c0_i32, %c0_i32_0 : i32, i32, i32
  }
}

</mosaic_0001>

<bundles_post_ra>
// kernel: tpu_custom_call.1
= control target key start
LH: loop header
LB: loop body
LE: loop exit
PB: predicated region body
PF: predicated region fallthrough
CT: control target
= control target key end

     0   :  { %s8490_s6 = smov 1   ;;  %s8491_s10 = smov 2   ;;  %s10174_s0 = inlined_call_operand.smem [shape: u32[34], index: -1, kind: input, shape index: {}] }
   0x1   :  { %s8539_s5 = sld [smem:[%s10174_s0]]   ;;  %s8492_s14 = smov 3  }
   0x2   :  { %s8544_s9 = sld [smem:[%s10174_s0 + %s8490_s6]]   ;;  %s8493_s18 = smov 4  }
   0x3   :  { %s8549_s13 = sld [smem:[%s10174_s0 + %s8491_s10]]   ;;  %s8494_s22 = smov 5  }
   0x4   :  { %s8554_s17 = sld [smem:[%s10174_s0 + %s8492_s14]]   ;;  %s8495_s26 = smov 6  }
   0x5   :  { %s8559_s21 = sld [smem:[%s10174_s0 + %s8493_s18]]   ;;  %s8496_s30 = smov 7  }
   0x6   :  { %s8564_s25 = sld [smem:[%s10174_s0 + %s8494_s22]]   ;;  %s8497_s4 = smov 8  }
   0x7   :  { %10217 = sst [smem:[#allocation7_spill]] %s8539_s5  ;;  %s8498_s10 = smov 9  }
   0x8   :  { %10218 = sst [smem:[#allocation8_spill]] %s8544_s9  ;;  %s8499_s15 = smov 10  }
   0x9   :  { %10219 = sst [smem:[#allocation9_spill]] %s8549_s13  ;;  %s8500_s20 = smov 11  }
   0xa   :  { %10220 = sst [smem:[#allocation10_spill]] %s8554_s17  ;;  %s8502_s1 = smov 13  }
   0xb   :  { %10221 = sst [smem:[#allocation11_spill]] %s8559_s21  ;;  %s8503_s7 = smov 14  }
   0xc   :  { %10222 = sst [smem:[#allocation12_spill]] %s8564_s25  ;;  %s8505_s22 = smov 16  }
   0xd   :  { %s8569_s29 = sld [smem:[%s10174_s0 + %s8495_s26]]   ;;  %s8501_s26 = smov 12  }
   0xe   :  { %s8574_s3 = sld [smem:[%s10174_s0 + %s8496_s30]]   ;;  %s8506_s28 = smov 17  }
   0xf   :  { %s8579_s8 = sld [smem:[%s10174_s0 + %s8497_s4]]  }
  0x10   :  { %s8584_s14 = sld [smem:[%s10174_s0 + %s8498_s10]]  }
  0x11   :  { %s8589_s19 = sld [smem:[%s10174_s0 + %s8499_s15]]   ;;  %s8504_s15 = smov 15  }
  0x12   :  { %s8594_s24 = sld [smem:[%s10174_s0 + %s8500_s20]]  }
  0x13   :  { %10223 = sst [smem:[#allocation13_spill]] %s8569_s29 }
  0x14   :  { %10224 = sst [smem:[#allocation14_spill]] %s8574_s3 }
  0x15   :  { %10225 = sst [smem:[#allocation15_spill]] %s8579_s8 }
  0x16   :  { %10226 = sst [smem:[#allocation16_spill]] %s8584_s14 }
  0x17   :  { %10227 = sst [smem:[#allocation17_spill]] %s8589_s19 }
  0x18   :  { %10228 = sst [smem:[#allocation18_spill]] %s8594_s24 }
  0x19   :  { %s8599_s30 = sld [smem:[%s10174_s0 + %s8501_s26]]  }
  0x1a   :  { %s8604_s6 = sld [smem:[%s10174_s0 + %s8502_s1]]   ;;  %s8522_s1 = smov 33  }
  0x1b   :  { %s8609_s12 = sld [smem:[%s10174_s0 + %s8503_s7]]   ;;  %s8507_s7 = smov 18  }
  0x1c   :  { %s8614_s20 = sld [smem:[%s10174_s0 + %s8504_s15]]   ;;  %s8508_s15 = smov 19  }
  0x1d   :  { %s8619_s27 = sld [smem:[%s10174_s0 + %s8505_s22]]   ;;  %s8509_s22 = smov 20  }
  0x1e   :  { %s8624_s4 = sld [smem:[%s10174_s0 + %s8506_s28]]   ;;  %s8510_s28 = smov 21  }
  0x1f   :  { %10229 = sst [smem:[#allocation19_spill]] %s8599_s30 }
  0x20   :  { %10230 = sst [smem:[#allocation20_spill]] %s8604_s6 }
  0x21   :  { %10231 = sst [smem:[#allocation21_spill]] %s8609_s12 }
  0x22   :  { %10232 = sst [smem:[#allocation22_spill]] %s8614_s20 }
  0x23   :  { %10233 = sst [smem:[#allocation23_spill]] %s8619_s27 }
  0x24   :  { %10234 = sst [smem:[#allocation24_spill]] %s8624_s4 }
  0x25   :  { %s8629_s17 = sld [smem:[%s10174_s0 + %s8507_s7]]   ;;  %s8511_s7 = smov 22  }
  0x26   :  { %s8634_s20 = sld [smem:[%s10174_s0 + %s8508_s15]]   ;;  %s8512_s15 = smov 23  }
  0x27   :  { %s8639_s27 = sld [smem:[%s10174_s0 + %s8509_s22]]   ;;  %s8513_s22 = smov 24  }
  0x28   :  { %s8644_s4 = sld [smem:[%s10174_s0 + %s8510_s28]]   ;;  %s8514_s28 = smov 25  }
  0x29   :  { %s8654_s12 = sld [smem:[%s10174_s0 + %s8512_s15]]   ;;  %s8516_s15 = smov 27  }
  0x2a   :  { %s8659_s24 = sld [smem:[%s10174_s0 + %s8513_s22]]   ;;  %s8517_s22 = smov 28  }
  0x2b   :  { %10235 = sst [smem:[#allocation25_spill]] %s8629_s17 }
  0x2c   :  { %s8649_s17 = sld [smem:[%s10174_s0 + %s8511_s7]]   ;;  %s8515_s7 = smov 26  }
  0x2d   :  { %s8664_s19 = sld [smem:[%s10174_s0 + %s8514_s28]]   ;;  %s8518_s28 = smov 29  }
  0x2e   :  { %10236 = sst [smem:[#allocation26_spill]] %s8644_s4 }
  0x2f   :  { %s8669_s3 = sld [smem:[%s10174_s0 + %s8515_s7]]   ;;  %s8519_s7 = smov 30  }
  0x30   :  { %s8674_s29 = sld [smem:[%s10174_s0 + %s8516_s15]]   ;;  %s8520_s15 = smov 31  }
  0x31   :  { %s8679_s6 = sld [smem:[%s10174_s0 + %s8517_s22]]   ;;  %s8521_s22 = smov 32  }
  0x32   :  { %s8684_s30 = sld [smem:[%s10174_s0 + %s8518_s28]]  }
  0x33   :  { %s8689_s14 = sld [smem:[%s10174_s0 + %s8519_s7]]  }
  0x34   :  { %s8694_s25 = sld [smem:[%s10174_s0 + %s8520_s15]]  }
  0x35   :  { %s7026_s8 = sld [smem:[%s10174_s0 + %s8521_s22]]  }
  0x36   :  { %s8702_s21 = sld [smem:[%s10174_s0 + %s8522_s1]]  }
  0x3a   :  { %10237 = sst [smem:[#allocation27_spill]] %s8694_s25 }
  0x3b   :  { %v72_v0 = vstv %s7026_s8 }
  0x3c   :  { %10238 = sst [smem:[#allocation28_spill]] %s8702_s21  ;;  %73 = vst [vmem:[#allocation3] sm:$0x1] %v72_v0 }
  0x3d   :  { %74 = vsyncpa [#allocation5], 0 }
  0x3e   :  { %76 = vsyncpa [#allocation5 + $0x1], 0  ;;  %s8704_s7 = smov 0   ;;  %s8706_s10 = smov 0  }
  0x3f   :  { %s8708_s11 = smov 0   ;;  %s8710_s15 = smov 0  }
  0x40   :  { %s8712_s16 = smov 0   ;;  %s8714_s18 = smov 0  }
  0x41   :  { %s8716_s22 = smov 0   ;;  %s8718_s0 = smov 0  }
  0x42 LB: > { %10239 = sst [smem:[#allocation29_spill]] %s8460_s7  ;;  %s7028_s8 = sadd.s32 4294967295, %s8488_s0   ;;  %s8488_s0 = sphi %s8718_s0, %s82_s0   ;;  %s8484_s22 = sphi %s8716_s22, %s10356_s22   ;;  %s8480_s18 = sphi %s8714_s18, %s10355_s18   ;;  %s8476_s16 = sphi %s8712_s16, %s10354_s16   ;;  %s8472_s15 = sphi %s8710_s15, %s10353_s15   ;;  %s8468_s11 = sphi %s8708_s11, %s10352_s11   ;;  %s8464_s10 = sphi %s8706_s10, %s10358_s10   ;;  %s8460_s7 = sphi %s8704_s7, %s10357_s7  }
  0x43   : > { %10240 = sst [smem:[#allocation30_spill]] %s8468_s11  ;;  %s7029_s23 = sadd.s32 4294967294, %s8488_s0  }
  0x44   : > { %10241 = sst [smem:[#allocation31_spill]] %s8472_s15  ;;  %s91_s26 = sadd.s32 1, %s8480_s18 }
  0x45   : > { %10242 = sst [smem:[#allocation32_spill]] %s8476_s16  ;;  %p92_p0 = scmp.ge.s32.totalorder %s91_s26, 2 }
  0x46   : > { %10243 = sst [smem:[#allocation33_spill]] %s8480_s18  ;;  %s94_s1 = sadd.s32 1, %s8484_s22 }
  0x47   : > { %10244 = sst [smem:[#allocation34_spill]] %s8484_s22  ;;  %p879_p1 = scmp.ne.s32.totalorder %s8468_s11, %s8464_s10 }
  0x48   : > { %10245 = sst [smem:[#allocation35_spill]] %s8488_s0  ;;  %p880_p2 = scmp.eq.s32.totalorder %s7028_s8, 3 }
  0x49   : > { %s10360_s26 = smov (%p92_p0, %s91_s26), 0  ;;  %s10362_s1 = smov (!%p92_p0, %s94_s1), %s8484_s22 }
  0x4a   : > { %10246 = sst [smem:[#allocation36_spill]] %s10360_s26  ;;  %p8753_p3 = por %p880_p2, %p879_p1 }
  0x4b   : > { %p885_p4 = scmp.ne.s32.totalorder %s8464_s10, %s8460_s7  ;;  %p96_p5 = scmp.ge.s32.totalorder %s10362_s1, 2 }
  0x4c   : > { %s10247_s28 = scalar_select %p8753_p3, 1, 0 }
  0x4d   : > { %p886_p6 = scmp.eq.s32.totalorder %s7029_s23, 3  ;;  %p7032_p7 = scmp.ge.s32.totalorder %s8488_s0, 1 }
  0x4e   : > { %10248 = sst [smem:[#allocation37_spill]] %s10247_s28  ;;  %p1060_p8 = scmp.lt.s32.totalorder %s8488_s0, 5 }
  0x4f   : > { %s10364_s1 = smov (%p96_p5, %s10362_s1), 0  ;;  %p8763_p9 = por %p886_p6, %p885_p4 }
  0x50   : > { %10249 = sst [smem:[#allocation38_spill]] %s10364_s1  ;;  %p1061_p10 = pnand %p7032_p7, %p1060_p8 }
  0x51   : > { %s10250_s2 = scalar_select %p8763_p9, 1, 0 }
  0x52   : > { %s866_s8 = ssub.s32 %s8484_s22, %s10364_s1  ;;  %s869_s26 = sadd.s32 1, %s8468_s11 }
  0x53   : > { %10251 = sst [smem:[#allocation39_spill]] %s10250_s2  ;;  %p867_p11 = scmp.eq.s32.totalorder %s866_s8, 0 }
  0x54   : > { %1064 = sbr.rel (%p1061_p10) target bundleno = 4276 (0x10b4), region = 152 }
  0x55   : > { %s8771_s18 = scalar_select %p867_p11, %s8468_s11, %s869_s26  }
  0x57   : > { %10252 = sst [smem:[#allocation40_spill]] %s8771_s18 }
  0x5b   : > { %s10254_s5 = sld [smem:[#allocation7_spill]]  ;;  %s10255_s9 = sld [smem:[#allocation8_spill]] }
  0x5c   : > { %s10256_s4 = sld [smem:[#allocation26_spill]]  ;;  %p1195_p12 = scmp.lt.s32.totalorder %s8476_s16, 1 }
  0x5d   : > { %p1206_p13 = scmp.lt.s32.totalorder %s8472_s15, 1  ;;  %s10261_s1 = sld [smem:[#allocation31_spill]] }
  0x5e   : > { %s8777_s26 = scalar_select %p1195_p12, %s8476_s16, 1 }
  0x5f   : > { %s8780_s8 = scalar_select %p1206_p13, %s8472_s15, 1 }
  0x60   : > { %10257 = sst [smem:[#allocation41_spill]] %s8777_s26  ;;  %s7033_s23 = sshll.u32 %s8777_s26, 3 }
  0x61   : > { %s8786_s22 = scalar_lea.vmem %s10254_s5, %s7033_s23  ;;  %s8789_s18 = scalar_lea.vmem %s10255_s9, %s7033_s23 }
  0x62   : > { %10258 = sst [smem:[#allocation42_spill]] %s8786_s22  ;;  %s7924_s11 = smul.u32 192, %s8780_s8 }
  0x63   : > { %10259 = sst [smem:[#allocation43_spill]] %s8789_s18  ;;  %s7387_s2 = sshll.u32 %s8780_s8, 4 }
  0x64   : > { %s7925_s7 = smul.u32 12, %s8780_s8  ;;  %s8795_s0 = scalar_lea.vmem %s10256_s4, %s7387_s2 }
  0x65   : > { %s8798_s28 = scalar_lea.vmem %s8634_s20, %s7924_s11  ;;  %s7926_s23 = smul.u32 384, %s8780_s8 }
  0x66   : > { %s8803_s21 = scalar_lea.vmem %s8639_s27, %s7925_s7  ;;  %s7927_s9 = smul.u32 24, %s8780_s8 }
  0x67   : > { %s8814_s26 = scalar_lea.vmem %s8664_s19, %s7926_s23  ;;  %s7928_s13 = smul.u32 1536, %s8780_s8 }
  0x68   : > { %s8818_s22 = scalar_lea.vmem %s8669_s3, %s7927_s9  ;;  %s1248_s18 = scalar_lea.vmem %s8684_s30, %s8780_s8 }
  0x69   : > { %s8823_s15 = scalar_lea.vmem %s8674_s29, %s7928_s13  ;;  %s1251_s2 = scalar_lea.vmem %s8689_s14, %s8780_s8 }
  0x6a   : > { %s10260_s4 = sand.u32 1, %s8464_s10   ;;  %p7040_p0 = scmp.ne.s32.totalorder %s10261_s1, 0 }
  0x6b   : > { %s8829_s11 = scalar_lea.vmem [#allocation4], %s10260_s4  ;;  %s10262_s7 = sld [smem:[#allocation11_spill]] (!%p7040_p0)  ;;  %v8523_v2 = vmov (!%p7040_p0), 0.0   ;;  %vm1379_vm0 = vcmask (!%p7040_p0), 1041408   ;;  %vm1291_vm1 = vcmask (!%p7040_p0), 1043456   ;;  %vm8524_vm2 = vmmov (!%p7040_p0), 0  }
  0x6c   : > { %1256 = sbr.rel (%p7040_p0) target bundleno = 1505 (0x5e1), region = 156  ;;  %s10264_s16 = sld [smem:[#allocation15_spill]] (!%p7040_p0)  ;;  %7724 = vmatprep.subr.bf16.mxu0 (!%p7040_p0), %v8523_v2  ;;  %7734 = vmatprep.subr.bf16.mxu1 (!%p7040_p0), %v8523_v2  ;;  %vm1375_vm3 = vcmask (!%p7040_p0), 31744   ;;  %vm1287_vm4 = vcmask (!%p7040_p0), 326656   ;;  %vm1337_vm5 = vcmask (!%p7040_p0), 261120  }
  0x6d   : > { %s10265_s25 = sld [smem:[#allocation43_spill]] (!%p7040_p0)  ;;  %s10266_s23 = sld [smem:[#allocation42_spill]] (!%p7040_p0)  ;;  %7730 = vmatprep.mubr.msk.bf16.mxu0 (!%p7040_p0), %vm8524_vm2, %v8523_v2  ;;  %7736 = vmatprep.mubr.msk.bf16.mxu1 (!%p7040_p0), %vm8524_vm2, %v8523_v2 }
  0x6e   : > { %s10267_s9 = sld [smem:[#allocation12_spill]] (!%p7040_p0)  ;;  %s10268_s13 = sld [smem:[#allocation16_spill]] (!%p7040_p0) }
  0x6f   : > { %s10270_s4 = sld [smem:[#allocation20_spill]] (!%p7040_p0)  ;;  %s10272_s1 = sld [smem:[#allocation14_spill]] (!%p7040_p0) }
  0x71   : > { %s10263_s5 = smov (!%p7040_p0), %s10262_s7  ;;  %v8040_v1 = vld [vmem:[%s10262_s7] sm:$0xff] (!%p7040_p0)   ;;  %s10273_s7 = sld [smem:[#allocation17_spill]] (!%p7040_p0) }
  0x72   : > { %7725 = vmatpush3.bf16.msra.mxu0 (!%p7040_p0), %v8040_v1  ;;  %v8041_v3 = vld [vmem:[%s10263_s5 + $0x8] sm:$0xff] (!%p7040_p0)   ;;  %v1367_v4 = vld [vmem:[%s10264_s16] sm:$0x3] (!%p7040_p0)  ;;  %v8042_v5 = vld [vmem:[%s10263_s5 + $0x10] ss:$0 sps:$4 sm:$0xff] (!%p7040_p0)   ;;  %s10271_s16 = sld [smem:[#allocation13_spill]] (!%p7040_p0) }
  0x73   : > { %7726 = vmatprep.subr.bf16.mxu0 %v8523_v2  ;;  %v1258_v6 = vld [vmem:[%s10265_s25] sm:$0xff]  ;;  %v1381_v7 = vsel %vm1379_vm0, %v1367_v4, 0  ;;  %v1293_v10 = vsel %vm1291_vm1, %v8042_v5, 0  ;;  %s10269_s25 = sld [smem:[#allocation19_spill]] }
  0x74   : > { %v1257_v8 = vld [vmem:[%s10266_s23] sm:$0xff]  ;;  %v1366_v9 = vpack.c.bf16 %v1258_v6, %v1258_v6  ;;  %7735 = vmatpush3.bf16.msra.mxu1 %v1381_v7  ;;  %s10274_s23 = sld [smem:[#allocation18_spill]] }
  0x75   : > { %7740 = vmatprep.subr.bf16.mxu1 %v8523_v2  ;;  %v1259_v11 = vpack.c.bf16 %v1257_v8, %v1257_v8  ;;  %v7041_v15 = vld [vmem:[%s10267_s9] ss:$0 sm:$0xff]  ;;  %v8046_v39 = vld [vmem:[%s10270_s4 + $0x8] sm:$0xff]   ;;  %s10275_s9 = sld [smem:[#allocation21_spill]] }
  0x76   : > { %7727 = vmatpush3.bf16.msra.mxu0 %v8041_v3  ;;  %v7048_v16 = vld [vmem:[%s10268_s13] ss:$0 sm:$0xff]  ;;  %s10276_s13 = sld [smem:[#allocation22_spill]] }
  0x77   : > { %7728 = vmatprep.subr.bf16.mxu0 %v8523_v2  ;;  %7737 = vmatmul.mubr.msk.bf16.vlgmr.msra.gmra.mrb[0].mxu1 %vm1375_vm3, %v1366_v9  ;;  %v8044_v37 = vld [vmem:[%s10270_s4] sm:$0xff]  }
  0x78   : > { %7744 = vmatprep.mubr.msk.bf16.mxu1 %vm8524_vm2, %v8523_v2  ;;  %7741 = vmatpush3.bf16.msra.mxu1 %v8044_v37  ;;  %v7046_v47 = vld [vmem:[%s10271_s16] ss:$0 sm:$0xff]  ;;  %s10277_s16 = sld [smem:[#allocation23_spill]] }
  0x79   : > { %v8043_v36 = vld [vmem:[%s10269_s25] sm:$0xff]   ;;  %v8045_v38 = vld [vmem:[%s10269_s25 + $0x8] sm:$0xff]   ;;  %7742 = vmatprep.subr.bf16.mxu1 %v8523_v2 }
  0x7a   : > { %7729 = vmatpush3.bf16.msra.mxu0 %v1293_v10  ;;  %v7047_v49 = vld [vmem:[%s10272_s1] ss:$0 sm:$0xff]  ;;  %s10278_s1 = sld [smem:[#allocation10_spill]] }
  0x7b   : > { %7748 = vmatprep.subr.bf16.mxu0 %v8523_v2  ;;  %v7050_v52 = vld [vmem:[%s10273_s7] ss:$0 sm:$0xff]  ;;  %s10279_s7 = sld [smem:[#allocation24_spill]] }
  0x7c   : > { %7743 = vmatpush3.bf16.msra.mxu1 %v8046_v39  ;;  %v7051_v55 = vld [vmem:[%s10274_s23] ss:$0 sm:$0xff]  ;;  %s10280_s23 = sld [smem:[#allocation25_spill]] }
  0x7d   : > { %7731 = vmatmul.mubr.msk.bf16.vlgmr.msra.gmra.mrb[0].mxu0 %vm1287_vm4, %v1259_v11  ;;  %v7058_v3 = vld [vmem:[%s10275_s9] ss:$0 sm:$0xff] }
  0x7e   : > { %7752 = vmatprep.mubr.msk.bf16.mxu0 %vm8524_vm2, %v8523_v2  ;;  %7749 = vmatpush3.bf16.msra.mxu0 %v8043_v36 }
  0x7f   : > { %7750 = vmatprep.subr.bf16.mxu0 %v8523_v2 }
  0x81   : > { %v7061_v36 = vld [vmem:[%s10279_s7] ss:$0 sm:$0xff] }
  0x82   : > { %7751 = vmatpush3.bf16.msra.mxu0 %v8045_v38  ;;  %v7062_v38 = vld [vmem:[%s10280_s23] ss:$0 sm:$0xff] }
 0x14a   : > { %v1417_v12 = vpop.f32.mrb[0].mxu1 }
 0x14b   : > { %v7738_v13 = vpop.f32.mrb[1].mxu1  ;;  %v1418_v21 = vadd.f32 %v7048_v16, %v1417_v12 }
 0x14c   : > { %v1420_v14 = vpop.f32.mrb[2].mxu1 }
 0x14d   : > { %v7739_v17 = vpop.f32.mrb[3].mxu1  ;;  %v1425_v25 = vsel %vm1337_vm5, %v1418_v21, 0.0 }
 0x150   : > { %v1329_v18 = vpop.f32.mrb[0].mxu0 }
 0x151   : > { %v1330_v19 = vadd.f32 %v7041_v15, %v1329_v18  ;;  %v7732_v20 = vpop.f32.mrb[1].mxu0 }
 0x152   : > { %v1332_v22 = vpop.f32.mrb[2].mxu0 }
 0x153   : > { %v7733_v23 = vpop.f32.mrb[3].mxu0  ;;  %v1338_v24 = vsel %vm1337_vm5, %v1330_v19, 0.0 }
 0x154   : > { %1339 = vadd.xlane.f32.xlu0 %v1338_v24  ;;  %v1611_v23 = vld [vmem:[%s10278_s1] sm:$0xff] }
 0x158   : > { %1426 = vadd.xlane.f32.xlu0 %v1425_v25 }
 0x1e1   : > { %v1340_v26 = vpop.xlane.xlu0 %1339 }
 0x1e2   : > { %v1342_v27 = vmul.f32 0.03125, %v1340_v26 }
 0x1e4   : > { %v1343_v28 = vsub.f32 %v1330_v19, %v1342_v27  ;;  %v7059_v19 = vld [vmem:[%s10276_s13] ss:$0 sm:$0xff] }
 0x1e5   : > { %v1427_v29 = vpop.xlane.xlu0 %1426 }
 0x1e6   : > { %v1428_v30 = vmul.f32 0.03125, %v1427_v29  ;;  %v1344_v31 = vmul.f32 %v1343_v28, %v1343_v28 }
 0x1e8   : > { %v1429_v32 = vsub.f32 %v1418_v21, %v1428_v30  ;;  %v1345_v33 = vsel %vm1337_vm5, %v1344_v31, 0.0  ;;  %v7060_v21 = vld [vmem:[%s10277_s16] ss:$0 sm:$0xff] }
 0x1e9   : > { %1346 = vadd.xlane.f32.xlu1 %v1345_v33 }
 0x1ea   : > { %v1430_v34 = vmul.f32 %v1429_v32, %v1429_v32 }
 0x1ec   : > { %v1431_v35 = vsel %vm1337_vm5, %v1430_v34, 0.0 }
 0x1ed   : > { %1432 = vadd.xlane.f32.xlu1 %v1431_v35 }
 0x276   : > { %v1347_v40 = vpop.xlane.xlu1 %1346 }
 0x277   : > { %v1348_v41 = vmul.f32 0.03125, %v1347_v40 }
 0x279   : > { %v1349_v42 = vadd.f32 1e-05, %v1348_v41 }
 0x27a   : > { %v1433_v43 = vpop.xlane.xlu1 %1432 }
 0x27b   : > { %8047 = vrsqrt.f32 %v1349_v42  ;;  %v1434_v44 = vmul.f32 0.03125, %v1433_v43 }
 0x27d   : > { %v1435_v45 = vadd.f32 1e-05, %v1434_v44 }
 0x27f   : > { %8049 = vrsqrt.f32 %v1435_v45 }
 0x285   : > { %v8048_v46 = vpop.eup %8047 }
 0x286   : > { %v1351_v48 = vmul.f32 %v8048_v46, %v1343_v28 }
 0x288   : > { %v1358_v50 = vmul.f32 %v7046_v47, %v1351_v48 }
 0x289   : > { %v8050_v51 = vpop.eup %8049 }
 0x28a   : > { %v1437_v53 = vmul.f32 %v8050_v51, %v1429_v32  ;;  %v1365_v54 = vadd.f32 %v7047_v49, %v1358_v50 }
 0x28c   : > { %v1444_v56 = vmul.f32 %v7050_v52, %v1437_v53  ;;  %v1452_v57 = vmax.f32 %v1365_v54, 0.0 }
 0x28e   : > { %v1453_v58 = vpack.c.bf16 %v1452_v57, %v1452_v57  ;;  %v1451_v59 = vadd.f32 %v7051_v55, %v1444_v56 }
 0x290   : > { %7753 = vmatmul.mubr.msk.bf16.vlgmr.msra.gmra.mrb[4].mxu0 %vm1337_vm5, %v1453_v58  ;;  %v1458_v60 = vmax.f32 %v1451_v59, 0.0 }
 0x292   : > { %v1459_v61 = vpack.c.bf16 %v1458_v60, %v1458_v60 }
 0x294   : > { %7745 = vmatmul.mubr.msk.bf16.vlgmr.msra.gmra.mrb[4].mxu1 %vm1337_vm5, %v1459_v61 }
 0x363   : > { %v1568_v62 = vpop.f32.mrb[4].mxu0 }
 0x364   : > { %v7754_v63 = vpop.f32.mrb[5].mxu0 }
 0x365   : > { %v1571_v0 = vpop.f32.mrb[6].mxu0 }
 0x366   : > { %v7755_v1 = vpop.f32.mrb[7].mxu0 }
 0x367   : > { %v1513_v2 = vpop.f32.mrb[4].mxu1 }
 0x368   : > { %v1569_v4 = vadd.f32 %v1568_v62, %v1513_v2  ;;  %v7746_v5 = vpop.f32.mrb[5].mxu1 }
 0x369   : > { %v1516_v6 = vpop.f32.mrb[6].mxu1 }
 0x36a   : > { %v7747_v7 = vpop.f32.mrb[7].mxu1  ;;  %v1581_v8 = vadd.f32 %v7058_v3, %v1569_v4 }
 0x36c   : > { %v1584_v9 = vsel %vm1337_vm5, %v1581_v8, 0.0 }
 0x36d   : > { %1585 = vadd.xlane.f32.xlu0 %v1584_v9 }
 0x3fa   : > { %v1586_v10 = vpop.xlane.xlu0 %1585 }
 0x3fb   : > { %v1587_v11 = vmul.f32 0.03125, %v1586_v10 }
 0x3fd   : > { %v1588_v12 = vsub.f32 %v1581_v8, %v1587_v11 }
 0x3ff   : > { %v1589_v13 = vmul.f32 %v1588_v12, %v1588_v12 }
 0x401   : > { %v1590_v14 = vsel %vm1337_vm5, %v1589_v13, 0.0 }
 0x402   : > { %1591 = vadd.xlane.f32.xlu1 %v1590_v14 }
 0x48f   : > { %v1592_v15 = vpop.xlane.xlu1 %1591 }
 0x490   : > { %v1593_v16 = vmul.f32 0.03125, %v1592_v15 }
 0x492   : > { %v1594_v17 = vadd.f32 1e-05, %v1593_v16 }
 0x494   : > { %8051 = vrsqrt.f32 %v1594_v17 }
 0x49e   : > { %v8052_v18 = vpop.eup %8051 }
 0x49f   : > { %v1596_v20 = vmul.f32 %v8052_v18, %v1588_v12 }
 0x4a1   : > { %v1603_v22 = vmul.f32 %v7059_v19, %v1596_v20 }
 0x4a3   : > { %v1610_v24 = vadd.f32 %v7060_v21, %v1603_v22 }
 0x4a5   : > { %v1612_v25 = vadd.f32 %v1611_v23, %v1610_v24 }
 0x4a7   : > { %v1615_v26 = vsel %vm1337_vm5, %v1612_v25, 0.0 }
 0x4a8   : > { %1616 = vadd.xlane.f32.xlu0 %v1615_v26 }
 0x535   : > { %v1617_v27 = vpop.xlane.xlu0 %1616 }
 0x536   : > { %v1618_v28 = vmul.f32 0.03125, %v1617_v27 }
 0x538   : > { %v1619_v29 = vsub.f32 %v1612_v25, %v1618_v28 }
 0x53a   : > { %v1620_v30 = vmul.f32 %v1619_v29, %v1619_v29 }
 0x53c   : > { %v1621_v31 = vsel %vm1337_vm5, %v1620_v30, 0.0 }
 0x53d   : > { %1622 = vadd.xlane.f32.xlu1 %v1621_v31 }
 0x5ca   : > { %v1623_v32 = vpop.xlane.xlu1 %1622 }
 0x5cb   : > { %v1624_v33 = vmul.f32 0.03125, %v1623_v32 }
 0x5cd   : > { %v1625_v34 = vadd.f32 1e-12, %v1624_v33 }
 0x5cf   : > { %8053 = vrsqrt.f32 %v1625_v34 }
 0x5d9   : > { %v8054_v35 = vpop.eup %8053 }
 0x5da   : > { %v1627_v37 = vmul.f32 %v8054_v35, %v1619_v29 }
 0x5dc   : > { %v1634_v39 = vmul.f32 %v7061_v36, %v1627_v37 }
 0x5de   : > { %v1641_v40 = vadd.f32 %v7062_v38, %v1634_v39 }
 0x5e0   : > { %1642 = vst.msk [vmem:[#allocation2] sm:$0xff] %vm1337_vm5, %v1641_v40 }
 0x5e1 PF: > { %v8055_v41 = vld [vmem:[%s8798_s28] sm:$0xff]   ;;  %v8525_v42 = vmov 0.0   ;;  %v8056_v43 = vld [vmem:[%s8798_s28 + $0x10] sm:$0xff]   ;;  %v8057_v44 = vld [vmem:[%s8798_s28 + $0x8] sm:$0xff]   ;;  %vm8526_vm6 = vmmov 0   ;;  %vm1792_vm7 = vcmask 261120   ;;  %s10287_s16 = scalar_lea.vmem %s8659_s24, %s8780_s8 }
 0x5e2   : > { %7756 = vmatprep.subr.bf16.mxu0 %v8525_v42  ;;  %7764 = vmatprep.subr.bf16.mxu1 %v8525_v42  ;;  %v8058_v45 = vld [vmem:[%s8798_s28 + $0x18] sm:$0xff]   ;;  %v8059_v48 = vld [vmem:[%s8798_s28 + $0x20] sm:$0xff]   ;;  %v8060_v49 = vld [vmem:[%s8798_s28 + $0x30] sm:$0xff]   ;;  %vm2416_vm8 = vcmask 64512   ;;  %vm2670_vm9 = vcmask 1043456   ;;  %s10282_s9 = sld [smem:[#allocation41_spill]] }
 0x5e3   : > { %7757 = vmatpush3.bf16.msra.mxu0 %v8055_v41  ;;  %7760 = vmatprep.mubr.msk.bf16.mxu0 %vm8526_vm6, %v8525_v42  ;;  %v8061_v50 = vld [vmem:[%s8798_s28 + $0x28] sm:$0xff]   ;;  %v8062_v51 = vld [vmem:[%s8798_s28 + $0x38] sm:$0xff]   ;;  %v8063_v52 = vld [vmem:[%s8798_s28 + $0x40] sm:$0xff]  }
 0x5e4   : > { %7765 = vmatpush3.bf16.msra.mxu1 %v8056_v43  ;;  %7758 = vmatprep.subr.bf16.mxu0 %v8525_v42  ;;  %v8064_v53 = vld [vmem:[%s8798_s28 + $0x50] sm:$0xff]   ;;  %v8065_v54 = vld [vmem:[%s8798_s28 + $0x48] sm:$0xff]   ;;  %v8066_v55 = vld [vmem:[%s8798_s28 + $0x58] sm:$0xff]  }
 0x5e5   : > { %7766 = vmatprep.subr.bf16.mxu1 %v8525_v42  ;;  %7768 = vmatprep.mubr.msk.bf16.mxu1 %vm8526_vm6, %v8525_v42  ;;  %v8067_v56 = vld [vmem:[%s8798_s28 + $0x60] sm:$0xff]   ;;  %v8068_v57 = vld [vmem:[%s8798_s28 + $0x70] sm:$0xff]   ;;  %v8069_v58 = vld [vmem:[%s8798_s28 + $0x68] sm:$0xff]  }
 0x5e6   : > { %v8070_v59 = vld [vmem:[%s8798_s28 + $0x78] sm:$0xff]   ;;  %v8071_v60 = vld [vmem:[%s8798_s28 + $0x80] sm:$0xff]   ;;  %v8072_v61 = vld [vmem:[%s8798_s28 + $0x90] sm:$0xff]  }
 0x5e7   : > { %v1643_v46 = vld [vmem:[#allocation2] sm:$0xff]  ;;  %7759 = vmatpush3.bf16.msra.mxu0 %v8057_v44  ;;  %v8073_v62 = vld [vmem:[%s8798_s28 + $0x88] sm:$0xff]   ;;  %v8074_v63 = vld [vmem:[%s8798_s28 + $0x98] sm:$0xff]  }
 0x5e8   : > { %v8893_v47 = vpack.c.bf16 %v1643_v46, %v1643_v46  ;;  %7767 = vmatpush3.bf16.msra.mxu1 %v8058_v45  ;;  %7772 = vmatprep.subr.bf16.mxu0 %v8525_v42  ;;  %v8075_v0 = vld [vmem:[%s8798_s28 + $0xa0] sm:$0xff]   ;;  %v8076_v1 = vld [vmem:[%s8798_s28 + $0xb0] sm:$0xff]   ;;  %v8077_v2 = vld [vmem:[%s8798_s28 + $0xa8] sm:$0xff]  }
 0x5e9   : > { %7780 = vmatprep.subr.bf16.mxu1 %v8525_v42  ;;  %v8078_v3 = vld [vmem:[%s8798_s28 + $0xb8] sm:$0xff]   ;;  %v7067_v20 = vld [vmem:[%s8803_s21 + $0x4] ss:$0 sm:$0xff]  ;;  %v7068_v21 = vld [vmem:[%s8803_s21 + $0x5] ss:$0 sm:$0xff]  ;;  %s10281_s28 = sld [smem:[#allocation9_spill]] }
 0x5ea   : > { %7761 = vmatmul.mubr.msk.bf16.vlgmr.msra.gmra.mrb[0].mxu0 %vm1792_vm7, %v8893_v47  ;;  %v7063_v32 = vld [vmem:[%s8803_s21] ss:$0 sm:$0xff]  ;;  %v7064_v35 = vld [vmem:[%s8803_s21 + $0x1] ss:$0 sm:$0xff]  ;;  %v7069_v38 = vld [vmem:[%s8803_s21 + $0x6] ss:$0 sm:$0xff] }
 0x5eb   : > { %7769 = vmatmul.mubr.msk.bf16.vlgmr.msra.gmra.mrb[0].mxu1 %vm1792_vm7, %v8893_v47  ;;  %7773 = vmatpush3.bf16.msra.mxu0 %v8059_v48  ;;  %v7070_v40 = vld [vmem:[%s8803_s21 + $0x7] ss:$0 sm:$0xff] }
 0x5ec   : > { %7781 = vmatpush3.bf16.msra.mxu1 %v8060_v49  ;;  %7774 = vmatprep.subr.bf16.mxu0 %v8525_v42 }
 0x5ed   : > { %7782 = vmatprep.subr.bf16.mxu1 %v8525_v42  ;;  %7776 = vmatprep.mubr.msk.bf16.mxu0 %vm8526_vm6, %v8525_v42 }
 0x5ee   : > { %7784 = vmatprep.mubr.msk.bf16.mxu1 %vm8526_vm6, %v8525_v42 }
 0x5ef   : > { %7775 = vmatpush3.bf16.msra.mxu0 %v8061_v50  ;;  %s10283_s13 = scalar_lea.vmem %s10281_s28, %s10282_s9 }
 0x5f0   : > { %7783 = vmatpush3.bf16.msra.mxu1 %v8062_v51  ;;  %7788 = vmatprep.subr.bf16.mxu0 %v8525_v42 }
 0x5f1   : > { %7796 = vmatprep.subr.bf16.mxu1 %v8525_v42 }
 0x5f2   : > { %7777 = vmatmul.mubr.msk.bf16.vlgmr.msra.gmra.mrb[4].mxu0 %vm1792_vm7, %v8893_v47 }
 0x5f3   : > { %7785 = vmatmul.mubr.msk.bf16.vlgmr.msra.gmra.mrb[4].mxu1 %vm1792_vm7, %v8893_v47  ;;  %7789 = vmatpush3.bf16.msra.mxu0 %v8063_v52 }
 0x5f4   : > { %7797 = vmatpush3.bf16.msra.mxu1 %v8064_v53  ;;  %7790 = vmatprep.subr.bf16.mxu0 %v8525_v42 }
 0x5f5   : > { %7798 = vmatprep.subr.bf16.mxu1 %v8525_v42  ;;  %7792 = vmatprep.mubr.msk.bf16.mxu0 %vm8526_vm6, %v8525_v42 }
 0x5f6   : > { %7800 = vmatprep.mubr.msk.bf16.mxu1 %vm8526_vm6, %v8525_v42 }
 0x5f7   : > { %7791 = vmatpush3.bf16.msra.mxu0 %v8065_v54 }
 0x5f8   : > { %7799 = vmatpush3.bf16.msra.mxu1 %v8066_v55  ;;  %7804 = vmatprep.subr.bf16.mxu0 %v8525_v42  ;;  %v7065_v55 = vld [vmem:[%s8803_s21 + $0x2] ss:$0 sm:$0xff] }
 0x5f9   : > { %7812 = vmatprep.subr.bf16.mxu1 %v8525_v42 }
 0x5fa   : > { %7793 = vmatmul.mubr.msk.bf16.vlgmr.msra.gmra.mrb[8].mxu0 %vm1792_vm7, %v8893_v47 }
 0x5fb   : > { %7801 = vmatmul.mubr.msk.bf16.vlgmr.msra.gmra.mrb[8].mxu1 %vm1792_vm7, %v8893_v47  ;;  %7805 = vmatpush3.bf16.msra.mxu0 %v8067_v56 }
 0x5fc   : > { %7813 = vmatpush3.bf16.msra.mxu1 %v8068_v57  ;;  %7806 = vmatprep.subr.bf16.mxu0 %v8525_v42 }
 0x5fd   : > { %7814 = vmatprep.subr.bf16.mxu1 %v8525_v42  ;;  %7808 = vmatprep.mubr.msk.bf16.mxu0 %vm8526_vm6, %v8525_v42 }
 0x5fe   : > { %7816 = vmatprep.mubr.msk.bf16.mxu1 %vm8526_vm6, %v8525_v42 }
 0x5ff   : > { %7807 = vmatpush3.bf16.msra.mxu0 %v8069_v58  ;;  %v7066_v58 = vld [vmem:[%s8803_s21 + $0x3] ss:$0 sm:$0xff] }
 0x600   : > { %7815 = vmatpush3.bf16.msra.mxu1 %v8070_v59  ;;  %7820 = vmatprep.subr.bf16.mxu0 %v8525_v42 }
 0x601   : > { %7828 = vmatprep.subr.bf16.mxu1 %v8525_v42 }
 0x602   : > { %7809 = vmatmul.mubr.msk.bf16.vlgmr.msra.gmra.mrb[12].mxu0 %vm1792_vm7, %v8893_v47 }
 0x603   : > { %7817 = vmatmul.mubr.msk.bf16.vlgmr.msra.gmra.mrb[12].mxu1 %vm1792_vm7, %v8893_v47  ;;  %7821 = vmatpush3.bf16.msra.mxu0 %v8071_v60 }
 0x604   : > { %7822 = vmatprep.subr.bf16.mxu0 %v8525_v42  ;;  %7824 = vmatprep.mubr.msk.bf16.mxu0 %vm8526_vm6, %v8525_v42 }
 0x605   : > { %7832 = vmatprep.mubr.msk.bf16.mxu1 %vm8526_vm6, %v8525_v42  ;;  %7829 = vmatpush3.bf16.msra.mxu1 %v8072_v61 }
 0x606   : > { %7830 = vmatprep.subr.bf16.mxu1 %v8525_v42 }
 0x607   : > { %7823 = vmatpush3.bf16.msra.mxu0 %v8073_v62 }
 0x608   : > { %7836 = vmatprep.subr.bf16.mxu0 %v8525_v42 }
 0x609   : > { %7831 = vmatpush3.bf16.msra.mxu1 %v8074_v63 }
 0x60a   : > { %7825 = vmatmul.mubr.msk.bf16.vlgmr.msra.gmra.mrb[16].mxu0 %vm1792_vm7, %v8893_v47  ;;  %7844 = vmatprep.subr.bf16.mxu1 %v8525_v42 }
 0x60b   : > { %7840 = vmatprep.mubr.msk.bf16.mxu0 %vm8526_vm6, %v8525_v42  ;;  %7837 = vmatpush3.bf16.msra.mxu0 %v8075_v0 }
 0x60c   : > { %7833 = vmatmul.mubr.msk.bf16.vlgmr.msra.gmra.mrb[16].mxu1 %vm1792_vm7, %v8893_v47  ;;  %7838 = vmatprep.subr.bf16.mxu0 %v8525_v42 }
 0x60d   : > { %7845 = vmatpush3.bf16.msra.mxu1 %v8076_v1  ;;  %7848 = vmatprep.mubr.msk.bf16.mxu1 %vm8526_vm6, %v8525_v42  ;;  %v7071_v1 = vld [vmem:[%s8803_s21 + $0x8] ss:$0 sm:$0xff] }
 0x60e   : > { %7846 = vmatprep.subr.bf16.mxu1 %v8525_v42 }
 0x60f   : > { %7839 = vmatpush3.bf16.msra.mxu0 %v8077_v2 }
 0x610   : > { %7852 = vmatprep.subr.bf16.mxu0 %v8525_v42 }
 0x611   : > { %7847 = vmatpush3.bf16.msra.mxu1 %v8078_v3  ;;  %v7072_v3 = vld [vmem:[%s8803_s21 + $0x9] ss:$0 sm:$0xff] }
 0x612   : > { %7858 = vmatprep.subr.bf16.mxu1 %v8525_v42  ;;  %7841 = vmatmul.mubr.msk.bf16.vlgmr.msra.gmra.mrb[20].mxu0 %vm1792_vm7, %v8893_v47 }
 0x613   : > { %7854 = vmatprep.mubr.msk.bf16.mxu0 %vm8526_vm6, %v8525_v42 }
 0x614   : > { %7849 = vmatmul.mubr.msk.bf16.vlgmr.msra.gmra.mrb[20].mxu1 %vm1792_vm7, %v8893_v47 }
 0x615   : > { %7860 = vmatprep.mubr.msk.bf16.mxu1 %vm8526_vm6, %v8525_v42 }
 0x6bd   : > { %v1830_v4 = vpop.f32.mrb[0].mxu0 }
 0x6be   : > { %v7762_v5 = vpop.f32.mrb[1].mxu0  ;;  %v1882_v6 = vpop.f32.mrb[0].mxu1  ;;  %v1831_v39 = vadd.f32 %v7063_v32, %v1830_v4 }
 0x6bf   : > { %v1833_v7 = vpop.f32.mrb[2].mxu0  ;;  %v7770_v8 = vpop.f32.mrb[1].mxu1  ;;  %v1883_v41 = vadd.f32 %v7064_v35, %v1882_v6 }
 0x6c0   : > { %v7763_v9 = vpop.f32.mrb[3].mxu0  ;;  %v1885_v10 = vpop.f32.mrb[2].mxu1  ;;  %v2408_v50 = vpack.c.bf16 %v1831_v39, %v1831_v39 }
 0x6c1   : > { %v7771_v11 = vpop.f32.mrb[3].mxu1  ;;  %v2409_v54 = vpack.c.bf16 %v1883_v41, %v1883_v41 }
 0x6c5   : > { %v1934_v12 = vpop.f32.mrb[4].mxu0 }
 0x6c6   : > { %v7778_v13 = vpop.f32.mrb[5].mxu0  ;;  %v1986_v14 = vpop.f32.mrb[4].mxu1  ;;  %v1935_v61 = vadd.f32 %v7065_v55, %v1934_v12 }
 0x6c7   : > { %v1937_v15 = vpop.f32.mrb[6].mxu0  ;;  %v7786_v16 = vpop.f32.mrb[5].mxu1  ;;  %v1987_v62 = vadd.f32 %v7066_v58, %v1986_v14 }
 0x6c8   : > { %v7779_v17 = vpop.f32.mrb[7].mxu0  ;;  %v1989_v18 = vpop.f32.mrb[6].mxu1  ;;  %v2410_v63 = vpack.c.bf16 %v1935_v61, %v1935_v61 }
 0x6c9   : > { %v7787_v19 = vpop.f32.mrb[7].mxu1  ;;  %v2411_v0 = vpack.c.bf16 %v1987_v62, %v1987_v62 }
 0x6cd   : > { %v2038_v22 = vpop.f32.mrb[8].mxu0 }
 0x6ce   : > { %v2039_v23 = vadd.f32 %v7067_v20, %v2038_v22  ;;  %v2090_v24 = vpop.f32.mrb[8].mxu1  ;;  %v7794_v25 = vpop.f32.mrb[9].mxu0 }
 0x6cf   : > { %v2091_v26 = vadd.f32 %v7068_v21, %v2090_v24  ;;  %v2041_v27 = vpop.f32.mrb[10].mxu0  ;;  %v7802_v28 = vpop.f32.mrb[9].mxu1  ;;  %v10192_v25 = vlaneseq }
 0x6d0   : > { %v2412_v29 = vpack.c.bf16 %v2039_v23, %v2039_v23  ;;  %v7795_v30 = vpop.f32.mrb[11].mxu0  ;;  %v2093_v31 = vpop.f32.mrb[10].mxu1 }
 0x6d1   : > { %v2413_v33 = vpack.c.bf16 %v2091_v26, %v2091_v26  ;;  %v7803_v34 = vpop.f32.mrb[11].mxu1  ;;  %v1644_v26 = vld [vmem:[%s10283_s13] sm:$0x1]  ;;  %v9027_v28 = vshrl.u32 %v10192_v25, 7 }
 0x6d2   : > { %v2421_v36 = vsel %vm2416_vm8, %v2412_v29, 0  ;;  %v1645_v27 = vsub.f32 1.0, %v1644_v26 }
 0x6d3   : > { %v2467_v37 = vsel %vm2416_vm8, %v2413_v33, 0  ;;  %7853 = vmatpush3.bf16.xpose.msra.mxu0 %v2421_v36  ;;  %10284 = vst [vmem:[#allocation44_spill] sm:$0xff] %v9027_v28  ;;  %v9030_v30 = vsub.s32 0, %v9027_v28 }
 0x6d4   : > { %7859 = vmatpush3.bf16.xpose.msra.mxu1 %v2467_v37  ;;  %7864 = vmatprep.subr.bf16.mxu0 %v8525_v42  ;;  %v1646_v29 = vmul.f32 -10000.0, %v1645_v27 }
 0x6d5   : > { %v2142_v43 = vpop.f32.mrb[12].mxu0  ;;  %7870 = vmatprep.subr.bf16.mxu1 %v8525_v42 }
 0x6d6   : > { %v2143_v44 = vadd.f32 %v7069_v38, %v2142_v43  ;;  %v2194_v45 = vpop.f32.mrb[12].mxu1  ;;  %v7810_v46 = vpop.f32.mrb[13].mxu0  ;;  %v2609_v31 = vrot.slane %v1646_v29, %v9030_v30 }
 0x6d7   : > { %v2195_v47 = vadd.f32 %v7070_v40, %v2194_v45  ;;  %v2145_v48 = vpop.f32.mrb[14].mxu0  ;;  %v7818_v49 = vpop.f32.mrb[13].mxu1 }
 0x6d8   : > { %v2414_v51 = vpack.c.bf16 %v2143_v44, %v2143_v44  ;;  %v7811_v52 = vpop.f32.mrb[15].mxu0  ;;  %v2197_v53 = vpop.f32.mrb[14].mxu1 }
 0x6d9   : > { %v2415_v56 = vpack.c.bf16 %v2195_v47, %v2195_v47  ;;  %v7819_v57 = vpop.f32.mrb[15].mxu1 }
 0x6da   : > { %v2513_v59 = vsel %vm2416_vm8, %v2414_v51, 0  ;;  %7855 = vmatmul.mubr.msk.bf16.vlgmr.msra.gmra.mrb[24].mxu0 %vm2416_vm8, %v2408_v50 }
 0x6db   : > { %v2559_v60 = vsel %vm2416_vm8, %v2415_v56, 0  ;;  %7861 = vmatmul.mubr.msk.bf16.vlgmr.msra.gmra.mrb[24].mxu1 %vm2416_vm8, %v2409_v54  ;;  %7865 = vmatpush3.bf16.xpose.msra.mxu0 %v2513_v59 }
 0x6dc   : > { %7871 = vmatpush3.bf16.xpose.msra.mxu1 %v2559_v60  ;;  %7866 = vmatprep.mubr.msk.bf16.mxu0 %vm8526_vm6, %v8525_v42 }
 0x6dd   : > { %7872 = vmatprep.mubr.msk.bf16.mxu1 %vm8526_vm6, %v8525_v42  ;;  %7876 = vmatprep.subr.bf16.mxu0 %v8525_v42  ;;  %v2246_v2 = vpop.f32.mrb[16].mxu0 }
 0x6de   : > { %7882 = vmatprep.subr.bf16.mxu1 %v8525_v42  ;;  %v2247_v4 = vadd.f32 %v7071_v1, %v2246_v2  ;;  %v7826_v5 = vpop.f32.mrb[17].mxu0 }
 0x6df   : > { %v2249_v6 = vpop.f32.mrb[18].mxu0  ;;  %v2298_v7 = vpop.f32.mrb[16].mxu1 }
 0x6e0   : > { %v2663_v8 = vpack.c.bf16 %v2247_v4, %v2247_v4  ;;  %v7827_v9 = vpop.f32.mrb[19].mxu0  ;;  %v2299_v10 = vadd.f32 %v7072_v3, %v2298_v7  ;;  %v7834_v11 = vpop.f32.mrb[17].mxu1 }
 0x6e1   : > { %v2301_v12 = vpop.f32.mrb[18].mxu1 }
 0x6e2   : > { %7867 = vmatmul.mubr.msk.bf16.vlgmr.msra.gmra.mrb[28].mxu0 %vm2416_vm8, %v2410_v63  ;;  %v2672_v13 = vsel %vm2670_vm9, %v2663_v8, 0  ;;  %v2664_v14 = vpack.c.bf16 %v2299_v10, %v2299_v10  ;;  %v7835_v15 = vpop.f32.mrb[19].mxu1 }
 0x6e3   : > { %7873 = vmatmul.mubr.msk.bf16.vlgmr.msra.gmra.mrb[28].mxu1 %vm2416_vm8, %v2411_v0  ;;  %7878 = vmatprep.mubr.msk.bf16.mxu0 %vm8526_vm6, %v8525_v42 }
 0x6e4   : > { %7884 = vmatprep.mubr.msk.bf16.mxu1 %vm8526_vm6, %v8525_v42  ;;  %7877 = vmatpush3.bf16.msra.mxu0 %v2672_v13  ;;  %v2718_v16 = vsel %vm2670_vm9, %v2664_v14, 0 }
 0x6e5   : > { %7888 = vmatprep.subr.bf16.mxu0 %v8525_v42  ;;  %7883 = vmatpush3.bf16.msra.mxu1 %v2718_v16  ;;  %v9019_v17 = vpop.f32.mrb[20].mxu0 }
 0x6e6   : > { %7894 = vmatprep.subr.bf16.mxu1 %v8525_v42  ;;  %v7842_v19 = vpop.f32.mrb[21].mxu0 }
 0x6e7   : > { %v9021_v18 = vpop.f32.mrb[20].mxu1  ;;  %v2353_v21 = vpop.f32.mrb[22].mxu0 }
 0x6e8   : > { %v7850_v20 = vpop.f32.mrb[21].mxu1  ;;  %v7843_v23 = vpop.f32.mrb[23].mxu0  ;;  %v7073_v21 = vld [vmem:[%s8803_s21 + $0xa] ss:$0 sm:$0xff] }
 0x6e9   : > { %v2405_v22 = vpop.f32.mrb[22].mxu1 }
 0x6ea   : > { %v7851_v24 = vpop.f32.mrb[23].mxu1  ;;  %v2351_v22 = vadd.f32 %v7073_v21, %v9019_v17 }
 0x6eb   : > { %v7074_v24 = vld [vmem:[%s8803_s21 + $0xb] ss:$0 sm:$0xff]  ;;  %s10285_s21 = scalar_lea.vmem %s8649_s17, %s8780_s8 }
 0x6ec   : > { %v2665_v27 = vpack.c.bf16 %v2351_v22, %v2351_v22  ;;  %v2403_v29 = vadd.f32 %v7074_v24, %v9021_v18  ;;  %v2856_v18 = vld [vmem:[%s8795_s0] sm:$0xf] }
 0x7ad   : > { %v2457_v32 = vpop.f32.mrb[24].mxu0 }
 0x7ae   : > { %v2601_v33 = vmul.f32 0.35355338, %v2457_v32  ;;  %v2503_v34 = vpop.f32.mrb[24].mxu1  ;;  %v7856_v35 = vpop.f32.mrb[25].mxu0 }
 0x7af   : > { %v2602_v36 = vmul.f32 0.35355338, %v2503_v34  ;;  %v7862_v37 = vpop.f32.mrb[25].mxu1  ;;  %v2460_v38 = vpop.f32.mrb[26].mxu0  ;;  %v2764_v35 = vsel %vm2670_vm9, %v2665_v27, 0 }
 0x7b0   : > { %v2506_v39 = vpop.f32.mrb[26].mxu1  ;;  %v7857_v40 = vpop.f32.mrb[27].mxu0  ;;  %v2611_v41 = vadd.f32 %v2609_v31, %v2601_v33 }
 0x7b1   : > { %v7863_v43 = vpop.f32.mrb[27].mxu1  ;;  %v2612_v45 = vadd.f32 %v2609_v31, %v2602_v36  ;;  %v2666_v36 = vpack.c.bf16 %v2403_v29, %v2403_v29 }
 0x7b2   : > { %v2615_v44 = vsel %vm2416_vm8, %v2611_v41, -inf  ;;  %v2864_v43 = vsel %vm2670_vm9, %v2856_v18, 0 }
 0x7b3   : > { %2616 = vmax.xlane.f32.xlu0 %v2615_v44  ;;  %v2618_v50 = vsel %vm2416_vm8, %v2612_v45, -inf  ;;  %v2810_v39 = vsel %vm2670_vm9, %v2666_v36, 0 }
 0x7b5   : > { %v2549_v46 = vpop.f32.mrb[28].mxu0 }
 0x7b6   : > { %v2603_v47 = vmul.f32 0.35355338, %v2549_v46  ;;  %v2595_v48 = vpop.f32.mrb[28].mxu1  ;;  %v7868_v49 = vpop.f32.mrb[29].mxu0 }
 0x7b7   : > { %v2604_v51 = vmul.f32 0.35355338, %v2595_v48  ;;  %v7874_v52 = vpop.f32.mrb[29].mxu1  ;;  %2619 = vmax.xlane.f32.xlu0 %v2618_v50  ;;  %v2552_v53 = vpop.f32.mrb[30].mxu0  ;;  %v2858_v49 = vld [vmem:[%s8795_s0 + $0x8] sm:$0xf] }
 0x7b8   : > { %v2598_v54 = vpop.f32.mrb[30].mxu1  ;;  %v7869_v55 = vpop.f32.mrb[31].mxu0  ;;  %v2613_v56 = vadd.f32 %v2609_v31, %v2603_v47  ;;  %v2857_v47 = vld [vmem:[%s8795_s0 + $0x4] sm:$0xf]  ;;  %v2956_v53 = vsel %vm2670_vm9, %v2858_v49, 0  ;;  %v3104_v49 = vld [vmem:[%s8814_s26 + $0x68] sm:$0xff] }
 0x7b9   : > { %v7875_v57 = vpop.f32.mrb[31].mxu1  ;;  %v2614_v59 = vadd.f32 %v2609_v31, %v2604_v51  ;;  %v2910_v48 = vsel %vm2670_vm9, %v2857_v47, 0  ;;  %v2859_v55 = vld [vmem:[%s8795_s0 + $0xc] sm:$0xf]  ;;  %s10286_s0 = scalar_lea.vmem %s8654_s12, %s8780_s8 }
 0x7ba   : > { %v2621_v58 = vsel %vm2416_vm8, %v2613_v56, -inf  ;;  %v3092_v47 = vld [vmem:[%s8814_s26 + $0x8] sm:$0xff] }
 0x7bb   : > { %2622 = vmax.xlane.f32.xlu1 %v2621_v58  ;;  %v2624_v60 = vsel %vm2416_vm8, %v2614_v59, -inf }
 0x7bf   : > { %2625 = vmax.xlane.f32.xlu1 %v2624_v60  ;;  %v3002_v60 = vsel %vm2670_vm9, %v2859_v55, 0  ;;  %v3116_v55 = vld [vmem:[%s8814_s26 + $0xc8] sm:$0xff] }
 0x840   : > { %v2617_v61 = vpop.xlane.xlu0 %2616 }
 0x841   : > { %v2627_v62 = vsub.f32 %v2611_v41, %v2617_v61 }
 0x843   : > { %v2631_v63 = vmul.f32 1.442695, %v2627_v62 }
 0x844   : > { %v2620_v0 = vpop.xlane.xlu0 %2619 }
 0x845   : > { %8271 = vpow2.f32 %v2631_v63  ;;  %v2628_v1 = vsub.f32 %v2612_v45, %v2620_v0 }
 0x847   : > { %v2633_v2 = vmul.f32 1.442695, %v2628_v1 }
 0x848   : > { %v2623_v3 = vpop.xlane.xlu1 %2622 }
 0x849   : > { %8273 = vpow2.f32 %v2633_v2  ;;  %v2629_v4 = vsub.f32 %v2613_v56, %v2623_v3 }
 0x84b   : > { %v2635_v5 = vmul.f32 1.442695, %v2629_v4 }
 0x84c   : > { %v2626_v6 = vpop.xlane.xlu1 %2625 }
 0x84d   : > { %8275 = vpow2.f32 %v2635_v5  ;;  %v2630_v7 = vsub.f32 %v2614_v59, %v2626_v6 }
 0x84f   : > { %v8272_v8 = vpop.eup %8271  ;;  %v2637_v9 = vmul.f32 1.442695, %v2630_v7 }
 0x850   : > { %v2639_v10 = vsel %vm2416_vm8, %v8272_v8, 0.0 }
 0x851   : > { %8277 = vpow2.f32 %v2637_v9  ;;  %2640 = vadd.xlane.f32.xlu0 %v2639_v10 }
 0x853   : > { %v8274_v11 = vpop.eup %8273 }
 0x854   : > { %v2642_v12 = vsel %vm2416_vm8, %v8274_v11, 0.0 }
 0x855   : > { %2643 = vadd.xlane.f32.xlu1 %v2642_v12 }
 0x857   : > { %v8276_v13 = vpop.eup %8275 }
 0x858   : > { %v2645_v14 = vsel %vm2416_vm8, %v8276_v13, 0.0 }
 0x859   : > { %2646 = vadd.xlane.f32.xlu0 %v2645_v14 }
 0x85b   : > { %v8278_v15 = vpop.eup %8277 }
 0x85c   : > { %v2648_v16 = vsel %vm2416_vm8, %v8278_v15, 0.0 }
 0x85d   : > { %2649 = vadd.xlane.f32.xlu1 %v2648_v16 }
 0x8de   : > { %v2641_v19 = vpop.xlane.xlu0 %2640 }
 0x8df   : > { %8279 = vrcp.f32 %v2641_v19 }
 0x8e2   : > { %v2644_v20 = vpop.xlane.xlu1 %2643 }
 0x8e3   : > { %8281 = vrcp.f32 %v2644_v20 }
 0x8e6   : > { %v2647_v23 = vpop.xlane.xlu0 %2646 }
 0x8e7   : > { %8283 = vrcp.f32 %v2647_v23 }
 0x8e9   : > { %v8280_v26 = vpop.eup %8279 }
 0x8ea   : > { %v2655_v31 = vmul.f32 %v8280_v26, %v8272_v8  ;;  %v2650_v32 = vpop.xlane.xlu1 %2649 }
 0x8eb   : > { %8285 = vrcp.f32 %v2650_v32  ;;  %v7123_v32 = vld [vmem:[%s10285_s21] ss:$0 sm:$0xff] }
 0x8ec   : > { %v2659_v33 = vpack.c.bf16 %v2655_v31, %v2655_v31 }
 0x8ed   : > { %v8282_v34 = vpop.eup %8281 }
 0x8ee   : > { %v2656_v37 = vmul.f32 %v8282_v34, %v8274_v11  ;;  %7879 = vmatmul.mubr.msk.bf16.vlgmr.msra.gmra.mrb[32].mxu0 %vm2416_vm8, %v2659_v33 }
 0x8ef   : > { %7889 = vmatpush3.bf16.msra.mxu0 %v2764_v35  ;;  %7890 = vmatprep.mubr.msk.bf16.mxu0 %vm8526_vm6, %v8525_v42 }
 0x8f0   : > { %v2660_v17 = vpack.c.bf16 %v2656_v37, %v2656_v37  ;;  %7900 = vmatprep.subr.bf16.mxu0 %v8525_v42 }
 0x8f1   : > { %v8284_v38 = vpop.eup %8283 }
 0x8f2   : > { %v2657_v40 = vmul.f32 %v8284_v38, %v8276_v13  ;;  %7885 = vmatmul.mubr.msk.bf16.vlgmr.msra.gmra.mrb[32].mxu1 %vm2416_vm8, %v2660_v17  ;;  %v8387_v17 = vld [vmem:[#allocation2] sm:$0xff] }
 0x8f3   : > { %7895 = vmatpush3.bf16.msra.mxu1 %v2810_v39  ;;  %7896 = vmatprep.mubr.msk.bf16.mxu1 %vm8526_vm6, %v8525_v42 }
 0x8f4   : > { %v2661_v41 = vpack.c.bf16 %v2657_v40, %v2657_v40  ;;  %7906 = vmatprep.subr.bf16.mxu1 %v8525_v42 }
 0x8f5   : > { %v8286_v44 = vpop.eup %8285 }
 0x8f6   : > { %v2658_v45 = vmul.f32 %v8286_v44, %v8278_v15  ;;  %7891 = vmatmul.mubr.msk.bf16.vlgmr.msra.gmra.mrb[36].mxu0 %vm2416_vm8, %v2661_v41 }
 0x8f7   : > { %7901 = vmatpush3.bf16.msra.mxu0 %v2864_v43  ;;  %7902 = vmatprep.mubr.msk.bf16.mxu0 %vm8526_vm6, %v8525_v42 }
 0x8f8   : > { %v2662_v46 = vpack.c.bf16 %v2658_v45, %v2658_v45  ;;  %7912 = vmatprep.subr.bf16.mxu0 %v8525_v42  ;;  %v3091_v45 = vld [vmem:[%s8814_s26] sm:$0xff] }
 0x8fa   : > { %7897 = vmatmul.mubr.msk.bf16.vlgmr.msra.gmra.mrb[36].mxu1 %vm2416_vm8, %v2662_v46  ;;  %v3103_v46 = vld [vmem:[%s8814_s26 + $0x60] sm:$0xff] }
 0x8fb   : > { %7908 = vmatprep.mubr.msk.bf16.mxu1 %vm8526_vm6, %v8525_v42  ;;  %7907 = vmatpush3.bf16.msra.mxu1 %v2910_v48  ;;  %v7127_v48 = vcombine.high %v3091_v45, %v3103_v46 }
 0x8fc   : > { %7918 = vmatprep.subr.bf16.mxu1 %v8525_v42 }
 0x9c1   : > { %v2708_v50 = vpop.f32.mrb[32].mxu0 }
 0x9c2   : > { %v2852_v51 = vpack.c.bf16 %v2708_v50, %v2708_v50  ;;  %v7880_v52 = vpop.f32.mrb[33].mxu0  ;;  %v7126_v50 = vcombine.low %v3091_v45, %v3103_v46 }
 0x9c3   : > { %v2711_v54 = vpop.f32.mrb[34].mxu0  ;;  %v7129_v52 = vcombine.high %v3092_v47, %v3104_v49 }
 0x9c4   : > { %v7881_v56 = vpop.f32.mrb[35].mxu0  ;;  %7903 = vmatmul.mubr.msk.bf16.vlgmr.msra.gmra.mrb[40].mxu0 %vm2416_vm8, %v2852_v51  ;;  %v7128_v51 = vcombine.low %v3092_v47, %v3104_v49  ;;  %v3127_v54 = vld [vmem:[%s8814_s26 + $0x120] sm:$0xff]  ;;  %v3121_v49 = vld [vmem:[%s8814_s26 + $0xf0] sm:$0xff] }
 0x9c5   : > { %v2754_v57 = vpop.f32.mrb[32].mxu1  ;;  %7913 = vmatpush3.bf16.msra.mxu0 %v2956_v53  ;;  %7914 = vmatprep.mubr.msk.bf16.mxu0 %vm8526_vm6, %v8525_v42  ;;  %v3115_v53 = vld [vmem:[%s8814_s26 + $0xc0] sm:$0xff] }
 0x9c6   : > { %v2853_v58 = vpack.c.bf16 %v2754_v57, %v2754_v57  ;;  %v7886_v59 = vpop.f32.mrb[33].mxu1  ;;  %3508 = vmatprep.subr.bf16.mxu0 %v7127_v48  ;;  %v7151_v56 = vcombine.high %v3115_v53, %v3127_v54  ;;  %v3128_v57 = vld [vmem:[%s8814_s26 + $0x128] sm:$0xff] }
 0x9c7   : > { %v2757_v61 = vpop.f32.mrb[34].mxu1  ;;  %v7152_v59 = vcombine.low %v3116_v55, %v3128_v57 }
 0x9c8   : > { %v7887_v62 = vpop.f32.mrb[35].mxu1  ;;  %7909 = vmatmul.mubr.msk.bf16.vlgmr.msra.gmra.mrb[40].mxu1 %vm2416_vm8, %v2853_v58  ;;  %v7150_v58 = vcombine.low %v3115_v53, %v3127_v54  ;;  %v3093_v61 = vld [vmem:[%s8814_s26 + $0x10] sm:$0xff] }
 0x9c9   : > { %v2800_v63 = vpop.f32.mrb[36].mxu0  ;;  %7919 = vmatpush3.bf16.msra.mxu1 %v3002_v60  ;;  %7920 = vmatprep.mubr.msk.bf16.mxu1 %vm8526_vm6, %v8525_v42  ;;  %v7153_v60 = vcombine.high %v3116_v55, %v3128_v57  ;;  %v3105_v62 = vld [vmem:[%s8814_s26 + $0x70] sm:$0xff]  ;;  %v3099_v57 = vld [vmem:[%s8814_s26 + $0x40] sm:$0xff] }
 0x9ca   : > { %v2854_v0 = vpack.c.bf16 %v2800_v63, %v2800_v63  ;;  %v7892_v1 = vpop.f32.mrb[37].mxu0  ;;  %3549 = vmatprep.subr.bf16.mxu1 %v7129_v52  ;;  %v3094_v63 = vld [vmem:[%s8814_s26 + $0x18] sm:$0xff] }
 0x9cb   : > { %v2803_v2 = vpop.f32.mrb[38].mxu0  ;;  %v7131_v1 = vcombine.high %v3093_v61, %v3105_v62  ;;  %v3134_v52 = vld [vmem:[%s8814_s26 + $0x158] sm:$0xff] }
 0x9cc   : > { %v7893_v3 = vpop.f32.mrb[39].mxu0  ;;  %7915 = vmatmul.mubr.msk.bf16.vlgmr.msra.gmra.mrb[44].mxu0 %vm2416_vm8, %v2854_v0  ;;  %v8527_v0 = vmov 0   ;;  %v3106_v2 = vld [vmem:[%s8814_s26 + $0x78] sm:$0xff] }
 0x9cd   : > { %v2846_v4 = vpop.f32.mrb[36].mxu1  ;;  %3509 = vmatpush1.bf16.msra.mxu0 %v7126_v50  ;;  %3540 = vmatprep.mubr.bf16.mxu0 %v8527_v0  ;;  %v7130_v3 = vcombine.low %v3093_v61, %v3105_v62  ;;  %v3133_v50 = vld [vmem:[%s8814_s26 + $0x150] sm:$0xff] }
 0x9ce   : > { %v2855_v5 = vpack.c.bf16 %v2846_v4, %v2846_v4  ;;  %v7898_v6 = vpop.f32.mrb[37].mxu1  ;;  %3510 = vmatprep.subr.bf16.mxu0 %v7151_v56  ;;  %v7132_v4 = vcombine.low %v3094_v63, %v3106_v2  ;;  %v7163_v55 = vcombine.high %v3121_v49, %v3133_v50  ;;  %v7162_v61 = vcombine.low %v3121_v49, %v3133_v50  ;;  %v8097_v49 = vld [vmem:[%s8823_s15 + $0x20] sm:$0xff]  }
 0x9cf   : > { %v2849_v7 = vpop.f32.mrb[38].mxu1  ;;  %v8098_v50 = vld [vmem:[%s8823_s15 + $0xa0] sm:$0xff]  }
 0x9d0   : > { %v7899_v8 = vpop.f32.mrb[39].mxu1  ;;  %7921 = vmatmul.mubr.msk.bf16.vlgmr.msra.gmra.mrb[44].mxu1 %vm2416_vm8, %v2855_v5  ;;  %v7133_v5 = vcombine.high %v3094_v63, %v3106_v2  ;;  %v3123_v2 = vld [vmem:[%s8814_s26 + $0x100] sm:$0xff] }
 0x9d1   : > { %3550 = vmatpush1.bf16.msra.mxu1 %v7128_v51  ;;  %3511 = vmatpush1.bf16.msra.mxu0 %v7150_v58  ;;  %v3122_v51 = vld [vmem:[%s8814_s26 + $0xf8] sm:$0xff]  ;;  %v3111_v58 = vld [vmem:[%s8814_s26 + $0xa0] sm:$0xff] }
 0x9d2   : > { %3551 = vmatprep.subr.bf16.mxu1 %v7153_v60  ;;  %3581 = vmatprep.mubr.bf16.mxu1 %v8527_v0  ;;  %v7165_v56 = vcombine.high %v3122_v51, %v3134_v52  ;;  %v3112_v60 = vld [vmem:[%s8814_s26 + $0xa8] sm:$0xff]  ;;  %v7164_v62 = vcombine.low %v3122_v51, %v3134_v52  ;;  %v7143_v63 = vcombine.high %v3099_v57, %v3111_v58 }
 0x9d3   : > { %3590 = vmatprep.subr.bf16.mxu0 %v7131_v1 }
 0x9d5   : > { %3552 = vmatpush1.bf16.msra.mxu1 %v7152_v59  ;;  %v3100_v59 = vld [vmem:[%s8814_s26 + $0x48] sm:$0xff] }
 0x9d6   : > { %3631 = vmatprep.subr.bf16.mxu1 %v7133_v5  ;;  %v7145_v1 = vcombine.high %v3100_v59, %v3112_v60  ;;  %v3136_v5 = vld [vmem:[%s8814_s26 + $0x168] sm:$0xff] }
 0xa97   : > { %v2900_v9 = vpop.f32.mrb[40].mxu0 }
 0xa98   : > { %v7904_v10 = vpop.f32.mrb[41].mxu0  ;;  %v3044_v13 = vsel %vm1792_vm7, %v2900_v9, 0.0 }
 0xa99   : > { %v2903_v11 = vpop.f32.mrb[42].mxu0  ;;  %v7124_v10 = vld [vmem:[%s10286_s0] ss:$0 sm:$0xff] }
 0xa9a   : > { %v7905_v12 = vpop.f32.mrb[43].mxu0 }
 0xa9b   : > { %v2946_v42 = vpop.f32.mrb[40].mxu1  ;;  %v7125_v12 = vld [vmem:[%s10287_s16] ss:$0 sm:$0xff] }
 0xa9c   : > { %v3045_v14 = vsel %vm1792_vm7, %v2946_v42, 0.0  ;;  %v7910_v15 = vpop.f32.mrb[41].mxu1 }
 0xa9d   : > { %v3046_v16 = vadd.f32 %v3045_v14, %v3044_v13  ;;  %v2949_v19 = vpop.f32.mrb[42].mxu1  ;;  %v3117_v13 = vld [vmem:[%s8814_s26 + $0xd0] sm:$0xff]  ;;  %v3118_v15 = vld [vmem:[%s8814_s26 + $0xd8] sm:$0xff] }
 0xa9e   : > { %v7911_v20 = vpop.f32.mrb[43].mxu1  ;;  %v3129_v14 = vld [vmem:[%s8814_s26 + $0x130] sm:$0xff] }
 0xa9f   : > { %v2992_v21 = vpop.f32.mrb[44].mxu0 }
 0xaa0   : > { %v3047_v22 = vsel %vm1792_vm7, %v2992_v21, 0.0  ;;  %v7916_v23 = vpop.f32.mrb[45].mxu0  ;;  %v7155_v21 = vcombine.high %v3117_v13, %v3129_v14 }
 0xaa1   : > { %v3048_v24 = vadd.f32 %v3047_v22, %v3046_v16  ;;  %v2995_v26 = vpop.f32.mrb[46].mxu0  ;;  %v3130_v16 = vld [vmem:[%s8814_s26 + $0x138] sm:$0xff]  ;;  %v3095_v23 = vld [vmem:[%s8814_s26 + $0x20] sm:$0xff] }
 0xaa2   : > { %v7917_v27 = vpop.f32.mrb[47].mxu0  ;;  %v7157_v22 = vcombine.high %v3118_v15, %v3130_v16  ;;  %v3096_v26 = vld [vmem:[%s8814_s26 + $0x28] sm:$0xff] }
 0xaa3   : > { %v3038_v29 = vpop.f32.mrb[44].mxu1  ;;  %v3108_v27 = vld [vmem:[%s8814_s26 + $0x88] sm:$0xff] }
 0xaa4   : > { %v3049_v31 = vsel %vm1792_vm7, %v3038_v29, 0.0  ;;  %v7922_v33 = vpop.f32.mrb[45].mxu1  ;;  %v7154_v29 = vcombine.low %v3117_v13, %v3129_v14 }
 0xaa5   : > { %v3050_v34 = vadd.f32 %v3049_v31, %v3048_v24  ;;  %v3041_v35 = vpop.f32.mrb[46].mxu1  ;;  %v3107_v24 = vld [vmem:[%s8814_s26 + $0x80] sm:$0xff]  ;;  %v7156_v31 = vcombine.low %v3118_v15, %v3130_v16  ;;  %v7137_v33 = vcombine.high %v3096_v26, %v3108_v27 }
 0xaa6   : > { %v7923_v36 = vpop.f32.mrb[47].mxu1  ;;  %v3131_v35 = vld [vmem:[%s8814_s26 + $0x140] sm:$0xff] }
 0xaa7   : > { %v3058_v37 = vadd.f32 %v7123_v32, %v3050_v34  ;;  %v7135_v32 = vcombine.high %v3095_v23, %v3107_v24  ;;  %v3119_v34 = vld [vmem:[%s8814_s26 + $0xe0] sm:$0xff]  ;;  %v3120_v36 = vld [vmem:[%s8814_s26 + $0xe8] sm:$0xff] }
 0xaa8   : > { %v7158_v45 = vcombine.low %v3119_v34, %v3131_v35 }
 0xaa9   : > { %v3059_v38 = vadd.f32 %v8387_v17, %v3058_v37  ;;  %v3132_v37 = vld [vmem:[%s8814_s26 + $0x148] sm:$0xff]  ;;  %v7134_v17 = vcombine.low %v3095_v23, %v3107_v24  ;;  %v3126_v23 = vld [vmem:[%s8814_s26 + $0x118] sm:$0xff] }
 0xaaa   : > { %v7160_v46 = vcombine.low %v3120_v36, %v3132_v37  ;;  %v3138_v24 = vld [vmem:[%s8814_s26 + $0x178] sm:$0xff] }
 0xaab   : > { %v3062_v18 = vsel %vm1792_vm7, %v3059_v38, 0.0 }
 0xaac   : > { %3063 = vadd.xlane.f32.xlu0 %v3062_v18  ;;  %v7159_v18 = vcombine.high %v3119_v34, %v3131_v35  ;;  %v8079_v34 = vld [vmem:[%s8823_s15 + $0x40] sm:$0xff]  }
 0xaad   : > { %v8080_v35 = vld [vmem:[%s8823_s15 + $0xc0] sm:$0xff]  }
 0xb39   : > { %v3064_v39 = vpop.xlane.xlu0 %3063 }
 0xb3a   : > { %v3066_v40 = vmul.f32 0.03125, %v3064_v39  ;;  %v7161_v39 = vcombine.high %v3120_v36, %v3132_v37  ;;  %v8081_v36 = vld [vmem:[%s8823_s15] sm:$0xff]  }
 0xb3b   : > { %v8082_v37 = vld [vmem:[%s8823_s15 + $0x80] sm:$0xff]  }
 0xb3c   : > { %v3067_v41 = vsub.f32 %v3059_v38, %v3066_v40  ;;  %v7136_v38 = vcombine.low %v3096_v26, %v3108_v27  ;;  %v3097_v40 = vld [vmem:[%s8814_s26 + $0x30] sm:$0xff] }
 0xb3e   : > { %v3068_v43 = vmul.f32 %v3067_v41, %v3067_v41 }
 0xb40   : > { %v3069_v44 = vsel %vm1792_vm7, %v3068_v43, 0.0  ;;  %v3098_v43 = vld [vmem:[%s8814_s26 + $0x38] sm:$0xff] }
 0xb41   : > { %3070 = vadd.xlane.f32.xlu1 %v3069_v44  ;;  %v3110_v44 = vld [vmem:[%s8814_s26 + $0x98] sm:$0xff] }
 0xb42   : > { %v7141_v48 = vcombine.high %v3098_v43, %v3110_v44  ;;  %v7140_v54 = vcombine.low %v3098_v43, %v3110_v44  ;;  %v8091_v43 = vld [vmem:[%s8823_s15 + $0x58] sm:$0xff]  }
 0xb43   : > { %v8092_v44 = vld [vmem:[%s8823_s15 + $0xd8] sm:$0xff]  }
 0xbce   : > { %v3071_v6 = vpop.xlane.xlu1 %3070 }
 0xbcf   : > { %v3072_v7 = vmul.f32 0.03125, %v3071_v6  ;;  %v7142_v6 = vcombine.low %v3099_v57, %v3111_v58 }
 0xbd1   : > { %v3073_v8 = vadd.f32 1e-12, %v3072_v7  ;;  %v7144_v7 = vcombine.low %v3100_v59, %v3112_v60 }
 0xbd3   : > { %8287 = vrsqrt.f32 %v3073_v8 }
 0xbdd   : > { %v8288_v9 = vpop.eup %8287 }
 0xbde   : > { %v3075_v11 = vmul.f32 %v8288_v9, %v3067_v41  ;;  %v3109_v41 = vld [vmem:[%s8814_s26 + $0x90] sm:$0xff] }
 0xbdf   : > { %v7139_v47 = vcombine.high %v3097_v40, %v3109_v41  ;;  %v7138_v53 = vcombine.low %v3097_v40, %v3109_v41  ;;  %v8089_v40 = vld [vmem:[%s8823_s15 + $0x10] sm:$0xff]  }
 0xbe0   : > { %v3082_v42 = vmul.f32 %v7124_v10, %v3075_v11  ;;  %v3101_v10 = vld [vmem:[%s8814_s26 + $0x50] sm:$0xff] }
 0xbe1   : > { %v3113_v11 = vld [vmem:[%s8814_s26 + $0xb0] sm:$0xff] }
 0xbe2   : > { %v9112_v19 = vadd.f32 %v7125_v12, %v3082_v42  ;;  %v3102_v12 = vld [vmem:[%s8814_s26 + $0x58] sm:$0xff]  ;;  %v7147_v15 = vcombine.high %v3101_v10, %v3113_v11  ;;  %v7146_v26 = vcombine.low %v3101_v10, %v3113_v11  ;;  %v8090_v41 = vld [vmem:[%s8823_s15 + $0x90] sm:$0xff]  }
 0xbe3   : > { %v3114_v42 = vld [vmem:[%s8814_s26 + $0xb8] sm:$0xff]  ;;  %v8105_v10 = vld [vmem:[%s8823_s15 + $0x30] sm:$0xff]  }
 0xbe4   : > { %10288 = vst [vmem:[#allocation45_spill] sm:$0xff] %v9112_v19  ;;  %v9116_v20 = vpack.c.bf16 %v9112_v19, %v9112_v19  ;;  %v7149_v16 = vcombine.high %v3102_v12, %v3114_v42  ;;  %v7148_v27 = vcombine.low %v3102_v12, %v3114_v42  ;;  %v8106_v11 = vld [vmem:[%s8823_s15 + $0xb0] sm:$0xff]   ;;  %v8107_v42 = vld [vmem:[%s8823_s15 + $0x78] sm:$0xff]  }
 0xbe6   : > { %7174 = vmatmul.mubr.msk.bf16.vlgmr.msra.gmra.mrb[48].mxu0 %vm1792_vm7, %v9116_v20  ;;  %7175 = vmatmul.mubr.msk.bf16.vlgmr.msra.gmra.mrb[48].mxu1 %vm1792_vm7, %v9116_v20 }
 0xbe7   : > { %3591 = vmatpush1.bf16.msra.mxu0 %v7130_v3  ;;  %3632 = vmatpush1.bf16.msra.mxu1 %v7132_v4  ;;  %v3135_v3 = vld [vmem:[%s8814_s26 + $0x160] sm:$0xff]  ;;  %v3124_v4 = vld [vmem:[%s8814_s26 + $0x108] sm:$0xff] }
 0xbe8   : > { %3592 = vmatprep.subr.bf16.mxu0 %v7155_v21  ;;  %3633 = vmatprep.subr.bf16.mxu1 %v7157_v22  ;;  %v7167_v8 = vcombine.high %v3123_v2, %v3135_v3  ;;  %v7169_v9 = vcombine.high %v3124_v4, %v3136_v5  ;;  %v7166_v13 = vcombine.low %v3123_v2, %v3135_v3  ;;  %v3125_v21 = vld [vmem:[%s8814_s26 + $0x110] sm:$0xff] }
 0xbe9   : > { %3622 = vmatprep.mubr.bf16.mxu0 %v8527_v0  ;;  %3663 = vmatprep.mubr.bf16.mxu1 %v8527_v0  ;;  %v7168_v14 = vcombine.low %v3124_v4, %v3136_v5  ;;  %v3137_v22 = vld [vmem:[%s8814_s26 + $0x170] sm:$0xff] }
 0xbeb   : > { %3593 = vmatpush1.bf16.msra.mxu0 %v7154_v29  ;;  %3634 = vmatpush1.bf16.msra.mxu1 %v7156_v31  ;;  %v7171_v29 = vcombine.high %v3125_v21, %v3137_v22  ;;  %v7173_v31 = vcombine.high %v3126_v23, %v3138_v24 }
 0xbec   : > { %3672 = vmatprep.subr.bf16.mxu0 %v7135_v32  ;;  %3713 = vmatprep.subr.bf16.mxu1 %v7137_v33  ;;  %v7170_v32 = vcombine.low %v3125_v21, %v3137_v22  ;;  %v7172_v33 = vcombine.low %v3126_v23, %v3138_v24  ;;  %v8108_v22 = vld [vmem:[%s8823_s15 + $0xf8] sm:$0xff]  }
 0xbed   : > { %v8109_v23 = vld [vmem:[%s8823_s15 + $0x38] sm:$0xff]  }
 0xbee   : > { %7176 = vmatmul.mubr.msk.bf16.vlgmr.msra.gmra.mrb[52].mxu0 %vm1792_vm7, %v9116_v20  ;;  %7177 = vmatmul.mubr.msk.bf16.vlgmr.msra.gmra.mrb[52].mxu1 %vm1792_vm7, %v9116_v20 }
 0xbef   : > { %3673 = vmatpush1.bf16.msra.mxu0 %v7134_v17  ;;  %3714 = vmatpush1.bf16.msra.mxu1 %v7136_v38  ;;  %v8084_v17 = vld [vmem:[%s8823_s15 + $0xc8] sm:$0xff]  }
 0xbf0   : > { %3674 = vmatprep.subr.bf16.mxu0 %v7159_v18  ;;  %3715 = vmatprep.subr.bf16.mxu1 %v7161_v39  ;;  %v8085_v38 = vld [vmem:[%s8823_s15 + $0x8] sm:$0xff]   ;;  %v8088_v39 = vld [vmem:[%s8823_s15 + $0xd0] sm:$0xff]  }
 0xbf1   : > { %3704 = vmatprep.mubr.bf16.mxu0 %v8527_v0  ;;  %3745 = vmatprep.mubr.bf16.mxu1 %v8527_v0  ;;  %v8086_v18 = vld [vmem:[%s8823_s15 + $0x88] sm:$0xff]  }
 0xbf3   : > { %3675 = vmatpush1.bf16.msra.mxu0 %v7158_v45  ;;  %3716 = vmatpush1.bf16.msra.mxu1 %v7160_v46  ;;  %v8093_v45 = vld [vmem:[%s8823_s15 + $0x18] sm:$0xff]  }
 0xbf4   : > { %3754 = vmatprep.subr.bf16.mxu0 %v7139_v47  ;;  %3795 = vmatprep.subr.bf16.mxu1 %v7141_v48  ;;  %v8094_v46 = vld [vmem:[%s8823_s15 + $0x98] sm:$0xff]   ;;  %v8095_v47 = vld [vmem:[%s8823_s15 + $0x60] sm:$0xff]  }
 0xbf5   : > { %v8096_v48 = vld [vmem:[%s8823_s15 + $0xe0] sm:$0xff]  }
 0xbf6   : > { %7178 = vmatmul.mubr.msk.bf16.vlgmr.msra.gmra.mrb[56].mxu0 %vm1792_vm7, %v9116_v20  ;;  %7179 = vmatmul.mubr.msk.bf16.vlgmr.msra.gmra.mrb[56].mxu1 %vm1792_vm7, %v9116_v20 }
 0xbf7   : > { %3755 = vmatpush1.bf16.msra.mxu0 %v7138_v53  ;;  %3796 = vmatpush1.bf16.msra.mxu1 %v7140_v54 }
 0xbf8   : > { %3756 = vmatprep.subr.bf16.mxu0 %v7163_v55  ;;  %3797 = vmatprep.subr.bf16.mxu1 %v7165_v56 }
 0xbf9   : > { %3786 = vmatprep.mubr.bf16.mxu0 %v8527_v0  ;;  %3827 = vmatprep.mubr.bf16.mxu1 %v8527_v0 }
 0xbfb   : > { %3757 = vmatpush1.bf16.msra.mxu0 %v7162_v61  ;;  %3798 = vmatpush1.bf16.msra.mxu1 %v7164_v62  ;;  %v8099_v61 = vld [vmem:[%s8823_s15 + $0x68] sm:$0xff]  }
 0xbfc   : > { %3836 = vmatprep.subr.bf16.mxu0 %v7143_v63  ;;  %3877 = vmatprep.subr.bf16.mxu1 %v7145_v1  ;;  %v8100_v62 = vld [vmem:[%s8823_s15 + $0xe8] sm:$0xff]  }
 0xbfe   : > { %7180 = vmatmul.mubr.msk.bf16.vlgmr.msra.gmra.mrb[60].mxu0 %vm1792_vm7, %v9116_v20  ;;  %7181 = vmatmul.mubr.msk.bf16.vlgmr.msra.gmra.mrb[60].mxu1 %vm1792_vm7, %v9116_v20 }
 0xbff   : > { %3837 = vmatpush1.bf16.msra.mxu0 %v7142_v6  ;;  %3878 = vmatpush1.bf16.msra.mxu1 %v7144_v7  ;;  %v8101_v6 = vld [vmem:[%s8823_s15 + $0x28] sm:$0xff]  }
 0xc00   : > { %3838 = vmatprep.subr.bf16.mxu0 %v7167_v8  ;;  %3879 = vmatprep.subr.bf16.mxu1 %v7169_v9  ;;  %v8102_v7 = vld [vmem:[%s8823_s15 + $0xa8] sm:$0xff]   ;;  %v8103_v8 = vld [vmem:[%s8823_s15 + $0x70] sm:$0xff]  }
 0xc01   : > { %3868 = vmatprep.mubr.bf16.mxu0 %v8527_v0  ;;  %3909 = vmatprep.mubr.bf16.mxu1 %v8527_v0  ;;  %v8104_v9 = vld [vmem:[%s8823_s15 + $0xf0] sm:$0xff]  }
 0xc03   : > { %3839 = vmatpush1.bf16.msra.mxu0 %v7166_v13  ;;  %3880 = vmatpush1.bf16.msra.mxu1 %v7168_v14 }
 0xc04   : > { %3918 = vmatprep.subr.bf16.mxu0 %v7147_v15  ;;  %3959 = vmatprep.subr.bf16.mxu1 %v7149_v16 }
 0xc06   : > { %7182 = vmatmul.mubr.msk.bf16.vlgmr.msra.gmra.mrb[64].mxu0 %vm1792_vm7, %v9116_v20  ;;  %7183 = vmatmul.mubr.msk.bf16.vlgmr.msra.gmra.mrb[64].mxu1 %vm1792_vm7, %v9116_v20 }
 0xc07   : > { %3919 = vmatpush1.bf16.msra.mxu0 %v7146_v26  ;;  %3960 = vmatpush1.bf16.msra.mxu1 %v7148_v27  ;;  %v8110_v27 = vld [vmem:[%s8823_s15 + $0xb8] sm:$0xff]  }
 0xc08   : > { %3920 = vmatprep.subr.bf16.mxu0 %v7171_v29  ;;  %3961 = vmatprep.subr.bf16.mxu1 %v7173_v31  ;;  %v8111_v29 = vld [vmem:[%s8823_s15 + $0x140] sm:$0xff]  }
 0xc09   : > { %3950 = vmatprep.mubr.bf16.mxu0 %v8527_v0  ;;  %3991 = vmatprep.mubr.bf16.mxu1 %v8527_v0  ;;  %v8083_v0 = vld [vmem:[%s8823_s15 + $0x48] sm:$0xff]  }
 0xc0b   : > { %3921 = vmatpush1.bf16.msra.mxu0 %v7170_v32  ;;  %3962 = vmatpush1.bf16.msra.mxu1 %v7172_v33 }
 0xc0c   : > { %7460 = vmatprep.subr.bf16.mxu0 %v8079_v34  ;;  %7482 = vmatprep.subr.bf16.mxu1 %v8080_v35  ;;  %v8112_v35 = vld [vmem:[%s8823_s15 + $0x1c0] sm:$0xff]  }
 0xc0e   : > { %7184 = vmatmul.mubr.msk.bf16.vlgmr.msra.gmra.mrb[68].mxu0 %vm1792_vm7, %v9116_v20  ;;  %7185 = vmatmul.mubr.msk.bf16.vlgmr.msra.gmra.mrb[68].mxu1 %vm1792_vm7, %v9116_v20  ;;  %v8087_v20 = vld [vmem:[%s8823_s15 + $0x50] sm:$0xff]  }
 0xc0f   : > { %7461 = vmatpush3.bf16.msra.mxu0 %v8081_v36  ;;  %7483 = vmatpush3.bf16.msra.mxu1 %v8082_v37 }
 0xc10   : > { %7462 = vmatprep.subr.bf16.mxu0 %v8083_v0  ;;  %7484 = vmatprep.subr.bf16.mxu1 %v8084_v17 }
 0xc13   : > { %7463 = vmatpush3.bf16.msra.mxu0 %v8085_v38  ;;  %7485 = vmatpush3.bf16.msra.mxu1 %v8086_v18 }
 0xc14   : > { %7464 = vmatprep.subr.bf16.mxu0 %v8087_v20  ;;  %7486 = vmatprep.subr.bf16.mxu1 %v8088_v39 }
 0xc17   : > { %7465 = vmatpush3.bf16.msra.mxu0 %v8089_v40  ;;  %7487 = vmatpush3.bf16.msra.mxu1 %v8090_v41 }
 0xc18   : > { %7466 = vmatprep.subr.bf16.mxu0 %v8091_v43  ;;  %7488 = vmatprep.subr.bf16.mxu1 %v8092_v44 }
 0xc1b   : > { %7467 = vmatpush3.bf16.msra.mxu0 %v8093_v45  ;;  %7489 = vmatpush3.bf16.msra.mxu1 %v8094_v46 }
 0xc1c   : > { %7468 = vmatprep.subr.bf16.mxu0 %v8095_v47  ;;  %7490 = vmatprep.subr.bf16.mxu1 %v8096_v48 }
 0xc1f   : > { %7469 = vmatpush3.bf16.msra.mxu0 %v8097_v49  ;;  %7491 = vmatpush3.bf16.msra.mxu1 %v8098_v50 }
 0xc20   : > { %7470 = vmatprep.subr.bf16.mxu0 %v8099_v61  ;;  %7492 = vmatprep.subr.bf16.mxu1 %v8100_v62 }
 0xc23   : > { %7471 = vmatpush3.bf16.msra.mxu0 %v8101_v6  ;;  %7493 = vmatpush3.bf16.msra.mxu1 %v8102_v7 }
 0xc24   : > { %7472 = vmatprep.subr.bf16.mxu0 %v8103_v8  ;;  %7494 = vmatprep.subr.bf16.mxu1 %v8104_v9  ;;  %v9298_v9 = vsub.s32 5, %v9027_v28 }
 0xc27   : > { %7473 = vmatpush3.bf16.msra.mxu0 %v8105_v10  ;;  %7495 = vmatpush3.bf16.msra.mxu1 %v8106_v11  ;;  %v9303_v10 = vld [vmem:[%s8818_s22 + $0x8] sm:$0xff] }
 0xc28   : > { %7474 = vmatprep.subr.bf16.mxu0 %v8107_v42  ;;  %7496 = vmatprep.subr.bf16.mxu1 %v8108_v22 }
 0xc2b   : > { %7475 = vmatpush3.bf16.msra.mxu0 %v8109_v23  ;;  %7497 = vmatpush3.bf16.msra.mxu1 %v8110_v27  ;;  %v9319_v23 = vsub.s32 7, %v9027_v28 }
 0xc2c   : > { %7504 = vmatprep.subr.bf16.mxu0 %v8111_v29  ;;  %7526 = vmatprep.subr.bf16.mxu1 %v8112_v35 }
 0xcb9   : > { %v9204_v51 = vpop.f32.mrb[48].mxu0  ;;  %v9206_v52 = vpop.f32.mrb[48].mxu1 }
 0xcba   : > { %v9208_v53 = vpop.f32.mrb[49].mxu0  ;;  %v9210_v54 = vpop.f32.mrb[49].mxu1 }
 0xcbb   : > { %v3546_v55 = vpop.f32.mrb[50].mxu0  ;;  %v3587_v56 = vpop.f32.mrb[50].mxu1 }
 0xcbc   : > { %v3547_v57 = vpop.f32.mrb[51].mxu0  ;;  %v3588_v58 = vpop.f32.mrb[51].mxu1 }
 0xcbd   : > { %v9265_v57 = vld [vmem:[%s8818_s22] sm:$0xff]  ;;  %v9268_v58 = vsub.s32 1, %v9027_v28 }
 0xcbe   : > { %v3148_v61 = vrot.slane %v9265_v57, %v9030_v30  ;;  %v3168_v22 = vrot.slane %v9265_v57, %v9298_v9 }
 0xcbf   : > { %v3152_v62 = vrot.slane %v9265_v57, %v9268_v58 }
 0xcc1   : > { %v9212_v59 = vpop.f32.mrb[52].mxu0  ;;  %v9214_v60 = vpop.f32.mrb[52].mxu1 }
 0xcc2   : > { %v9218_v63 = vpop.f32.mrb[53].mxu0  ;;  %v9220_v1 = vpop.f32.mrb[53].mxu1 }
 0xcc3   : > { %v3628_v2 = vpop.f32.mrb[54].mxu0  ;;  %v3669_v3 = vpop.f32.mrb[54].mxu1  ;;  %v9332_v35 = vadd.f32 %v9218_v63, %v3168_v22 }
 0xcc4   : > { %v3629_v4 = vpop.f32.mrb[55].mxu0  ;;  %v3670_v5 = vpop.f32.mrb[55].mxu1  ;;  %v9275_v2 = vadd.f32 %v9204_v51, %v3148_v61  ;;  %v9278_v3 = vsub.s32 2, %v9027_v28  ;;  %v9295_v51 = vsub.s32 6, %v9027_v28 }
 0xcc5   : > { %v9281_v4 = vadd.f32 %v9208_v53, %v3152_v62  ;;  %v9284_v5 = vsub.s32 3, %v9027_v28 }
 0xcc6   : > { %v9287_v6 = vmul.f32 0.70710677, %v9275_v2  ;;  %v3156_v7 = vrot.slane %v9265_v57, %v9278_v3  ;;  %v3204_v11 = vrot.slane %v9303_v10, %v9295_v51 }
 0xcc7   : > { %10295 = vst [vmem:[#allocation52_spill] sm:$0xff] %v9284_v5  ;;  %v9292_v8 = vmul.f32 0.70710677, %v9281_v4  ;;  %v3160_v53 = vrot.slane %v9265_v57, %v9284_v5 }
 0xcc8   : > { %v9308_v42 = vand.u32 2147483647, %v9287_v6  ;;  %vm4048_vm10 = vcmp.ge.f32.partialorder %v9287_v6, 0.0 }
 0xcc9   : > { %v9228_v12 = vpop.f32.mrb[56].mxu0  ;;  %v9231_v13 = vpop.f32.mrb[56].mxu1  ;;  %vm4049_vm12 = vcmp.ge.f32.partialorder %v9292_v8, 0.0 }
 0xcca   : > { %v9233_v14 = vpop.f32.mrb[57].mxu0  ;;  %v9235_v15 = vpop.f32.mrb[57].mxu1  ;;  %v4120_v27 = vmul.f32 0.3275911, %v9308_v42  ;;  %v4432_v19 = vsub.f32 0.0, %v9308_v42 }
 0xccb   : > { %v3710_v16 = vpop.f32.mrb[58].mxu0  ;;  %v3751_v21 = vpop.f32.mrb[58].mxu1 }
 0xccc   : > { %v3711_v24 = vpop.f32.mrb[59].mxu0  ;;  %v3752_v26 = vpop.f32.mrb[59].mxu1  ;;  %v9311_v16 = vadd.f32 %v9206_v52, %v3156_v7  ;;  %v9314_v21 = vand.u32 2147483647, %v9292_v8 }
 0xccd   : > { %v9322_v24 = vadd.f32 %v9210_v54, %v3160_v53  ;;  %v4144_v54 = vadd.f32 1.0, %v4120_v27  ;;  %v3184_v27 = vrot.slane %v9303_v10, %v9268_v58 }
 0xcce   : > { %v9328_v29 = vmul.f32 0.70710677, %v9311_v16  ;;  %v4121_v52 = vmul.f32 0.3275911, %v9314_v21 }
 0xccf   : > { %8289 = vrcp.f32 %v4144_v54 }
 0xcd0   : > { %vm4050_vm11 = vcmp.ge.f32.partialorder %v9328_v29, 0.0 }
 0xcd1   : > { %v9241_v31 = vpop.f32.mrb[60].mxu0  ;;  %v3829_v32 = vpop.f32.mrb[60].mxu1 }
 0xcd2   : > { %v9243_v33 = vpop.f32.mrb[61].mxu0  ;;  %v9245_v34 = vpop.f32.mrb[61].mxu1  ;;  %v9324_v26 = vadd.f32 %v3829_v32, %v3204_v11  ;;  %v9340_v32 = vand.u32 2147483647, %v9328_v29 }
 0xcd3   : > { %v3792_v36 = vpop.f32.mrb[62].mxu0  ;;  %v3833_v37 = vpop.f32.mrb[62].mxu1 }
 0xcd4   : > { %v3793_v0 = vpop.f32.mrb[63].mxu0  ;;  %v3834_v17 = vpop.f32.mrb[63].mxu1  ;;  %10296 = vst [vmem:[#allocation53_spill] sm:$0xff] %v9324_v26  ;;  %v3176_v36 = vrot.slane %v9265_v57, %v9319_v23  ;;  %v9337_v37 = vmul.f32 0.70710677, %v9322_v24 }
 0xcd5   : > { %v4145_v0 = vadd.f32 1.0, %v4121_v52  ;;  %v9343_v17 = vmul.f32 0.70710677, %v9332_v35 }
 0xcd6   : > { %v9349_v63 = vand.u32 2147483647, %v9337_v37  ;;  %vm4051_vm13 = vcmp.ge.f32.partialorder %v9337_v37, 0.0 }
 0xcd7   : > { %8291 = vrcp.f32 %v4145_v0  ;;  %vm4053_vm14 = vcmp.ge.f32.partialorder %v9343_v17, 0.0 }
 0xcd9   : > { %v9248_v38 = vpop.f32.mrb[64].mxu0  ;;  %v9250_v18 = vpop.f32.mrb[64].mxu1 }
 0xcda   : > { %10289 = vst [vmem:[#allocation46_spill] sm:$0xff] %v9248_v38  ;;  %10290 = vst [vmem:[#allocation47_spill] sm:$0xff] %v9250_v18  ;;  %v9252_v20 = vpop.f32.mrb[65].mxu0  ;;  %v9254_v39 = vpop.f32.mrb[65].mxu1 }
 0xcdb   : > { %10291 = vst [vmem:[#allocation48_spill] sm:$0xff] %v9254_v39  ;;  %v3874_v40 = vpop.f32.mrb[66].mxu0  ;;  %v3915_v41 = vpop.f32.mrb[66].mxu1 }
 0xcdc   : > { %v3875_v43 = vpop.f32.mrb[67].mxu0  ;;  %v3916_v44 = vpop.f32.mrb[67].mxu1  ;;  %v9346_v40 = vadd.f32 %v9220_v1, %v3176_v36  ;;  %v4122_v41 = vmul.f32 0.3275911, %v9340_v32 }
 0xcdd   : > { %v9353_v43 = vand.u32 2147483647, %v9343_v17  ;;  %v9369_v11 = vpop.eup %8289 }
 0xcde   : > { %v9356_v44 = vmul.f32 0.70710677, %v9346_v40  ;;  %v4216_v36 = vmul.f32 1.0614054, %v9369_v11 }
 0xcdf   : > { %v4125_v1 = vmul.f32 0.3275911, %v9353_v43 }
 0xce0   : > { %vm4055_vm15 = vcmp.ge.f32.partialorder %v9356_v44, 0.0 }
 0xce1   : > { %v9256_v45 = vpop.f32.mrb[68].mxu0  ;;  %v9258_v46 = vpop.f32.mrb[68].mxu1  ;;  %v4149_v7 = vadd.f32 1.0, %v4125_v1  ;;  %v4240_v1 = vadd.f32 -1.4531521, %v4216_v36 }
 0xce2   : > { %10292 = vst [vmem:[#allocation49_spill] sm:$0xff] %v9256_v45  ;;  %v9260_v47 = vpop.f32.mrb[69].mxu0  ;;  %v9262_v48 = vpop.f32.mrb[69].mxu1 }
 0xce3   : > { %10293 = vst [vmem:[#allocation50_spill] sm:$0xff] %v9260_v47  ;;  %10294 = vst [vmem:[#allocation51_spill] sm:$0xff] %v9262_v48  ;;  %v3956_v49 = vpop.f32.mrb[70].mxu0  ;;  %v3997_v50 = vpop.f32.mrb[70].mxu1 }
 0xce4   : > { %v3957_v55 = vpop.f32.mrb[71].mxu0  ;;  %v3998_v56 = vpop.f32.mrb[71].mxu1  ;;  %v4123_v49 = vmul.f32 0.3275911, %v9349_v63  ;;  %v4146_v50 = vadd.f32 1.0, %v4122_v41  ;;  %v3172_v41 = vrot.slane %v9265_v57, %v9295_v51 }
 0xce5   : > { %v9360_v55 = vsub.s32 4, %v9027_v28  ;;  %v9364_v56 = vand.u32 2147483647, %v9356_v44  ;;  %v9371_v22 = vpop.eup %8291  ;;  %v8117_v44 = vld [vmem:[%s8823_s15 + $0x108] sm:$0xff]  }
 0xce6   : > { %v4147_v61 = vadd.f32 1.0, %v4123_v49  ;;  %8293 = vrcp.f32 %v4146_v50  ;;  %v4217_v0 = vmul.f32 1.0614054, %v9371_v22  ;;  %v9383_v49 = vadd.f32 %v9233_v14, %v3184_v27 }
 0xce7   : > { %v3164_v62 = vrot.slane %v9265_v57, %v9360_v55  ;;  %v4127_v53 = vmul.f32 0.3275911, %v9364_v56  ;;  %v4264_v27 = vmul.f32 %v9369_v11, %v4240_v1  ;;  %v4433_v1 = vsub.f32 0.0, %v9314_v21 }
 0xce8   : > { %8295 = vrcp.f32 %v4147_v61  ;;  %10298 = vst [vmem:[#allocation55_spill] sm:$0xff] %v9383_v49  ;;  %v4439_v8 = vsub.f32 0.0, %v9364_v56 }
 0xce9   : > { %v9376_v52 = vadd.f32 %v9212_v59, %v3164_v62  ;;  %8297 = vrcp.f32 %v4149_v7  ;;  %v4151_v54 = vadd.f32 1.0, %v4127_v53  ;;  %v3192_v59 = vrot.slane %v9303_v10, %v9284_v5 }
 0xcea   : > { %v4241_v62 = vadd.f32 -1.4531521, %v4217_v0  ;;  %v9393_v7 = vadd.f32 %v9214_v60, %v3172_v41  ;;  %v9396_v53 = vmul.f32 0.70710677, %v9383_v49 }
 0xceb   : > { %10297 = vst [vmem:[#allocation54_spill] sm:$0xff] %v9376_v52  ;;  %v9386_v50 = vmul.f32 0.70710677, %v9376_v52  ;;  %8299 = vrcp.f32 %v4151_v54  ;;  %v9406_v54 = vadd.f32 %v9235_v15, %v3192_v59  ;;  %v4288_v15 = vadd.f32 1.4214138, %v4264_v27 }
 0xcec   : > { %10300 = vst [vmem:[#allocation57_spill] sm:$0xff] %v9393_v7  ;;  %10301 = vst [vmem:[#allocation58_spill] sm:$0xff] %v9396_v53  ;;  %v4265_v0 = vmul.f32 %v9371_v22, %v4241_v62  ;;  %v9413_v41 = vmul.f32 0.70710677, %v9393_v7  ;;  %v9416_v28 = vand.u32 2147483647, %v9396_v53 }
 0xced   : > { %10299 = vst [vmem:[#allocation56_spill] sm:$0xff] %v9386_v50  ;;  %v9401_v14 = vand.u32 2147483647, %v9386_v50  ;;  %10302 = vst [vmem:[#allocation59_spill] sm:$0xff] %v9406_v54  ;;  %v9422_v62 = vmul.f32 0.70710677, %v9406_v54  ;;  %v4312_v47 = vmul.f32 %v9369_v11, %v4288_v15 }
 0xcee   : > { %10303 = vst [vmem:[#allocation60_spill] sm:$0xff] %v9413_v41  ;;  %v4289_v48 = vadd.f32 1.4214138, %v4265_v0  ;;  %v9430_v49 = vand.u32 2147483647, %v9413_v41  ;;  %v4457_v0 = vmul.f32 %v4433_v1, %v9314_v21  ;;  %v9451_v21 = vmul.f32 0.5, %v9275_v2 }
 0xcef   : > { %v4124_v45 = vmul.f32 0.3275911, %v9401_v14  ;;  %10304 = vst [vmem:[#allocation61_spill] sm:$0xff] %v9422_v62  ;;  %v4129_v27 = vmul.f32 0.3275911, %v9416_v28 }
 0xcf0   : > { %v9390_v61 = vpop.eup %8293  ;;  %v9442_v39 = vand.u32 2147483647, %v9422_v62  ;;  %v4313_v41 = vmul.f32 %v9371_v22, %v4289_v48  ;;  %v4126_v15 = vmul.f32 0.3275911, %v9430_v49  ;;  %v4434_v62 = vsub.f32 0.0, %v9340_v32  ;;  %v9457_v48 = vld [vmem:[%s8818_s22 + $0x10] sm:$0xff] }
 0xcf1   : > { %v4218_v36 = vmul.f32 1.0614054, %v9390_v61  ;;  %v4148_v54 = vadd.f32 1.0, %v4124_v45  ;;  %v4482_v53 = vmul.f32 1.442695, %v4457_v0  ;;  %v3236_v2 = vrot.slane %v9457_v48, %v9295_v51 }
 0xcf2   : > { %v9398_v57 = vpop.eup %8295  ;;  %v4131_v5 = vmul.f32 0.3275911, %v9442_v39  ;;  %v9463_v45 = vmul.f32 0.5, %v9311_v16  ;;  %v4435_v0 = vsub.f32 0.0, %v9349_v63 }
 0xcf3   : > { %v9409_v25 = vpop.eup %8297  ;;  %v4219_v60 = vmul.f32 1.0614054, %v9398_v57  ;;  %v4242_v59 = vadd.f32 -1.4531521, %v4218_v36  ;;  %v4456_v36 = vmul.f32 %v4432_v19, %v9308_v42  ;;  %8301 = vrcp.f32 %v4148_v54 }
 0xcf4   : > { %v4221_v18 = vmul.f32 1.0614054, %v9409_v25  ;;  %v4150_v54 = vadd.f32 1.0, %v4126_v15  ;;  %v4437_v15 = vsub.f32 0.0, %v9353_v43 }
 0xcf5   : > { %v9427_v38 = vpop.eup %8299  ;;  %v4243_v7 = vadd.f32 -1.4531521, %v4219_v60  ;;  %v4266_v60 = vmul.f32 %v9390_v61, %v4242_v59  ;;  %v4153_v59 = vadd.f32 1.0, %v4129_v27  ;;  %v4480_v26 = vmul.f32 1.442695, %v4456_v36 }
 0xcf6   : > { %v4245_v19 = vadd.f32 -1.4531521, %v4221_v18  ;;  %v4223_v42 = vmul.f32 1.0614054, %v9427_v38  ;;  %v4336_v18 = vadd.f32 -0.28449672, %v4312_v47  ;;  %v4458_v47 = vmul.f32 %v4434_v62, %v9340_v32 }
 0xcf7   : > { %v4267_v1 = vmul.f32 %v9398_v57, %v4243_v7  ;;  %v4290_v52 = vadd.f32 1.4214138, %v4266_v60  ;;  %v4337_v7 = vadd.f32 -0.28449672, %v4313_v41  ;;  %8303 = vrcp.f32 %v4153_v59 }
 0xcf8   : > { %v4269_v27 = vmul.f32 %v9409_v25, %v4245_v19  ;;  %v4247_v36 = vadd.f32 -1.4531521, %v4223_v42  ;;  %8305 = vpow2.f32 %v4480_v26  ;;  %v9470_v60 = vmul.f32 0.5, %v9281_v4 }
 0xcf9   : > { %v4291_v50 = vadd.f32 1.4214138, %v4267_v1  ;;  %v4360_v16 = vmul.f32 %v9369_v11, %v4336_v18  ;;  %v4314_v41 = vmul.f32 %v9390_v61, %v4290_v52  ;;  %8307 = vpow2.f32 %v4482_v53 }
 0xcfa   : > { %v4155_v19 = vadd.f32 1.0, %v4131_v5  ;;  %v4361_v42 = vmul.f32 %v9371_v22, %v4337_v7  ;;  %v4293_v1 = vadd.f32 1.4214138, %v4269_v27  ;;  %v4271_v59 = vmul.f32 %v9427_v38, %v4247_v36 }
 0xcfb   : > { %v9478_v26 = vmul.f32 0.5, %v9322_v24  ;;  %v4315_v32 = vmul.f32 %v9398_v57, %v4291_v50  ;;  %v4459_v4 = vmul.f32 %v4435_v0, %v9349_v63  ;;  %8309 = vrcp.f32 %v4150_v54 }
 0xcfc   : > { %v10209_v62 = vmov -1.0   ;;  %v4484_v52 = vmul.f32 1.442695, %v4458_v47  ;;  %v4384_v53 = vadd.f32 0.2548296, %v4360_v16  ;;  %8311 = vrcp.f32 %v4155_v19 }
 0xcfd   : > { %v9485_v5 = vsel %vm4048_vm10, 1.0, %v10209_v62  ;;  %v4338_v18 = vadd.f32 -0.28449672, %v4314_v41  ;;  %v9490_v24 = vpop.eup %8301  ;;  %v4385_v63 = vadd.f32 0.2548296, %v4361_v42  ;;  %v4317_v50 = vmul.f32 %v9409_v25, %v4293_v1 }
 0xcfe   : > { %v4461_v7 = vmul.f32 %v4437_v15, %v9353_v43  ;;  %v4295_v6 = vadd.f32 1.4214138, %v4271_v59  ;;  %v9495_v27 = vsel %vm4050_vm11, 1.0, %v10209_v62  ;;  %v4339_v29 = vadd.f32 -0.28449672, %v4315_v32 }
 0xcff   : > { %v4486_v36 = vmul.f32 1.442695, %v4459_v4  ;;  %8313 = vpow2.f32 %v4484_v52  ;;  %v4073_v0 = vsel %vm4049_vm12, 1.0, %v10209_v62  ;;  %v9500_v37 = vsel %vm4051_vm13, 1.0, %v10209_v62 }
 0xd00   : > { %v10305_v54 = vrot.slane %v9303_v10, %v9030_v30  ;;  %v4408_v16 = vmul.f32 %v9369_v11, %v4384_v53  ;;  %v4362_v41 = vmul.f32 %v9390_v61, %v4338_v18  ;;  %v4220_v19 = vmul.f32 1.0614054, %v9490_v24 }
 0xd01   : > { %v9508_v43 = vpop.eup %8303  ;;  %v4436_v42 = vsub.f32 0.0, %v9401_v14  ;;  %v4409_v15 = vmul.f32 %v9371_v22, %v4385_v63  ;;  %v4341_v59 = vadd.f32 -0.28449672, %v4317_v50  ;;  %v4490_v32 = vmul.f32 1.442695, %v4461_v7 }
 0xd02   : > { %v9506_v47 = vadd.f32 %v9228_v12, %v10305_v54  ;;  %v8306_v1 = vpop.eup %8305  ;;  %v4319_v4 = vmul.f32 %v9427_v38, %v4295_v6  ;;  %v4363_v12 = vmul.f32 %v9398_v57, %v4339_v29  ;;  %8315 = vpow2.f32 %v4486_v36 }
 0xd03   : > { %v8308_v52 = vpop.eup %8307  ;;  %v4463_v54 = vmul.f32 %v4439_v8, %v9364_v56  ;;  %v10306_v11 = vrot.slane %v9303_v10, %v9298_v9  ;;  %v4225_v63 = vmul.f32 1.0614054, %v9508_v43  ;;  %v4528_v7 = vmul.f32 %v8306_v1, %v4408_v16 }
 0xd04   : > { %v9527_v22 = vmul.f32 0.70710677, %v9506_v47  ;;  %v4386_v6 = vadd.f32 0.2548296, %v4362_v41  ;;  %v4244_v56 = vadd.f32 -1.4531521, %v4220_v19  ;;  %v4529_v29 = vmul.f32 %v8308_v52, %v4409_v15 }
 0xd05   : > { %v9522_v53 = vadd.f32 %v9243_v33, %v10306_v11  ;;  %v9530_v50 = vpop.eup %8309  ;;  %v9536_v33 = vadd.f32 %v9258_v46, %v3236_v2  ;;  %v4365_v36 = vmul.f32 %v9409_v25, %v4341_v59  ;;  %8317 = vpow2.f32 %v4490_v32 }
 0xd06   : > { %v4343_v8 = vadd.f32 -0.28449672, %v4319_v4  ;;  %v9539_v11 = vpop.eup %8311  ;;  %v4387_v18 = vadd.f32 0.2548296, %v4363_v12  ;;  %v4494_v62 = vmul.f32 1.442695, %v4463_v54  ;;  %v10309_v16 = vrot.slane %v9303_v10, %v9278_v3 }
 0xd07   : > { %10307 = vst [vmem:[#allocation62_spill] sm:$0xff] %v9522_v53  ;;  %10308 = vst [vmem:[#allocation63_spill] sm:$0xff] %v9536_v33  ;;  %v9548_v51 = vmul.f32 0.70710677, %v9522_v53  ;;  %v4460_v46 = vmul.f32 %v4436_v42, %v9401_v14  ;;  %v4222_v2 = vmul.f32 1.0614054, %v9530_v50  ;;  %v4410_v59 = vmul.f32 %v9390_v61, %v4386_v6 }
 0xd08   : > { %v9545_v41 = vadd.f32 %v9231_v13, %v10309_v16  ;;  %v9553_v19 = vand.u32 2147483647, %v9527_v22  ;;  %v4249_v1 = vadd.f32 -1.4531521, %v4225_v63  ;;  %v4552_v15 = vsub.f32 1.0, %v4528_v7 }
 0xd09   : > { %v4268_v32 = vmul.f32 %v9490_v24, %v4244_v56  ;;  %v10311_v13 = vrot.slane %v9303_v10, %v9319_v23  ;;  %v8314_v52 = vpop.eup %8313  ;;  %v4553_v12 = vsub.f32 1.0, %v4529_v29  ;;  %v4389_v14 = vadd.f32 0.2548296, %v4365_v36 }
 0xd0a   : > { %10310 = vst [vmem:[#allocation64_spill] sm:$0xff] %v9545_v41  ;;  %v4367_v42 = vmul.f32 %v9427_v38, %v4343_v8  ;;  %v4227_v54 = vmul.f32 1.0614054, %v9539_v11  ;;  %v4411_v63 = vmul.f32 %v9398_v57, %v4387_v18  ;;  %8319 = vpow2.f32 %v4494_v62 }
 0xd0b   : > { %v9561_v4 = vadd.f32 %v9245_v34, %v10311_v13  ;;  %v9567_v61 = vmul.f32 0.70710677, %v9545_v41  ;;  %v9570_v7 = vand.u32 2147483647, %v9548_v51  ;;  %v4488_v6 = vmul.f32 1.442695, %v4460_v46 }
 0xd0c   : > { %v4246_v56 = vadd.f32 -1.4531521, %v4222_v2  ;;  %v4128_v34 = vmul.f32 0.3275911, %v9553_v19  ;;  %v4273_v29 = vmul.f32 %v9508_v43, %v4249_v1  ;;  %v8316_v36 = vpop.eup %8315  ;;  %v4576_v8 = vmul.f32 %v4552_v15, %v9485_v5 }
 0xd0d   : > { %10312 = vst [vmem:[#allocation65_spill] sm:$0xff] %v9561_v4  ;;  %v4530_v16 = vmul.f32 %v8314_v52, %v4410_v59  ;;  %v4292_v13 = vadd.f32 1.4214138, %v4268_v32  ;;  %v9576_v57 = vmul.f32 0.70710677, %v9561_v4  ;;  %v4577_v62 = vmul.f32 %v4553_v12, %v4073_v0 }
 0xd0e   : > { %v4413_v18 = vmul.f32 %v9409_v25, %v4389_v14  ;;  %v4391_v33 = vadd.f32 0.2548296, %v4367_v42  ;;  %v4251_v41 = vadd.f32 -1.4531521, %v4227_v54  ;;  %v4531_v53 = vmul.f32 %v8316_v36, %v4411_v63 }
 0xd0f   : > { %10313 = vst [vmem:[#allocation66_spill] sm:$0xff] %v9576_v57  ;;  %v10314_v46 = vmov -1.0   ;;  %v9583_v1 = vand.u32 2147483647, %v9567_v61  ;;  %v4133_v5 = vmul.f32 0.3275911, %v9570_v7  ;;  %v8318_v15 = vpop.eup %8317  ;;  %v4270_v59 = vmul.f32 %v9530_v50, %v4246_v56 }
 0xd10   : > { %v4077_v2 = vsel %vm4053_vm14, 1.0, %v10314_v46  ;;  %v4152_v32 = vadd.f32 1.0, %v4128_v34  ;;  %v4297_v52 = vadd.f32 1.4214138, %v4273_v29  ;;  %v4441_v0 = vsub.f32 0.0, %v9416_v28 }
 0xd11   : > { %v4600_v25 = vadd.f32 1.0, %v4576_v8  ;;  %v4554_v12 = vsub.f32 1.0, %v4530_v16  ;;  %v4316_v14 = vmul.f32 %v9490_v24, %v4292_v13  ;;  %v9590_v42 = vand.u32 2147483647, %v9576_v57 }
 0xd12   : > { %v4533_v17 = vmul.f32 %v8318_v15, %v4413_v18  ;;  %v4415_v54 = vmul.f32 %v9427_v38, %v4391_v33  ;;  %v4275_v63 = vmul.f32 %v9539_v11, %v4251_v41  ;;  %v4601_v36 = vadd.f32 1.0, %v4577_v62 }
 0xd13   : > { %v4555_v4 = vsub.f32 1.0, %v4531_v53  ;;  %v10315_v56 = vsub.f32 0.0, %v9430_v49  ;;  %v4130_v29 = vmul.f32 0.3275911, %v9583_v1  ;;  %v4157_v8 = vadd.f32 1.0, %v4133_v5 }
 0xd14   : > { %v4294_v16 = vadd.f32 1.4214138, %v4270_v59  ;;  %8321 = vrcp.f32 %v4152_v32  ;;  %v4321_v13 = vmul.f32 %v9508_v43, %v4297_v52  ;;  %v4465_v57 = vmul.f32 %v4441_v0, %v9416_v28  ;;  %v8320_v18 = vpop.eup %8319 }
 0xd15   : > { %v4462_v34 = vmul.f32 %v10315_v56, %v9430_v49  ;;  %v4624_v38 = vmul.f32 %v4600_v25, %v9451_v21  ;;  %v4578_v33 = vmul.f32 %v4554_v12, %v9495_v27  ;;  %v4340_v41 = vadd.f32 -0.28449672, %v4316_v14  ;;  %v8113_v14 = vld [vmem:[%s8823_s15 + $0x100] sm:$0xff]  }
 0xd16   : > { %v4135_v53 = vmul.f32 0.3275911, %v9590_v42  ;;  %v4557_v62 = vsub.f32 1.0, %v4533_v17  ;;  %v4535_v15 = vmul.f32 %v8320_v18, %v4415_v54  ;;  %v4299_v49 = vadd.f32 1.4214138, %v4275_v63  ;;  %v8115_v63 = vld [vmem:[%s8823_s15 + $0x148] sm:$0xff]  }
 0xd17   : > { %v4625_v56 = vmul.f32 %v4601_v36, %v9470_v60  ;;  %v4579_v5 = vmul.f32 %v4555_v4, %v9500_v37  ;;  %v4154_v59 = vadd.f32 1.0, %v4130_v29  ;;  %v4443_v32 = vsub.f32 0.0, %v9442_v39 }
 0xd18   : > { %8323 = vrcp.f32 %v4157_v8  ;;  %v4345_v28 = vadd.f32 -0.28449672, %v4321_v13  ;;  %v4498_v21 = vmul.f32 1.442695, %v4465_v57  ;;  %v4602_v27 = vadd.f32 1.0, %v4578_v33 }
 0xd19   : > { %8325 = vpow2.f32 %v4488_v6  ;;  %v4364_v52 = vmul.f32 %v9490_v24, %v4340_v41  ;;  %v4318_v0 = vmul.f32 %v9530_v50, %v4294_v16  ;;  %v4159_v25 = vadd.f32 1.0, %v4135_v53  ;;  %v8119_v53 = vld [vmem:[%s8823_s15 + $0x150] sm:$0xff]  }
 0xd1a   : > { %v4581_v60 = vmul.f32 %v4557_v62, %v4077_v2  ;;  %v4559_v12 = vsub.f32 1.0, %v4535_v15  ;;  %v4323_v37 = vmul.f32 %v9539_v11, %v4299_v49  ;;  %v4649_v4 = vpack.c.bf16 %v4625_v56, %v4625_v56  ;;  %v8114_v56 = vld [vmem:[%s8823_s15 + $0x180] sm:$0xff]  }
 0xd1b   : > { %v4648_v17 = vpack.c.bf16 %v4624_v38, %v4624_v38  ;;  %8327 = vrcp.f32 %v4154_v59  ;;  %v4467_v6 = vmul.f32 %v4443_v32, %v9442_v39  ;;  %v4603_v54 = vadd.f32 1.0, %v4579_v5 }
 0xd1c   : > { %v4492_v57 = vmul.f32 1.442695, %v4462_v34  ;;  %v4079_v36 = vsel %vm4055_vm15, 1.0, %v10314_v46  ;;  %v4369_v29 = vmul.f32 %v9508_v43, %v4345_v28  ;;  %8329 = vpow2.f32 %v4498_v21  ;;  %6247 = vmatprep.mubr.bf16.mxu0 %v4649_v4 }
 0xd1d   : > { %v4626_v2 = vmul.f32 %v4602_v27, %v9463_v45  ;;  %v4388_v8 = vadd.f32 0.2548296, %v4364_v52  ;;  %v4342_v16 = vadd.f32 -0.28449672, %v4318_v0  ;;  %8331 = vrcp.f32 %v4159_v25  ;;  %6248 = vmatmul.mubr.bf16.vlgmr.msra.gmra.mrb[72].mxu0 %v4648_v17  ;;  %v8121_v0 = vld [vmem:[%s8823_s15 + $0x110] sm:$0xff]  }
 0xd1e   : > { %v9618_v39 = vpop.eup %8321  ;;  %v4583_v13 = vmul.f32 %v4559_v12, %v4079_v36  ;;  %v4347_v34 = vadd.f32 -0.28449672, %v4323_v37  ;;  %v4627_v18 = vmul.f32 %v4603_v54, %v9478_v26  ;;  %7505 = vmatpush3.bf16.msra.mxu0 %v8113_v14  ;;  %v4605_v38 = vadd.f32 1.0, %v4581_v60  ;;  %v8123_v60 = vld [vmem:[%s8823_s15 + $0x158] sm:$0xff]   ;;  %v10317_v17 = vld [vmem:[#allocation56_spill] sm:$0xff] }
 0xd1f   : > { %v4005_v33 = vmul.f32 0.5, %v9332_v35  ;;  %v4502_v41 = vmul.f32 1.442695, %v4467_v6  ;;  %v3216_v45 = vrot.slane %v9457_v48, %v9268_v58  ;;  %7506 = vmatprep.subr.bf16.mxu0 %v8115_v63  ;;  %8333 = vpow2.f32 %v4492_v57  ;;  %v8116_v58 = vld [vmem:[%s8823_s15 + $0x1c8] sm:$0xff]   ;;  %v8120_v57 = vld [vmem:[%s8823_s15 + $0x1d0] sm:$0xff]   ;;  %v8125_v36 = vld [vmem:[%s8823_s15 + $0x118] sm:$0xff]  }
 0xd20   : > { %v4007_v62 = vmul.f32 0.5, %v9346_v40  ;;  %v4393_v15 = vadd.f32 0.2548296, %v4369_v29  ;;  %v4651_v49 = vpack.c.bf16 %v4627_v18, %v4627_v18  ;;  %v4650_v5 = vpack.c.bf16 %v4626_v2, %v4626_v2  ;;  %v10318_v54 = vld [vmem:[#allocation52_spill] sm:$0xff] }
 0xd21   : > { %v4412_v59 = vmul.f32 %v9490_v24, %v4388_v8  ;;  %v4366_v35 = vmul.f32 %v9530_v50, %v4342_v16  ;;  %v4224_v32 = vmul.f32 1.0614054, %v9618_v39  ;;  %v4371_v21 = vmul.f32 %v9539_v11, %v4347_v34  ;;  %v10319_v34 = vld [vmem:[#allocation54_spill] sm:$0xff] }
 0xd22   : > { %v9628_v26 = vpop.eup %8323  ;;  %v10316_v40 = vrot.slane %v9303_v10, %v9360_v55  ;;  %6287 = vmatprep.mubr.bf16.mxu1 %v4651_v49  ;;  %7507 = vmatpush3.bf16.msra.mxu0 %v8117_v44  ;;  %v4629_v52 = vmul.f32 %v4605_v38, %v4005_v33  ;;  %v4607_v24 = vadd.f32 1.0, %v4583_v13  ;;  %8335 = vpow2.f32 %v4502_v41  ;;  %v8127_v38 = vld [vmem:[%s8823_s15 + $0x160] sm:$0xff]   ;;  %v10320_v41 = vld [vmem:[#allocation60_spill] sm:$0xff] }
 0xd23   : > { %v8326_v28 = vpop.eup %8325  ;;  %v9643_v25 = vadd.f32 %v9252_v20, %v3216_v45  ;;  %6288 = vmatmul.mubr.bf16.vlgmr.msra.gmra.mrb[72].mxu1 %v4650_v5  ;;  %7508 = vmatprep.subr.bf16.mxu0 %v8119_v53  ;;  %v4417_v12 = vmul.f32 %v9508_v43, %v4393_v15  ;;  %v4229_v10 = vmul.f32 1.0614054, %v9628_v26  ;;  %vm4052_vm0 = vcmp.ge.f32.partialorder %v10317_v17, 0.0  ;;  %v10321_v5 = vld [vmem:[#allocation48_spill] sm:$0xff] }
 0xd24   : > { %v9639_v27 = vadd.f32 %v9241_v31, %v10316_v40  ;;  %7527 = vmatpush3.bf16.msra.mxu1 %v8114_v56  ;;  %v8118_v31 = vld [vmem:[%s8823_s15 + $0x188] sm:$0xff]   ;;  %v4653_v37 = vpack.c.bf16 %v4629_v52, %v4629_v52  ;;  %v4631_v4 = vmul.f32 %v4607_v24, %v4007_v62  ;;  %v4532_v6 = vmul.f32 %v8326_v28, %v4412_v59  ;;  %v8122_v62 = vld [vmem:[%s8823_s15 + $0x190] sm:$0xff]  }
 0xd25   : > { %v9649_v14 = vpop.eup %8327  ;;  %v4390_v20 = vadd.f32 0.2548296, %v4366_v35  ;;  %v3224_v63 = vrot.slane %v9457_v48, %v10318_v54  ;;  %7528 = vmatprep.subr.bf16.mxu1 %v8116_v58  ;;  %v4248_v29 = vadd.f32 -1.4531521, %v4224_v32  ;;  %v4395_v2 = vadd.f32 0.2548296, %v4371_v21 }
 0xd26   : > { %v8330_v43 = vpop.eup %8329  ;;  %v9657_v8 = vmul.f32 0.70710677, %v9639_v27  ;;  %6327 = vmatprep.mubr.bf16.mxu0 %v4653_v37  ;;  %v4655_v16 = vpack.c.bf16 %v4631_v4, %v4631_v4  ;;  %7509 = vmatpush3.bf16.msra.mxu0 %v8121_v0  ;;  %v9662_v18 = vmul.f32 0.5, %v10319_v34  ;;  %v9665_v44 = vmul.f32 0.70710677, %v9643_v25  ;;  %v8124_v35 = vld [vmem:[%s8823_s15 + $0x1d8] sm:$0xff]  }
 0xd27   : > { %v9659_v13 = vpop.eup %8331  ;;  %7510 = vmatprep.subr.bf16.mxu0 %v8123_v60  ;;  %v4076_v33 = vsel %vm4052_vm0, 1.0, %v10314_v46  ;;  %vm4054_vm1 = vcmp.ge.f32.partialorder %v10320_v41, 0.0  ;;  %v4537_v45 = vmul.f32 %v8330_v43, %v4417_v12  ;;  %v4253_v53 = vadd.f32 -1.4531521, %v4229_v10  ;;  %v10322_v24 = vld [vmem:[#allocation53_spill] sm:$0xff]  ;;  %v8131_v12 = vld [vmem:[%s8823_s15 + $0x168] sm:$0xff]  }
 0xd28   : > { %7529 = vmatpush3.bf16.msra.mxu1 %v8118_v31  ;;  %6367 = vmatprep.mubr.bf16.mxu1 %v4655_v16  ;;  %v4556_v15 = vsub.f32 1.0, %v4532_v6  ;;  %v4414_v49 = vmul.f32 %v9530_v50, %v4390_v20  ;;  %v4226_v56 = vmul.f32 1.0614054, %v9649_v14  ;;  %v9676_v59 = vadd.f32 %v10321_v5, %v3224_v63  ;;  %v8129_v50 = vld [vmem:[%s8823_s15 + $0x120] sm:$0xff]   ;;  %v8126_v4 = vld [vmem:[%s8823_s15 + $0x198] sm:$0xff]  }
 0xd29   : > { %7530 = vmatprep.subr.bf16.mxu1 %v8120_v57  ;;  %v8334_v32 = vpop.eup %8333  ;;  %v4272_v58 = vmul.f32 %v9618_v39, %v4248_v29  ;;  %v4419_v28 = vmul.f32 %v9539_v11, %v4395_v2  ;;  %v9682_v21 = vand.u32 2147483647, %v9657_v8  ;;  %v4231_v40 = vmul.f32 1.0614054, %v9659_v13  ;;  %v10323_v10 = vld [vmem:[#allocation58_spill] sm:$0xff] }
 0xd2a   : > { %7511 = vmatpush3.bf16.msra.mxu0 %v8125_v36  ;;  %v4440_v52 = vsub.f32 0.0, %v9553_v19  ;;  %v9688_v0 = vmul.f32 0.70710677, %v10322_v24  ;;  %v9691_v60 = vand.u32 2147483647, %v9665_v44  ;;  %v4078_v11 = vsel %vm4054_vm1, 1.0, %v10314_v46 }
 0xd2b   : > { %7512 = vmatprep.subr.bf16.mxu0 %v8127_v38  ;;  %vm4057_vm2 = vcmp.ge.f32.partialorder %v10323_v10, 0.0  ;;  %v4561_v31 = vsub.f32 1.0, %v4537_v45  ;;  %v4277_v37 = vmul.f32 %v9628_v26, %v4253_v53  ;;  %v4580_v6 = vmul.f32 %v4556_v15, %v4076_v33  ;;  %v8128_v57 = vld [vmem:[%s8823_s15 + $0x1e0] sm:$0xff]   ;;  %v8133_v36 = vld [vmem:[%s8823_s15 + $0x128] sm:$0xff]   ;;  %v8135_v45 = vld [vmem:[%s8823_s15 + $0x170] sm:$0xff]  }
 0xd2c   : > { %7531 = vmatpush3.bf16.msra.mxu1 %v8122_v62  ;;  %v8336_v17 = vpop.eup %8335  ;;  %v4534_v20 = vmul.f32 %v8334_v32, %v4414_v49  ;;  %v4250_v54 = vadd.f32 -1.4531521, %v4226_v56  ;;  %v9701_v63 = vmul.f32 0.70710677, %v9676_v59  ;;  %v4296_v43 = vadd.f32 1.4214138, %v4272_v58 }
 0xd2d   : > { %7532 = vmatprep.subr.bf16.mxu1 %v8124_v35  ;;  %v4539_v29 = vmul.f32 %v8336_v17, %v4419_v28  ;;  %v4132_v2 = vmul.f32 0.3275911, %v9682_v21  ;;  %v4255_v16 = vadd.f32 -1.4531521, %v4231_v40  ;;  %v4464_v34 = vmul.f32 %v4440_v52, %v9553_v19  ;;  %v10324_v53 = vld [vmem:[#allocation55_spill] sm:$0xff]  ;;  %v10325_v32 = vld [vmem:[#allocation61_spill] sm:$0xff] }
 0xd2e   : > { %7513 = vmatpush3.bf16.msra.mxu0 %v8129_v50  ;;  %v4081_v38 = vsel %vm4057_vm2, 1.0, %v10314_v46  ;;  %v9711_v33 = vand.u32 2147483647, %v9688_v0  ;;  %v4137_v41 = vmul.f32 0.3275911, %v9691_v60  ;;  %v4009_v62 = vmul.f32 0.5, %v10324_v53 }
 0xd2f   : > { %7514 = vmatprep.subr.bf16.mxu0 %v8131_v12  ;;  %v4585_v15 = vmul.f32 %v4561_v31, %v4081_v38  ;;  %v4301_v49 = vadd.f32 1.4214138, %v4277_v37  ;;  %v4445_v19 = vsub.f32 0.0, %v9570_v7  ;;  %v8130_v56 = vld [vmem:[%s8823_s15 + $0x1a0] sm:$0xff]   ;;  %v4558_v5 = vsub.f32 1.0, %v4534_v20  ;;  %v8132_v28 = vld [vmem:[%s8823_s15 + $0x1e8] sm:$0xff]  }
 0xd30   : > { %7533 = vmatpush3.bf16.msra.mxu1 %v8126_v4  ;;  %v4274_v35 = vmul.f32 %v9649_v14, %v4250_v54  ;;  %vm4059_vm3 = vcmp.ge.f32.partialorder %v10325_v32, 0.0  ;;  %v9721_v58 = vand.u32 2147483647, %v9701_v63  ;;  %v4320_v40 = vmul.f32 %v9618_v39, %v4296_v43  ;;  %v8137_v10 = vld [vmem:[%s8823_s15 + $0x130] sm:$0xff]   ;;  %v8139_v31 = vld [vmem:[%s8823_s15 + $0x178] sm:$0xff]  }
 0xd31   : > { %7534 = vmatprep.subr.bf16.mxu1 %v8128_v57  ;;  %v4563_v50 = vsub.f32 1.0, %v4539_v29  ;;  %v4156_v52 = vadd.f32 1.0, %v4132_v2  ;;  %v4279_v12 = vmul.f32 %v9659_v13, %v4255_v16  ;;  %v4604_v37 = vadd.f32 1.0, %v4580_v6  ;;  %v8134_v29 = vld [vmem:[%s8823_s15 + $0x1a8] sm:$0xff]   ;;  %v8136_v38 = vld [vmem:[%s8823_s15 + $0x1f0] sm:$0xff]  }
 0xd32   : > { %7515 = vmatpush3.bf16.msra.mxu0 %v8133_v36  ;;  %v4496_v4 = vmul.f32 1.442695, %v4464_v34  ;;  %v4134_v17 = vmul.f32 0.3275911, %v9711_v33  ;;  %v4161_v20 = vadd.f32 1.0, %v4137_v41  ;;  %v4442_v54 = vsub.f32 0.0, %v9583_v1 }
 0xd33   : > { %7516 = vmatprep.subr.bf16.mxu0 %v8135_v45  ;;  %v4325_v57 = vmul.f32 %v9628_v26, %v4301_v49  ;;  %v4469_v43 = vmul.f32 %v4445_v19, %v9570_v7  ;;  %v4609_v2 = vadd.f32 1.0, %v4585_v15  ;;  %v4582_v36 = vmul.f32 %v4558_v5, %v4078_v11  ;;  %v8141_v7 = vld [vmem:[%s8823_s15 + $0x138] sm:$0xff]   ;;  %v8143_v19 = vld [vmem:[%s8823_s15 + $0x240] sm:$0xff]  }
 0xd34   : > { %7535 = vmatpush3.bf16.msra.mxu1 %v8130_v56  ;;  %v4298_v16 = vadd.f32 1.4214138, %v4274_v35  ;;  %v4083_v6 = vsel %vm4059_vm3, 1.0, %v10314_v46  ;;  %v4139_v34 = vmul.f32 0.3275911, %v9721_v58  ;;  %8337 = vrcp.f32 %v4156_v52  ;;  %v8138_v35 = vld [vmem:[%s8823_s15 + $0x1b0] sm:$0xff]  }
 0xd35   : > { %7536 = vmatprep.subr.bf16.mxu1 %v8132_v28  ;;  %v4344_v41 = vadd.f32 -0.28449672, %v4320_v40  ;;  %v4587_v45 = vmul.f32 %v4563_v50, %v4083_v6  ;;  %v4303_v53 = vadd.f32 1.4214138, %v4279_v12  ;;  %v4628_v15 = vmul.f32 %v4604_v37, %v9662_v18  ;;  %v8140_v52 = vld [vmem:[%s8823_s15 + $0x1f8] sm:$0xff]  }
 0xd36   : > { %7517 = vmatpush3.bf16.msra.mxu0 %v8137_v10  ;;  %v4158_v11 = vadd.f32 1.0, %v4134_v17  ;;  %v4447_v49 = vsub.f32 0.0, %v9590_v42  ;;  %8339 = vrcp.f32 %v4161_v20  ;;  %v4349_v56 = vadd.f32 -0.28449672, %v4325_v57 }
 0xd37   : > { %7518 = vmatprep.subr.bf16.mxu0 %v8139_v31  ;;  %v4506_v5 = vmul.f32 1.442695, %v4469_v43  ;;  %v4633_v32 = vmul.f32 %v4609_v2, %v4009_v62  ;;  %v4606_v28 = vadd.f32 1.0, %v4582_v36  ;;  %v4322_v40 = vmul.f32 %v9649_v14, %v4298_v16  ;;  %v8145_v31 = vld [vmem:[%s8823_s15 + $0x200] sm:$0xff]   ;;  %v10326_v62 = vld [vmem:[#allocation57_spill] sm:$0xff] }
 0xd38   : > { %7537 = vmatpush3.bf16.msra.mxu1 %v8134_v29  ;;  %v4466_v50 = vmul.f32 %v4442_v54, %v9583_v1  ;;  %v4163_v18 = vadd.f32 1.0, %v4139_v34  ;;  %v4368_v12 = vmul.f32 %v9618_v39, %v4344_v41  ;;  %8341 = vpow2.f32 %v4496_v4  ;;  %v8147_v1 = vld [vmem:[%s8823_s15 + $0x248] sm:$0xff]   ;;  %v8142_v4 = vld [vmem:[%s8823_s15 + $0x1b8] sm:$0xff]  }
 0xd39   : > { %7538 = vmatprep.subr.bf16.mxu1 %v8136_v38  ;;  %v4327_v10 = vmul.f32 %v9659_v13, %v4303_v53  ;;  %v4611_v37 = vadd.f32 1.0, %v4587_v45  ;;  %v4652_v17 = vpack.c.bf16 %v4628_v15, %v4628_v15  ;;  %v4006_v20 = vmul.f32 0.5, %v10326_v62  ;;  %v10327_v54 = vld [vmem:[#allocation59_spill] sm:$0xff] }
 0xd3a   : > { %7519 = vmatpush3.bf16.msra.mxu0 %v8141_v7  ;;  %8343 = vrcp.f32 %v4158_v11  ;;  %v4471_v57 = vmul.f32 %v4447_v49, %v9590_v42  ;;  %v4011_v43 = vmul.f32 0.5, %v10327_v54  ;;  %v4373_v29 = vmul.f32 %v9628_v26, %v4349_v56  ;;  %v8144_v42 = vld [vmem:[%s8823_s15 + $0x2c0] sm:$0xff]   ;;  %v8149_v53 = vld [vmem:[%s8823_s15 + $0x208] sm:$0xff]   ;;  %v8151_v11 = vld [vmem:[%s8823_s15 + $0x250] sm:$0xff]  }
 0xd3b   : > { %7548 = vmatprep.subr.bf16.mxu0 %v8143_v19  ;;  %8345 = vpow2.f32 %v4506_v5  ;;  %v4657_v2 = vpack.c.bf16 %v4633_v32, %v4633_v32  ;;  %v4630_v36 = vmul.f32 %v4606_v28, %v4006_v20  ;;  %v4346_v16 = vadd.f32 -0.28449672, %v4322_v40  ;;  %v8146_v56 = vld [vmem:[%s8823_s15 + $0x280] sm:$0xff]   ;;  %v8148_v28 = vld [vmem:[%s8823_s15 + $0x2c8] sm:$0xff]  }
 0xd3c   : > { %7539 = vmatpush3.bf16.msra.mxu1 %v8138_v35  ;;  %v4500_v6 = vmul.f32 1.442695, %v4466_v50  ;;  %8347 = vrcp.f32 %v4163_v18  ;;  %v4392_v34 = vadd.f32 0.2548296, %v4368_v12  ;;  %v4351_v38 = vadd.f32 -0.28449672, %v4327_v10 }
 0xd3d   : > { %7540 = vmatprep.subr.bf16.mxu1 %v8140_v52  ;;  %6328 = vmatmul.mubr.bf16.vlgmr.msra.gmra.mrb[76].mxu0 %v4652_v17  ;;  %v3212_v41 = vrot.slane %v9457_v48, %v9030_v30  ;;  %v4635_v45 = vmul.f32 %v4611_v37, %v4011_v43  ;;  %v4510_v7 = vmul.f32 1.442695, %v4471_v57  ;;  %v3232_v15 = vrot.slane %v9457_v48, %v9298_v9  ;;  %v10328_v50 = vld [vmem:[#allocation46_spill] sm:$0xff]  ;;  %v8153_v12 = vld [vmem:[%s8823_s15 + $0x210] sm:$0xff]  }
 0xd3e   : > { %7549 = vmatpush3.bf16.msra.mxu0 %v8145_v31  ;;  %6407 = vmatprep.mubr.bf16.mxu0 %v4657_v2  ;;  %v9762_v49 = vpop.eup %8337  ;;  %v4397_v19 = vadd.f32 0.2548296, %v4373_v29  ;;  %v4654_v35 = vpack.c.bf16 %v4630_v36, %v4630_v36  ;;  %v4370_v32 = vmul.f32 %v9649_v14, %v4346_v16  ;;  %8349 = vpow2.f32 %v4500_v6  ;;  %v10329_v37 = vld [vmem:[#allocation50_spill] sm:$0xff]  ;;  %v8152_v29 = vld [vmem:[%s8823_s15 + $0x2d0] sm:$0xff]  }
 0xd3f   : > { %7550 = vmatprep.subr.bf16.mxu0 %v8147_v1  ;;  %v4416_v40 = vmul.f32 %v9618_v39, %v4392_v34  ;;  %v4375_v9 = vmul.f32 %v9659_v13, %v4351_v38  ;;  %v9772_v18 = vadd.f32 %v10328_v50, %v3212_v41  ;;  %v4659_v52 = vpack.c.bf16 %v4635_v45, %v4635_v45  ;;  %v8155_v39 = vld [vmem:[%s8823_s15 + $0x258] sm:$0xff]   ;;  %v8150_v1 = vld [vmem:[%s8823_s15 + $0x288] sm:$0xff]   ;;  %v8159_v38 = vld [vmem:[%s8823_s15 + $0x260] sm:$0xff]  }
 0xd40   : > { %7541 = vmatpush3.bf16.msra.mxu1 %v8142_v4  ;;  %v9765_v5 = vpop.eup %8339  ;;  %v4228_v10 = vmul.f32 1.0614054, %v9762_v49  ;;  %8351 = vpow2.f32 %v4510_v7  ;;  %v3220_v31 = vrot.slane %v9457_v48, %v9278_v3  ;;  %v9779_v17 = vadd.f32 %v10329_v37, %v3232_v15  ;;  %v8157_v6 = vld [vmem:[%s8823_s15 + $0x218] sm:$0xff]   ;;  %v8154_v7 = vld [vmem:[%s8823_s15 + $0x290] sm:$0xff]  }
 0xd41   : > { %7570 = vmatprep.subr.bf16.mxu1 %v8144_v42  ;;  %v4421_v20 = vmul.f32 %v9628_v26, %v4397_v19  ;;  %v4233_v57 = vmul.f32 1.0614054, %v9765_v5  ;;  %v4394_v43 = vadd.f32 0.2548296, %v4370_v32  ;;  %v3240_v3 = vrot.slane %v9457_v48, %v9319_v23  ;;  %v10330_v48 = vld [vmem:[#allocation47_spill] sm:$0xff] }
 0xd42   : > { %7551 = vmatpush3.bf16.msra.mxu0 %v8149_v53  ;;  %v8342_v62 = vpop.eup %8341  ;;  %v9791_v2 = vmul.f32 0.5, %v9506_v47  ;;  %v4399_v36 = vadd.f32 0.2548296, %v4375_v9  ;;  %v9794_v16 = vmul.f32 0.70710677, %v9772_v18  ;;  %vm4056_vm4 = vcmp.ge.f32.partialorder %v9527_v22, 0.0 }
 0xd43   : > { %6368 = vmatmul.mubr.bf16.vlgmr.msra.gmra.mrb[76].mxu1 %v4654_v35  ;;  %7552 = vmatprep.subr.bf16.mxu0 %v8151_v11  ;;  %v4536_v26 = vmul.f32 %v8342_v62, %v4416_v40  ;;  %v4252_v23 = vadd.f32 -1.4531521, %v4228_v10  ;;  %v9801_v34 = vadd.f32 %v10330_v48, %v3220_v31  ;;  %v9804_v47 = vmul.f32 0.70710677, %v9779_v17  ;;  %v10331_v19 = vld [vmem:[#allocation51_spill] sm:$0xff]  ;;  %v8156_v35 = vld [vmem:[%s8823_s15 + $0x2d8] sm:$0xff]  }
 0xd44   : > { %7571 = vmatpush3.bf16.msra.mxu1 %v8146_v56  ;;  %6447 = vmatprep.mubr.bf16.mxu1 %v4659_v52  ;;  %v9785_v54 = vpop.eup %8343  ;;  %vm4058_vm5 = vcmp.ge.f32.partialorder %v9567_v61, 0.0  ;;  %v4444_v41 = vsub.f32 0.0, %v9682_v21  ;;  %v4257_v53 = vadd.f32 -1.4531521, %v4233_v57  ;;  %v4418_v15 = vmul.f32 %v9649_v14, %v4394_v43  ;;  %v8161_v14 = vld [vmem:[%s8823_s15 + $0x220] sm:$0xff]   ;;  %v8163_v31 = vld [vmem:[%s8823_s15 + $0x268] sm:$0xff]  }
 0xd45   : > { %7572 = vmatprep.subr.bf16.mxu1 %v8148_v28  ;;  %v8346_v4 = vpop.eup %8345  ;;  %v4230_v11 = vmul.f32 1.0614054, %v9785_v54  ;;  %vm4061_vm6 = vcmp.ge.f32.partialorder %v9548_v51, 0.0  ;;  %v9814_v56 = vadd.f32 %v10331_v19, %v3240_v3  ;;  %v4560_v32 = vsub.f32 1.0, %v4536_v26  ;;  %v8160_v61 = vld [vmem:[%s8823_s15 + $0x2e0] sm:$0xff]  }
 0xd46   : > { %7553 = vmatpush3.bf16.msra.mxu0 %v8153_v12  ;;  %v9797_v42 = vpop.eup %8347  ;;  %v4541_v45 = vmul.f32 %v8346_v4, %v4421_v20  ;;  %v4423_v28 = vmul.f32 %v9659_v13, %v4399_v36  ;;  %v9819_v40 = vand.u32 2147483647, %v9794_v16  ;;  %v4080_v52 = vsel %vm4056_vm4, 1.0, %v10314_v46  ;;  %v8158_v20 = vld [vmem:[%s8823_s15 + $0x298] sm:$0xff]  }
 0xd47   : > { %7554 = vmatprep.subr.bf16.mxu0 %v8155_v39  ;;  %v4235_v9 = vmul.f32 1.0614054, %v9797_v42  ;;  %v4276_v12 = vmul.f32 %v9762_v49, %v4252_v23  ;;  %v9828_v10 = vmul.f32 0.70710677, %v9801_v34  ;;  %v9831_v13 = vand.u32 2147483647, %v9804_v47 }
 0xd48   : > { %7573 = vmatpush3.bf16.msra.mxu1 %v8150_v1  ;;  %v8350_v50 = vpop.eup %8349  ;;  %v4082_v37 = vsel %vm4058_vm5, 1.0, %v10314_v46  ;;  %v4468_v39 = vmul.f32 %v4444_v41, %v9682_v21  ;;  %v4565_v62 = vsub.f32 1.0, %v4541_v45  ;;  %v4281_v22 = vmul.f32 %v9765_v5, %v4257_v53  ;;  %v8167_v23 = vld [vmem:[%s8823_s15 + $0x270] sm:$0xff]  }
 0xd49   : > { %7574 = vmatprep.subr.bf16.mxu1 %v8152_v29  ;;  %v4538_v1 = vmul.f32 %v8350_v50, %v4418_v15  ;;  %v4254_v43 = vadd.f32 -1.4531521, %v4230_v11  ;;  %v4085_v3 = vsel %vm4061_vm6, 1.0, %v10314_v46  ;;  %v9844_v29 = vmul.f32 0.70710677, %v9814_v56  ;;  %v8162_v15 = vld [vmem:[%s8823_s15 + $0x2a0] sm:$0xff]  }
 0xd4a   : > { %7555 = vmatpush3.bf16.msra.mxu0 %v8157_v6  ;;  %v8352_v57 = vpop.eup %8351  ;;  %v4584_v21 = vmul.f32 %v4560_v32, %v4080_v52  ;;  %v4136_v26 = vmul.f32 0.3275911, %v9819_v40  ;;  %v4259_v36 = vadd.f32 -1.4531521, %v4235_v9  ;;  %v8165_v6 = vld [vmem:[%s8823_s15 + $0x228] sm:$0xff]   ;;  %v4589_v45 = vmul.f32 %v4565_v62, %v4085_v3 }
 0xd4b   : > { %7556 = vmatprep.subr.bf16.mxu0 %v8159_v38  ;;  %v4543_v4 = vmul.f32 %v8352_v57, %v4423_v28  ;;  %v4300_v48 = vadd.f32 1.4214138, %v4276_v12  ;;  %v9851_v38 = vand.u32 2147483647, %v9828_v10  ;;  %v4141_v51 = vmul.f32 0.3275911, %v9831_v13 }
 0xd4c   : > { %7575 = vmatpush3.bf16.msra.mxu1 %v8154_v7  ;;  %v4504_v41 = vmul.f32 1.442695, %v4468_v39  ;;  %v4305_v53 = vadd.f32 1.4214138, %v4281_v22  ;;  %v4449_v7 = vsub.f32 0.0, %v9691_v60  ;;  %v4562_v11 = vsub.f32 1.0, %v4538_v1 }
 0xd4d   : > { %7576 = vmatprep.subr.bf16.mxu1 %v8156_v35  ;;  %v4278_v19 = vmul.f32 %v9785_v54, %v4254_v43  ;;  %v10332_v35 = vld [vmem:[#allocation66_spill] sm:$0xff]  ;;  %v9859_v32 = vand.u32 2147483647, %v9844_v29  ;;  %v8164_v28 = vld [vmem:[%s8823_s15 + $0x2e8] sm:$0xff]   ;;  %v4608_v9 = vadd.f32 1.0, %v4584_v21  ;;  %v4160_v50 = vadd.f32 1.0, %v4136_v26 }
 0xd4e   : > { %7557 = vmatpush3.bf16.msra.mxu0 %v8161_v14  ;;  %vm4063_vm8 = vcmp.ge.f32.partialorder %v10332_v35, 0.0  ;;  %v4567_v14 = vsub.f32 1.0, %v4543_v4  ;;  %v4283_v52 = vmul.f32 %v9797_v42, %v4259_v36  ;;  %v8169_v12 = vld [vmem:[%s8823_s15 + $0x230] sm:$0xff]   ;;  %v10333_v39 = vld [vmem:[#allocation62_spill] sm:$0xff]  ;;  %v4138_v22 = vmul.f32 0.3275911, %v9851_v38 }
 0xd4f   : > { %7558 = vmatprep.subr.bf16.mxu0 %v8163_v31  ;;  %v4324_v31 = vmul.f32 %v9762_v49, %v4300_v48  ;;  %v4013_v62 = vmul.f32 0.5, %v10333_v39  ;;  %v8171_v57 = vld [vmem:[%s8823_s15 + $0x278] sm:$0xff]   ;;  %v4446_v1 = vsub.f32 0.0, %v9711_v33  ;;  %v4329_v43 = vmul.f32 %v9765_v5, %v4305_v53  ;;  %v8170_v35 = vld [vmem:[%s8823_s15 + $0x2b0] sm:$0xff]  }
 0xd50   : > { %7577 = vmatpush3.bf16.msra.mxu1 %v8158_v20  ;;  %v4165_v20 = vadd.f32 1.0, %v4141_v51  ;;  %v4473_v3 = vmul.f32 %v4449_v7, %v9691_v60  ;;  %v4613_v21 = vadd.f32 1.0, %v4589_v45  ;;  %v4586_v4 = vmul.f32 %v4562_v11, %v4082_v37  ;;  %v8173_v53 = vld [vmem:[%s8823_s15 + $0x238] sm:$0xff]  }
 0xd51   : > { %7578 = vmatprep.subr.bf16.mxu1 %v8160_v61  ;;  %v8166_v61 = vld [vmem:[%s8823_s15 + $0x2a8] sm:$0xff]   ;;  %v4302_v26 = vadd.f32 1.4214138, %v4278_v19  ;;  %v4087_v36 = vsel %vm4063_vm8, 1.0, %v10314_v46  ;;  %v4632_v48 = vmul.f32 %v4608_v9, %v9791_v2  ;;  %8353 = vrcp.f32 %v4160_v50 }
 0xd52   : > { %7559 = vmatpush3.bf16.msra.mxu0 %v8165_v6  ;;  %v4143_v6 = vmul.f32 0.3275911, %v9859_v32  ;;  %v4591_v51 = vmul.f32 %v4567_v14, %v4087_v36  ;;  %v4307_v60 = vadd.f32 1.4214138, %v4283_v52  ;;  %v4348_v45 = vadd.f32 -0.28449672, %v4324_v31 }
 0xd53   : > { %7560 = vmatprep.subr.bf16.mxu0 %v8167_v23  ;;  %v8168_v23 = vld [vmem:[%s8823_s15 + $0x2f0] sm:$0xff]   ;;  %v4162_v37 = vadd.f32 1.0, %v4138_v22  ;;  %v4451_v7 = vsub.f32 0.0, %v9721_v58  ;;  %8355 = vrcp.f32 %v4165_v20  ;;  %v4353_v11 = vadd.f32 -0.28449672, %v4329_v43  ;;  %v8177_v22 = vld [vmem:[%s8823_s15 + $0x300] sm:$0xff]  }
 0xd54   : > { %7579 = vmatpush3.bf16.msra.mxu1 %v8162_v15  ;;  %v8175_v15 = vld [vmem:[%s8823_s15 + $0x340] sm:$0xff]   ;;  %v4514_v19 = vmul.f32 1.442695, %v4473_v3  ;;  %v10334_v2 = vld [vmem:[#allocation64_spill] sm:$0xff]  ;;  %v4610_v14 = vadd.f32 1.0, %v4586_v4  ;;  %v4326_v50 = vmul.f32 %v9785_v54, %v4302_v26  ;;  %v4167_v52 = vadd.f32 1.0, %v4143_v6 }
 0xd55   : > { %7580 = vmatprep.subr.bf16.mxu1 %v8164_v28  ;;  %v4637_v28 = vmul.f32 %v4613_v21, %v4013_v62  ;;  %v4010_v9 = vmul.f32 0.5, %v10334_v2  ;;  %8357 = vpow2.f32 %v4504_v41  ;;  %v4470_v31 = vmul.f32 %v4446_v1, %v9711_v33  ;;  %v8179_v3 = vld [vmem:[%s8823_s15 + $0x348] sm:$0xff]   ;;  %v8174_v33 = vld [vmem:[%s8823_s15 + $0x2b8] sm:$0xff]   ;;  %v8176_v36 = vld [vmem:[%s8823_s15 + $0x3c0] sm:$0xff]  }
 0xd56   : > { %7561 = vmatpush3.bf16.msra.mxu0 %v8169_v12  ;;  %v8172_v12 = vld [vmem:[%s8823_s15 + $0x2f8] sm:$0xff]   ;;  %v4331_v39 = vmul.f32 %v9797_v42, %v4307_v60  ;;  %v4615_v20 = vadd.f32 1.0, %v4591_v51  ;;  %v4372_v62 = vmul.f32 %v9762_v49, %v4348_v45  ;;  %8359 = vrcp.f32 %v4162_v37  ;;  %v8181_v60 = vld [vmem:[%s8823_s15 + $0x308] sm:$0xff]   ;;  %v8183_v37 = vld [vmem:[%s8823_s15 + $0x350] sm:$0xff]  }
 0xd57   : > { %7562 = vmatprep.subr.bf16.mxu0 %v8171_v57  ;;  %v4656_v57 = vpack.c.bf16 %v4632_v48, %v4632_v48  ;;  %v4475_v43 = vmul.f32 %v4451_v7, %v9721_v58  ;;  %v4377_v21 = vmul.f32 %v9765_v5, %v4353_v11  ;;  %8361 = vpow2.f32 %v4514_v19  ;;  %v8178_v11 = vld [vmem:[%s8823_s15 + $0x380] sm:$0xff]  }
 0xd58   : > { %7581 = vmatpush3.bf16.msra.mxu1 %v8166_v61  ;;  %v10335_v61 = vld [vmem:[#allocation65_spill] sm:$0xff]  ;;  %v4661_v1 = vpack.c.bf16 %v4637_v28, %v4637_v28  ;;  %v4634_v4 = vmul.f32 %v4610_v14, %v4010_v9  ;;  %v4350_v26 = vadd.f32 -0.28449672, %v4326_v50  ;;  %8363 = vrcp.f32 %v4167_v52  ;;  %v8180_v28 = vld [vmem:[%s8823_s15 + $0x3c8] sm:$0xff]  }
 0xd59   : > { %7582 = vmatprep.subr.bf16.mxu1 %v8168_v23  ;;  %v4015_v41 = vmul.f32 0.5, %v10335_v61  ;;  %v4508_v58 = vmul.f32 1.442695, %v4470_v31  ;;  %v4355_v6 = vadd.f32 -0.28449672, %v4331_v39  ;;  %v8388_v23 = vld [vmem:[%s8818_s22 + $0x10] sm:$0xff]  ;;  %s10338_s22 = scalar_lea.vmem %s8679_s6, %s8780_s8 }
 0xd5a   : > { %7563 = vmatpush3.bf16.msra.mxu0 %v8173_v53  ;;  %v3228_v48 = vrot.slane %v8388_v23, %v9360_v55  ;;  %v4396_v53 = vadd.f32 0.2548296, %v4372_v62  ;;  %v4518_v45 = vmul.f32 1.442695, %v4475_v43  ;;  %v4374_v55 = vmul.f32 %v9785_v54, %v4350_v26  ;;  %v10336_v9 = vld [vmem:[#allocation49_spill] sm:$0xff]  ;;  %v8182_v62 = vld [vmem:[%s8823_s15 + $0x388] sm:$0xff]  }
 0xd5b   : > { %7592 = vmatprep.subr.bf16.mxu0 %v8175_v15  ;;  %v4639_v51 = vmul.f32 %v4615_v20, %v4015_v41  ;;  %v9899_v7 = vpop.eup %8353  ;;  %v4401_v15 = vadd.f32 0.2548296, %v4377_v21  ;;  %8365 = vpow2.f32 %v4508_v58  ;;  %v4379_v2 = vmul.f32 %v9797_v42, %v4355_v6  ;;  %v8185_v52 = vld [vmem:[%s8823_s15 + $0x310] sm:$0xff]   ;;  %v8187_v39 = vld [vmem:[%s8823_s15 + $0x358] sm:$0xff]   ;;  %v8191_v26 = vld [vmem:[%s8823_s15 + $0x360] sm:$0xff]  }
 0xd5c   : > { %7583 = vmatpush3.bf16.msra.mxu1 %v8170_v35  ;;  %v4658_v35 = vpack.c.bf16 %v4634_v4, %v4634_v4  ;;  %v9908_v14 = vadd.f32 %v10336_v9, %v3228_v48  ;;  %v4232_v31 = vmul.f32 1.0614054, %v9899_v7  ;;  %8367 = vpow2.f32 %v4518_v45  ;;  %v8186_v6 = vld [vmem:[%s8823_s15 + $0x390] sm:$0xff]   ;;  %v8190_v9 = vld [vmem:[%s8823_s15 + $0x398] sm:$0xff]  }
 0xd5d   : > { %7584 = vmatprep.subr.bf16.mxu1 %v8172_v12  ;;  %6408 = vmatmul.mubr.bf16.vlgmr.msra.gmra.mrb[80].mxu0 %v4656_v57  ;;  %v9902_v19 = vpop.eup %8355  ;;  %v4663_v50 = vpack.c.bf16 %v4639_v51, %v4639_v51  ;;  %v4420_v12 = vmul.f32 %v9762_v49, %v4396_v53  ;;  %v4425_v20 = vmul.f32 %v9765_v5, %v4401_v15  ;;  %v8184_v49 = vld [vmem:[%s8823_s15 + $0x3d0] sm:$0xff]   ;;  %v4403_v41 = vadd.f32 0.2548296, %v4379_v2  ;;  %v8189_v5 = vld [vmem:[%s8823_s15 + $0x318] sm:$0xff]  }
 0xd5e   : > { %7593 = vmatpush3.bf16.msra.mxu0 %v8177_v22  ;;  %6487 = vmatprep.mubr.bf16.mxu0 %v4661_v1  ;;  %v4237_v57 = vmul.f32 1.0614054, %v9902_v19  ;;  %v9921_v21 = vmul.f32 0.70710677, %v9908_v14  ;;  %v4256_v4 = vadd.f32 -1.4531521, %v4232_v31 }
 0xd5f   : > { %7594 = vmatprep.subr.bf16.mxu0 %v8179_v3  ;;  %v8358_v22 = vpop.eup %8357  ;;  %v4398_v3 = vadd.f32 0.2548296, %v4374_v55  ;;  %v8188_v51 = vld [vmem:[%s8823_s15 + $0x3d8] sm:$0xff]   ;;  %vm4060_vm9 = vcmp.ge.f32.partialorder %v9657_v8, 0.0  ;;  %vm4065_vm10 = vcmp.ge.f32.partialorder %v9665_v44, 0.0  ;;  %v10337_v55 = vld [vmem:[#allocation63_spill] sm:$0xff] }
 0xd60   : > { %7585 = vmatpush3.bf16.msra.mxu1 %v8174_v33  ;;  %v9917_v43 = vpop.eup %8359  ;;  %v4540_v1 = vmul.f32 %v8358_v22, %v4420_v12  ;;  %v4261_v58 = vadd.f32 -1.4531521, %v4237_v57  ;;  %v9933_v53 = vand.u32 2147483647, %v9921_v21  ;;  %v8192_v31 = vld [vmem:[%s8823_s15 + $0x3e0] sm:$0xff]   ;;  %vm4062_vm11 = vcmp.ge.f32.partialorder %v9688_v0, 0.0 }
 0xd61   : > { %7614 = vmatprep.subr.bf16.mxu1 %v8176_v36  ;;  %v8362_v61 = vpop.eup %8361  ;;  %v4422_v23 = vmul.f32 %v9785_v54, %v4398_v3  ;;  %v4234_v48 = vmul.f32 1.0614054, %v9917_v43  ;;  %v4280_v54 = vmul.f32 %v9899_v7, %v4256_v4  ;;  %v4453_v44 = vsub.f32 0.0, %v9831_v13 }
 0xd62   : > { %7595 = vmatpush3.bf16.msra.mxu0 %v8181_v60  ;;  %v9924_v33 = vpop.eup %8363  ;;  %v4545_v36 = vmul.f32 %v8362_v61, %v4425_v20  ;;  %v4427_v60 = vmul.f32 %v9797_v42, %v4403_v41  ;;  %v4564_v15 = vsub.f32 1.0, %v4540_v1  ;;  %v4285_v2 = vmul.f32 %v9902_v19, %v4261_v58 }
 0xd63   : > { %6448 = vmatmul.mubr.bf16.vlgmr.msra.gmra.mrb[80].mxu1 %v4658_v35  ;;  %7596 = vmatprep.subr.bf16.mxu0 %v8183_v37  ;;  %v4239_v45 = vmul.f32 1.0614054, %v9924_v33  ;;  %v8193_v37 = vld [vmem:[%s8823_s15 + $0x320] sm:$0xff]   ;;  %v4258_v12 = vadd.f32 -1.4531521, %v4234_v48  ;;  %v4448_v61 = vsub.f32 0.0, %v9819_v40 }
 0xd64   : > { %7615 = vmatpush3.bf16.msra.mxu1 %v8178_v11  ;;  %6527 = vmatprep.mubr.bf16.mxu1 %v4663_v50  ;;  %v8195_v11 = vld [vmem:[%s8823_s15 + $0x368] sm:$0xff]   ;;  %v4569_v42 = vsub.f32 1.0, %v4545_v36  ;;  %v4140_v20 = vmul.f32 0.3275911, %v9933_v53  ;;  %v4089_v41 = vsel %vm4065_vm10, 1.0, %v10314_v46  ;;  %v4012_v36 = vmul.f32 0.5, %v9639_v27 }
 0xd65   : > { %7616 = vmatprep.subr.bf16.mxu1 %v8180_v28  ;;  %v8366_v35 = vpop.eup %8365  ;;  %v9942_v28 = vmul.f32 0.70710677, %v10337_v55  ;;  %v4263_v57 = vadd.f32 -1.4531521, %v4239_v45  ;;  %v4309_v4 = vadd.f32 1.4214138, %v4285_v2 }
 0xd66   : > { %7597 = vmatpush3.bf16.msra.mxu0 %v8185_v52  ;;  %v8368_v50 = vpop.eup %8367  ;;  %v4542_v52 = vmul.f32 %v8366_v35, %v4422_v23  ;;  %v4593_v8 = vmul.f32 %v4569_v42, %v4089_v41  ;;  %v8196_v23 = vld [vmem:[%s8823_s15 + $0x3e8] sm:$0xff]   ;;  %vm4067_vm12 = vcmp.ge.f32.partialorder %v9701_v63, 0.0  ;;  %v8201_v45 = vld [vmem:[%s8823_s15 + $0x330] sm:$0xff]   ;;  %v4086_v27 = vsel %vm4062_vm11, 1.0, %v10314_v46 }
 0xd67   : > { %7598 = vmatprep.subr.bf16.mxu0 %v8187_v39  ;;  %v4084_v39 = vsel %vm4060_vm9, 1.0, %v10314_v46  ;;  %v4547_v22 = vmul.f32 %v8368_v50, %v4427_v60  ;;  %v9959_v1 = vand.u32 2147483647, %v9942_v28  ;;  %v4287_v60 = vmul.f32 %v9924_v33, %v4263_v57  ;;  %v8205_v57 = vld [vmem:[%s8823_s15 + $0x338] sm:$0xff]  }
 0xd68   : > { %7617 = vmatpush3.bf16.msra.mxu1 %v8182_v62  ;;  %v8197_v62 = vld [vmem:[%s8823_s15 + $0x328] sm:$0xff]   ;;  %v4588_v3 = vmul.f32 %v4564_v15, %v4084_v39  ;;  %v4566_v58 = vsub.f32 1.0, %v4542_v52  ;;  %v4450_v35 = vsub.f32 0.0, %v9851_v38  ;;  %v4333_v2 = vmul.f32 %v9902_v19, %v4309_v4 }
 0xd69   : > { %7618 = vmatprep.subr.bf16.mxu1 %v8184_v49  ;;  %v4304_v49 = vadd.f32 1.4214138, %v4280_v54  ;;  %v4571_v48 = vsub.f32 1.0, %v4547_v22  ;;  %v4472_v54 = vmul.f32 %v4448_v61, %v9819_v40  ;;  %v4142_v42 = vmul.f32 0.3275911, %v9959_v1  ;;  %v8207_v61 = vld [vmem:[%s8823_s15 + $0x440] sm:$0xff]  }
 0xd6a   : > { %7599 = vmatpush3.bf16.msra.mxu0 %v8189_v5  ;;  %v8199_v5 = vld [vmem:[%s8823_s15 + $0x370] sm:$0xff]   ;;  %v4617_v50 = vadd.f32 1.0, %v4593_v8  ;;  %v4590_v52 = vmul.f32 %v4566_v58, %v4086_v27  ;;  %v4477_v40 = vmul.f32 %v4453_v44, %v9831_v13  ;;  %v4017_v39 = vmul.f32 0.5, %v9643_v25  ;;  %v8204_v58 = vld [vmem:[%s8823_s15 + $0x3f8] sm:$0xff]  }
 0xd6b   : > { %7600 = vmatprep.subr.bf16.mxu0 %v8191_v26  ;;  %v8194_v26 = vld [vmem:[%s8823_s15 + $0x3a0] sm:$0xff]   ;;  %v4328_v15 = vmul.f32 %v9899_v7, %v4304_v49  ;;  %v4512_v49 = vmul.f32 1.442695, %v4472_v54  ;;  %v4455_v63 = vsub.f32 0.0, %v9859_v32  ;;  %v4166_v13 = vadd.f32 1.0, %v4142_v42 }
 0xd6c   : > { %7619 = vmatpush3.bf16.msra.mxu1 %v8186_v6  ;;  %v4282_v6 = vmul.f32 %v9917_v43, %v4258_v12  ;;  %v4091_v12 = vsel %vm4067_vm12, 1.0, %v10314_v46  ;;  %v4357_v41 = vadd.f32 -0.28449672, %v4333_v2  ;;  %v4641_v8 = vmul.f32 %v4617_v50, %v4017_v39  ;;  %v8213_v2 = vld [vmem:[%s8823_s15 + $0x408] sm:$0xff]  }
 0xd6d   : > { %7620 = vmatprep.subr.bf16.mxu1 %v8188_v51  ;;  %v4164_v51 = vadd.f32 1.0, %v4140_v20  ;;  %v4595_v22 = vmul.f32 %v4571_v48, %v4091_v12  ;;  %v4311_v20 = vadd.f32 1.4214138, %v4287_v60  ;;  %v4614_v25 = vadd.f32 1.0, %v4590_v52  ;;  %v8215_v52 = vld [vmem:[%s8823_s15 + $0x450] sm:$0xff]  }
 0xd6e   : > { %7601 = vmatpush3.bf16.msra.mxu0 %v8193_v37  ;;  %v4612_v37 = vadd.f32 1.0, %v4588_v3  ;;  %v4306_v0 = vadd.f32 1.4214138, %v4282_v6  ;;  %v4352_v3 = vadd.f32 -0.28449672, %v4328_v15  ;;  %v4474_v6 = vmul.f32 %v4450_v35, %v9851_v38  ;;  %v8206_v38 = vld [vmem:[%s8823_s15 + $0x3b8] sm:$0xff]  }
 0xd6f   : > { %7602 = vmatprep.subr.bf16.mxu0 %v8195_v11  ;;  %v8203_v11 = vld [vmem:[%s8823_s15 + $0x378] sm:$0xff]   ;;  %8369 = vrcp.f32 %v4164_v51  ;;  %v4335_v44 = vmul.f32 %v9924_v33, %v4311_v20  ;;  %v4619_v48 = vadd.f32 1.0, %v4595_v22  ;;  %v4019_v27 = vmul.f32 0.5, %v9676_v59  ;;  %v8208_v35 = vld [vmem:[%s8823_s15 + $0x4c0] sm:$0xff]   ;;  %v8212_v22 = vld [vmem:[%s8823_s15 + $0x4c8] sm:$0xff]  }
 0xd70   : > { %7621 = vmatpush3.bf16.msra.mxu1 %v8190_v9  ;;  %v8198_v9 = vld [vmem:[%s8823_s15 + $0x3a8] sm:$0xff]   ;;  %v4330_v4 = vmul.f32 %v9917_v43, %v4306_v0  ;;  %v4376_v60 = vmul.f32 %v9899_v7, %v4352_v3  ;;  %8371 = vpow2.f32 %v4512_v49  ;;  %v4665_v15 = vpack.c.bf16 %v4641_v8, %v4641_v8  ;;  %v8216_v8 = vld [vmem:[%s8823_s15 + $0x4d0] sm:$0xff]  }
 0xd71   : > { %7622 = vmatprep.subr.bf16.mxu1 %v8192_v31  ;;  %v8200_v31 = vld [vmem:[%s8823_s15 + $0x3f0] sm:$0xff]   ;;  %8373 = vrcp.f32 %v4166_v13  ;;  %v4359_v42 = vadd.f32 -0.28449672, %v4335_v44  ;;  %v4643_v59 = vmul.f32 %v4619_v48, %v4019_v27  ;;  %v8214_v13 = vld [vmem:[%s8823_s15 + $0x488] sm:$0xff]   ;;  %vm4064_vm13 = vcmp.ge.f32.partialorder %v9794_v16, 0.0 }
 0xd72   : > { %7603 = vmatpush3.bf16.msra.mxu0 %v8197_v62  ;;  %v4636_v62 = vmul.f32 %v4612_v37, %v4012_v36  ;;  %v4014_v36 = vmul.f32 0.5, %v10322_v24  ;;  %v8211_v37 = vld [vmem:[%s8823_s15 + $0x448] sm:$0xff]   ;;  %v4381_v24 = vmul.f32 %v9902_v19, %v4357_v41  ;;  %v8218_v44 = vld [vmem:[%s8823_s15 + $0x490] sm:$0xff]   ;;  %vm4069_vm14 = vcmp.ge.f32.partialorder %v9804_v47, 0.0 }
 0xd73   : > { %7604 = vmatprep.subr.bf16.mxu0 %v8199_v5  ;;  %v8202_v5 = vld [vmem:[%s8823_s15 + $0x3b0] sm:$0xff]   ;;  %v4383_v20 = vmul.f32 %v9924_v33, %v4359_v42  ;;  %v4088_v16 = vsel %vm4064_vm13, 1.0, %v10314_v46  ;;  %v8229_v42 = vld [vmem:[%s8823_s15 + $0x428] sm:$0xff]   ;;  %v4093_v47 = vsel %vm4069_vm14, 1.0, %v10314_v46  ;;  %vm4066_vm15 = vcmp.ge.f32.partialorder %v9828_v10, 0.0 }
 0xd74   : > { %7623 = vmatpush3.bf16.msra.mxu1 %v8194_v26  ;;  %v4522_v26 = vmul.f32 1.442695, %v4477_v40  ;;  %v4660_v51 = vpack.c.bf16 %v4636_v62, %v4636_v62  ;;  %v4638_v54 = vmul.f32 %v4614_v25, %v4014_v36  ;;  %v4405_v12 = vadd.f32 0.2548296, %v4381_v24  ;;  %v8210_v40 = vld [vmem:[%s8823_s15 + $0x480] sm:$0xff]   ;;  %v8217_v62 = vld [vmem:[%s8823_s15 + $0x410] sm:$0xff]  }
 0xd75   : > { %7624 = vmatprep.subr.bf16.mxu1 %v8196_v23  ;;  %v8209_v23 = vld [vmem:[%s8823_s15 + $0x400] sm:$0xff]   ;;  %v4407_v25 = vadd.f32 0.2548296, %v4383_v20  ;;  %v8227_v24 = vld [vmem:[%s8823_s15 + $0x468] sm:$0xff]   ;;  %vm4071_vm0 = vcmp.ge.f32.partialorder %v9844_v29, 0.0  ;;  %v8233_v20 = vld [vmem:[%s8823_s15 + $0x430] sm:$0xff]  }
 0xd76   : > { %7605 = vmatpush3.bf16.msra.mxu0 %v8201_v45  ;;  %v4479_v45 = vmul.f32 %v4455_v63, %v9859_v32  ;;  %8375 = vpow2.f32 %v4522_v26  ;;  %v4516_v32 = vmul.f32 1.442695, %v4474_v6  ;;  %v8219_v63 = vld [vmem:[%s8823_s15 + $0x458] sm:$0xff]   ;;  %v4090_v10 = vsel %vm4066_vm15, 1.0, %v10314_v46  ;;  %v8234_v29 = vld [vmem:[%s8823_s15 + $0x4b0] sm:$0xff]  }
 0xd77   : > { %7606 = vmatprep.subr.bf16.mxu0 %v8203_v11  ;;  %v4354_v11 = vadd.f32 -0.28449672, %v4330_v4  ;;  %v8221_v4 = vld [vmem:[%s8823_s15 + $0x418] sm:$0xff]   ;;  %vm4068_vm1 = vcmp.ge.f32.partialorder %v9921_v21, 0.0  ;;  %v8263_v21 = vld [vmem:[%s8823_s15 + $0x570] sm:$0xff]   ;;  %vm4070_vm2 = vcmp.ge.f32.partialorder %v9942_v28, 0.0 }
 0xd78   : > { %7625 = vmatpush3.bf16.msra.mxu1 %v8198_v9  ;;  %v4400_v9 = vadd.f32 0.2548296, %v4376_v60  ;;  %v4526_v50 = vmul.f32 1.442695, %v4479_v45  ;;  %8377 = vpow2.f32 %v4516_v32  ;;  %v4431_v60 = vmul.f32 %v9924_v33, %v4407_v25  ;;  %v8225_v45 = vld [vmem:[%s8823_s15 + $0x420] sm:$0xff]   ;;  %v8232_v25 = vld [vmem:[%s8823_s15 + $0x4f0] sm:$0xff]  }
 0xd79   : > { %7626 = vmatprep.subr.bf16.mxu1 %v8200_v31  ;;  %v10004_v0 = vpop.eup %8369  ;;  %v4662_v31 = vpack.c.bf16 %v4638_v54, %v4638_v54  ;;  %v4378_v39 = vmul.f32 %v9917_v43, %v4354_v11  ;;  %v8264_v28 = vld [vmem:[%s8823_s15 + $0x5f0] sm:$0xff]  }
 0xd7a   : > { %7607 = vmatpush3.bf16.msra.mxu0 %v8205_v57  ;;  %v4667_v57 = vpack.c.bf16 %v4643_v59, %v4643_v59  ;;  %v4424_v3 = vmul.f32 %v9899_v7, %v4400_v9  ;;  %v4236_v49 = vmul.f32 1.0614054, %v10004_v0  ;;  %8379 = vpow2.f32 %v4526_v50  ;;  %v8372_v41 = vpop.eup %8371  ;;  %v8231_v9 = vld [vmem:[%s8823_s15 + $0x470] sm:$0xff]  }
 0xd7b   : > { %7636 = vmatprep.subr.bf16.mxu0 %v8207_v61  ;;  %v4429_v61 = vmul.f32 %v9902_v19, %v4405_v12  ;;  %v10017_v7 = vpop.eup %8373  ;;  %v8223_v19 = vld [vmem:[%s8823_s15 + $0x460] sm:$0xff]   ;;  %v4452_v50 = vsub.f32 0.0, %v9933_v53 }
 0xd7c   : > { %7627 = vmatpush3.bf16.msra.mxu1 %v8202_v5  ;;  %v4402_v5 = vadd.f32 0.2548296, %v4378_v39  ;;  %v4260_v36 = vadd.f32 -1.4531521, %v4236_v49  ;;  %v4238_v48 = vmul.f32 1.0614054, %v10017_v7 }
 0xd7d   : > { %7628 = vmatprep.subr.bf16.mxu1 %v8204_v58  ;;  %6488 = vmatmul.mubr.bf16.vlgmr.msra.gmra.mrb[84].mxu0 %v4660_v51  ;;  %v4544_v58 = vmul.f32 %v8372_v41, %v4424_v3  ;;  %v8220_v51 = vld [vmem:[%s8823_s15 + $0x4d8] sm:$0xff]   ;;  %v8226_v12 = vld [vmem:[%s8823_s15 + $0x4a0] sm:$0xff]   ;;  %v8228_v39 = vld [vmem:[%s8823_s15 + $0x4e8] sm:$0xff]   ;;  %v4476_v49 = vmul.f32 %v4452_v50, %v9933_v53  ;;  %v4021_v53 = vmul.f32 0.5, %v9779_v17 }
 0xd7e   : > { %7637 = vmatpush3.bf16.msra.mxu0 %v8209_v23  ;;  %6567 = vmatprep.mubr.bf16.mxu0 %v4665_v15  ;;  %v4426_v23 = vmul.f32 %v9917_v43, %v4402_v5  ;;  %v4284_v27 = vmul.f32 %v10004_v0, %v4260_v36  ;;  %v8222_v15 = vld [vmem:[%s8823_s15 + $0x498] sm:$0xff]   ;;  %v4262_v11 = vadd.f32 -1.4531521, %v4238_v48  ;;  %v8249_v50 = vld [vmem:[%s8823_s15 + $0x510] sm:$0xff]  }
 0xd7f   : > { %7638 = vmatprep.subr.bf16.mxu0 %v8211_v37  ;;  %v4568_v37 = vsub.f32 1.0, %v4544_v58  ;;  %v8235_v3 = vld [vmem:[%s8823_s15 + $0x478] sm:$0xff]  }
 0xd80   : > { %7629 = vmatpush3.bf16.msra.mxu1 %v8206_v38  ;;  %v8376_v26 = vpop.eup %8375  ;;  %v8237_v58 = vld [vmem:[%s8823_s15 + $0x438] sm:$0xff]  }
 0xd81   : > { %7658 = vmatprep.subr.bf16.mxu1 %v8208_v35  ;;  %v4549_v6 = vmul.f32 %v8376_v26, %v4429_v61  ;;  %v8224_v35 = vld [vmem:[%s8823_s15 + $0x4e0] sm:$0xff]   ;;  %v4592_v59 = vmul.f32 %v4568_v37, %v4088_v16  ;;  %v8245_v16 = vld [vmem:[%s8823_s15 + $0x508] sm:$0xff]  }
 0xd82   : > { %7639 = vmatpush3.bf16.msra.mxu0 %v8213_v2  ;;  %v8378_v38 = vpop.eup %8377  ;;  %v4308_v2 = vadd.f32 1.4214138, %v4284_v27  ;;  %v4018_v27 = vmul.f32 0.5, %v9801_v34 }
 0xd83   : > { %6528 = vmatmul.mubr.bf16.vlgmr.msra.gmra.mrb[84].mxu1 %v4662_v31  ;;  %7640 = vmatprep.subr.bf16.mxu0 %v8215_v52  ;;  %v4573_v43 = vsub.f32 1.0, %v4549_v6  ;;  %v4546_v33 = vmul.f32 %v8378_v38, %v4426_v23  ;;  %v4286_v31 = vmul.f32 %v10017_v7, %v4262_v11  ;;  %v4520_v6 = vmul.f32 1.442695, %v4476_v49  ;;  %v8243_v38 = vld [vmem:[%s8823_s15 + $0x548] sm:$0xff]   ;;  %v8240_v11 = vld [vmem:[%s8823_s15 + $0x5c0] sm:$0xff]  }
 0xd84   : > { %7659 = vmatpush3.bf16.msra.mxu1 %v8210_v40  ;;  %6607 = vmatprep.mubr.bf16.mxu1 %v4667_v57  ;;  %v8380_v54 = vpop.eup %8379  ;;  %v4616_v57 = vadd.f32 1.0, %v4592_v59  ;;  %v8257_v49 = vld [vmem:[%s8823_s15 + $0x520] sm:$0xff]  }
 0xd85   : > { %7660 = vmatprep.subr.bf16.mxu1 %v8212_v22  ;;  %v4551_v32 = vmul.f32 %v8380_v54, %v4431_v60  ;;  %v4597_v52 = vmul.f32 %v4573_v43, %v4093_v47  ;;  %v4570_v40 = vsub.f32 1.0, %v4546_v33  ;;  %v4310_v5 = vadd.f32 1.4214138, %v4286_v31  ;;  %v8241_v60 = vld [vmem:[%s8823_s15 + $0x500] sm:$0xff]   ;;  %v8244_v47 = vld [vmem:[%s8823_s15 + $0x5c8] sm:$0xff]  }
 0xd86   : > { %7641 = vmatpush3.bf16.msra.mxu0 %v8217_v62  ;;  %v4332_v62 = vmul.f32 %v10004_v0, %v4308_v2  ;;  %8381 = vpow2.f32 %v4520_v6  ;;  %v4023_v43 = vmul.f32 0.5, %v9814_v56  ;;  %v8247_v56 = vld [vmem:[%s8823_s15 + $0x550] sm:$0xff]   ;;  %v4094_v6 = vsel %vm4070_vm2, 1.0, %v10314_v46 }
 0xd87   : > { %7642 = vmatprep.subr.bf16.mxu0 %v8219_v63  ;;  %v4575_v22 = vsub.f32 1.0, %v4551_v32  ;;  %v8230_v63 = vld [vmem:[%s8823_s15 + $0x4a8] sm:$0xff]   ;;  %v4621_v61 = vadd.f32 1.0, %v4597_v52  ;;  %v4594_v41 = vmul.f32 %v4570_v40, %v4090_v10  ;;  %v4334_v48 = vmul.f32 %v10017_v7, %v4310_v5  ;;  %v8252_v10 = vld [vmem:[%s8823_s15 + $0x5d8] sm:$0xff]  }
 0xd88   : > { %7661 = vmatpush3.bf16.msra.mxu1 %v8214_v13  ;;  %v4016_v13 = vmul.f32 0.5, %v9772_v18  ;;  %v4356_v18 = vadd.f32 -0.28449672, %v4332_v62  ;;  %v8246_v40 = vld [vmem:[%s8823_s15 + $0x588] sm:$0xff]   ;;  %v8250_v62 = vld [vmem:[%s8823_s15 + $0x590] sm:$0xff]  }
 0xd89   : > { %7662 = vmatprep.subr.bf16.mxu1 %v8216_v8  ;;  %v4095_v8 = vsel %vm4071_vm0, 1.0, %v10314_v46  ;;  %v4618_v23 = vadd.f32 1.0, %v4594_v41  ;;  %v4358_v33 = vadd.f32 -0.28449672, %v4334_v48  ;;  %v8254_v41 = vld [vmem:[%s8823_s15 + $0x598] sm:$0xff]  }
 0xd8a   : > { %7643 = vmatpush3.bf16.msra.mxu0 %v8221_v4  ;;  %v4454_v4 = vsub.f32 0.0, %v9959_v1  ;;  %v4599_v26 = vmul.f32 %v4575_v22, %v4095_v8  ;;  %v4640_v36 = vmul.f32 %v4616_v57, %v4016_v13  ;;  %v4092_v8 = vsel %vm4068_vm1, 1.0, %v10314_v46  ;;  %v8269_v48 = vld [vmem:[%s8823_s15 + $0x538] sm:$0xff]  }
 0xd8b   : > { %7644 = vmatprep.subr.bf16.mxu0 %v8223_v19  ;;  %v8239_v19 = vld [vmem:[%s8823_s15 + $0x540] sm:$0xff]   ;;  %v4642_v54 = vmul.f32 %v4618_v23, %v4018_v27  ;;  %v4382_v2 = vmul.f32 %v10017_v7, %v4358_v33 }
 0xd8c   : > { %7663 = vmatpush3.bf16.msra.mxu1 %v8218_v44  ;;  %v4645_v44 = vmul.f32 %v4621_v61, %v4021_v53  ;;  %v4478_v17 = vmul.f32 %v4454_v4, %v9959_v1  ;;  %v4664_v37 = vpack.c.bf16 %v4640_v36, %v4640_v36  ;;  %v8259_v61 = vld [vmem:[%s8823_s15 + $0x568] sm:$0xff]   ;;  %v8258_v53 = vld [vmem:[%s8823_s15 + $0x5a0] sm:$0xff]   ;;  %v8265_v36 = vld [vmem:[%s8823_s15 + $0x530] sm:$0xff]  }
 0xd8d   : > { %7664 = vmatprep.subr.bf16.mxu1 %v8220_v51  ;;  %v8236_v51 = vld [vmem:[%s8823_s15 + $0x4f8] sm:$0xff]   ;;  %v4666_v59 = vpack.c.bf16 %v4642_v54, %v4642_v54  ;;  %v4406_v31 = vadd.f32 0.2548296, %v4382_v2  ;;  %v7186_v54 = vld [vmem:[%s10338_s22] ss:$0 sm:$0xff] }
 0xd8e   : > { %7645 = vmatpush3.bf16.msra.mxu0 %v8225_v45  ;;  %v4623_v45 = vadd.f32 1.0, %v4599_v26  ;;  %v4669_v1 = vpack.c.bf16 %v4645_v44, %v4645_v44  ;;  %v4524_v34 = vmul.f32 1.442695, %v4478_v17  ;;  %v4020_v44 = vmul.f32 0.5, %v9908_v14  ;;  %v8266_v17 = vld [vmem:[%s8823_s15 + $0x5b0] sm:$0xff]   ;;  %v8270_v14 = vld [vmem:[%s8823_s15 + $0x5b8] sm:$0xff]  }
 0xd8f   : > { %7646 = vmatprep.subr.bf16.mxu0 %v8227_v24  ;;  %v4380_v24 = vmul.f32 %v10004_v0, %v4356_v18 }
 0xd90   : > { %7665 = vmatpush3.bf16.msra.mxu1 %v8222_v15  ;;  %v8238_v15 = vld [vmem:[%s8823_s15 + $0x4b8] sm:$0xff]   ;;  %8383 = vpow2.f32 %v4524_v34  ;;  %v8382_v22 = vpop.eup %8381 }
 0xd91   : > { %7666 = vmatprep.subr.bf16.mxu1 %v8224_v35  ;;  %v4647_v35 = vmul.f32 %v4623_v45, %v4023_v43  ;;  %v4404_v32 = vadd.f32 0.2548296, %v4380_v24  ;;  %v8268_v45 = vld [vmem:[%s8823_s15 + $0x5f8] sm:$0xff]  }
 0xd92   : > { %7647 = vmatpush3.bf16.msra.mxu0 %v8229_v42  ;;  %v8242_v42 = vld [vmem:[%s8823_s15 + $0x580] sm:$0xff]  }
 0xd93   : > { %7648 = vmatprep.subr.bf16.mxu0 %v8231_v9  ;;  %v4671_v9 = vpack.c.bf16 %v4647_v35, %v4647_v35  ;;  %v4428_v52 = vmul.f32 %v10004_v0, %v4404_v32  ;;  %v8255_v0 = vld [vmem:[%s8823_s15 + $0x560] sm:$0xff]  }
 0xd94   : > { %7667 = vmatpush3.bf16.msra.mxu1 %v8226_v12  ;;  %v8251_v12 = vld [vmem:[%s8823_s15 + $0x558] sm:$0xff]  }
 0xd95   : > { %7668 = vmatprep.subr.bf16.mxu1 %v8228_v39  ;;  %v8248_v39 = vld [vmem:[%s8823_s15 + $0x5d0] sm:$0xff]   ;;  %v4548_v57 = vmul.f32 %v8382_v22, %v4428_v52 }
 0xd96   : > { %7649 = vmatpush3.bf16.msra.mxu0 %v8233_v20  ;;  %v8253_v20 = vld [vmem:[%s8823_s15 + $0x518] sm:$0xff]  }
 0xd97   : > { %7650 = vmatprep.subr.bf16.mxu0 %v8235_v3  ;;  %v4430_v3 = vmul.f32 %v10017_v7, %v4406_v31  ;;  %v8256_v7 = vld [vmem:[%s8823_s15 + $0x5e0] sm:$0xff]  }
 0xd98   : > { %7669 = vmatpush3.bf16.msra.mxu1 %v8230_v63  ;;  %v4572_v63 = vsub.f32 1.0, %v4548_v57 }
 0xd99   : > { %7670 = vmatprep.subr.bf16.mxu1 %v8232_v25  ;;  %v8261_v25 = vld [vmem:[%s8823_s15 + $0x528] sm:$0xff]  }
 0xd9a   : > { %7651 = vmatpush3.bf16.msra.mxu0 %v8237_v58  ;;  %v8384_v13 = vpop.eup %8383  ;;  %v4596_v4 = vmul.f32 %v4572_v63, %v4092_v8  ;;  %v8260_v58 = vld [vmem:[%s8823_s15 + $0x5e8] sm:$0xff]  }
 0xd9b   : > { %7680 = vmatprep.subr.bf16.mxu0 %v8239_v19  ;;  %v4550_v5 = vmul.f32 %v8384_v13, %v4430_v3  ;;  %v8267_v19 = vld [vmem:[%s8823_s15 + $0x578] sm:$0xff]  }
 0xd9c   : > { %7671 = vmatpush3.bf16.msra.mxu1 %v8234_v29  ;;  %v4620_v18 = vadd.f32 1.0, %v4596_v4  ;;  %v8262_v29 = vld [vmem:[%s8823_s15 + $0x5a8] sm:$0xff]   ;;  %s10340_s15 = sld [smem:[#allocation31_spill]] }
 0xd9d   : > { %7672 = vmatprep.subr.bf16.mxu1 %v8236_v51  ;;  %6568 = vmatmul.mubr.bf16.vlgmr.msra.gmra.mrb[88].mxu0 %v4664_v37  ;;  %v4574_v26 = vsub.f32 1.0, %v4550_v5  ;;  %v4022_v37 = vmul.f32 0.5, %v10337_v55 }
 0xd9e   : > { %7681 = vmatpush3.bf16.msra.mxu0 %v8241_v60  ;;  %6647 = vmatprep.mubr.bf16.mxu0 %v4669_v1  ;;  %v4644_v51 = vmul.f32 %v4620_v18, %v4020_v44 }
 0xd9f   : > { %7682 = vmatprep.subr.bf16.mxu0 %v8243_v38  ;;  %v4598_v23 = vmul.f32 %v4574_v26, %v4094_v6 }
 0xda0   : > { %7673 = vmatpush3.bf16.msra.mxu1 %v8238_v15  ;;  %v4668_v46 = vpack.c.bf16 %v4644_v51, %v4644_v51 }
 0xda1   : > { %7702 = vmatprep.subr.bf16.mxu1 %v8240_v11  ;;  %v4622_v60 = vadd.f32 1.0, %v4598_v23 }
 0xda2   : > { %7683 = vmatpush3.bf16.msra.mxu0 %v8245_v16  ;;  %p7381_p1 = scmp.ne.s32.totalorder %s10340_s15, 1 }
 0xda3   : > { %6608 = vmatmul.mubr.bf16.vlgmr.msra.gmra.mrb[88].mxu1 %v4666_v59  ;;  %7684 = vmatprep.subr.bf16.mxu0 %v8247_v56  ;;  %v4646_v27 = vmul.f32 %v4622_v60, %v4022_v37  ;;  %s10341_s26 = sld [smem:[#allocation27_spill]] (!%p7381_p1) }
 0xda4   : > { %7703 = vmatpush3.bf16.msra.mxu1 %v8242_v42  ;;  %6687 = vmatprep.mubr.bf16.mxu1 %v4671_v9 }
 0xda5   : > { %7704 = vmatprep.subr.bf16.mxu1 %v8244_v47  ;;  %v4670_v24 = vpack.c.bf16 %v4646_v27, %v4646_v27 }
 0xda6   : > { %7685 = vmatpush3.bf16.msra.mxu0 %v8249_v50 }
 0xda7   : > { %7686 = vmatprep.subr.bf16.mxu0 %v8251_v12 }
 0xda8   : > { %7705 = vmatpush3.bf16.msra.mxu1 %v8246_v40 }
 0xda9   : > { %7706 = vmatprep.subr.bf16.mxu1 %v8248_v39 }
 0xdaa   : > { %7687 = vmatpush3.bf16.msra.mxu0 %v8253_v20 }
 0xdab   : > { %7688 = vmatprep.subr.bf16.mxu0 %v8255_v0 }
 0xdac   : > { %7707 = vmatpush3.bf16.msra.mxu1 %v8250_v62 }
 0xdad   : > { %7708 = vmatprep.subr.bf16.mxu1 %v8252_v10 }
 0xdae   : > { %7689 = vmatpush3.bf16.msra.mxu0 %v8257_v49 }
 0xdaf   : > { %7690 = vmatprep.subr.bf16.mxu0 %v8259_v61 }
 0xdb0   : > { %7709 = vmatpush3.bf16.msra.mxu1 %v8254_v41 }
 0xdb1   : > { %7710 = vmatprep.subr.bf16.mxu1 %v8256_v7 }
 0xdb2   : > { %7691 = vmatpush3.bf16.msra.mxu0 %v8261_v25 }
 0xdb3   : > { %7692 = vmatprep.subr.bf16.mxu0 %v8263_v21 }
 0xdb4   : > { %7711 = vmatpush3.bf16.msra.mxu1 %v8258_v53 }
 0xdb5   : > { %7712 = vmatprep.subr.bf16.mxu1 %v8260_v58 }
 0xdb6   : > { %7693 = vmatpush3.bf16.msra.mxu0 %v8265_v36 }
 0xdb7   : > { %7694 = vmatprep.subr.bf16.mxu0 %v8267_v19 }
 0xdb8   : > { %7713 = vmatpush3.bf16.msra.mxu1 %v8262_v29 }
 0xdb9   : > { %7714 = vmatprep.subr.bf16.mxu1 %v8264_v28 }
 0xdba   : > { %7695 = vmatpush3.bf16.msra.mxu0 %v8269_v48 }
 0xdbc   : > { %7715 = vmatpush3.bf16.msra.mxu1 %v8266_v17 }
 0xdbd   : > { %7716 = vmatprep.subr.bf16.mxu1 %v8268_v45  ;;  %6648 = vmatmul.mubr.bf16.vlgmr.msra.gmra.mrb[92].mxu0 %v4668_v46 }
 0xdc0   : > { %7717 = vmatpush3.bf16.msra.mxu1 %v8270_v14 }
 0xdc3   : > { %6688 = vmatmul.mubr.bf16.vlgmr.msra.gmra.mrb[92].mxu1 %v4670_v24 }
 0xdf0   : > { %v7476_v38 = vpop.f32.mrb[72].mxu0 }
 0xdf1   : > { %v7477_v43 = vpop.f32.mrb[73].mxu0 }
 0xdf2   : > { %v7478_v15 = vadd.f32 %v7477_v43, %v7476_v38  ;;  %v7479_v1 = vpop.f32.mrb[74].mxu0 }
 0xdf3   : > { %v7480_v33 = vpop.f32.mrb[75].mxu0 }
 0xdf4   : > { %v6250_v34 = vadd.f32 %v7478_v15, %v7186_v54 }
 0xdf6   : > { %v7498_v11 = vpop.f32.mrb[72].mxu1 }
 0xdf7   : > { %v7499_v35 = vpop.f32.mrb[73].mxu1 }
 0xdf8   : > { %v7500_v16 = vadd.f32 %v7499_v35, %v7498_v11  ;;  %v7501_v55 = vpop.f32.mrb[74].mxu1 }
 0xdf9   : > { %v7502_v32 = vpop.f32.mrb[75].mxu1  ;;  %v10339_v55 = vld [vmem:[#allocation45_spill] sm:$0xff] }
 0xdfa   : > { %v6290_v56 = vadd.f32 %v7500_v16, %v6250_v34 }
 0xe10   : > { %v7520_v42 = vpop.f32.mrb[76].mxu0 }
 0xe11   : > { %v7521_v59 = vpop.f32.mrb[77].mxu0 }
 0xe12   : > { %v7522_v2 = vadd.f32 %v7521_v59, %v7520_v42  ;;  %v7523_v47 = vpop.f32.mrb[78].mxu0 }
 0xe13   : > { %v7524_v9 = vpop.f32.mrb[79].mxu0 }
 0xe14   : > { %v6330_v50 = vadd.f32 %v7522_v2, %v6290_v56 }
 0xe16   : > { %v7542_v52 = vpop.f32.mrb[76].mxu1 }
 0xe17   : > { %v7543_v12 = vpop.f32.mrb[77].mxu1 }
 0xe18   : > { %v7544_v40 = vadd.f32 %v7543_v12, %v7542_v52  ;;  %v7545_v31 = vpop.f32.mrb[78].mxu1 }
 0xe19   : > { %v7546_v39 = vpop.f32.mrb[79].mxu1  ;;  %v7379_v31 = vld [vmem:[%s1248_s18] ss:$0 sm:$0xff] }
 0xe1a   : > { %v6370_v22 = vadd.f32 %v7544_v40, %v6330_v50 }
 0xe30   : > { %v7564_v20 = vpop.f32.mrb[80].mxu0 }
 0xe31   : > { %v7565_v57 = vpop.f32.mrb[81].mxu0 }
 0xe32   : > { %v7566_v0 = vadd.f32 %v7565_v57, %v7564_v20  ;;  %v7567_v62 = vpop.f32.mrb[82].mxu0 }
 0xe33   : > { %v7568_v3 = vpop.f32.mrb[83].mxu0  ;;  %v7382_v62 = vld [vmem:[%s10341_s26] ss:$0 sm:$0xff] (!%p7381_p1) }
 0xe34   : > { %v6410_v10 = vadd.f32 %v7566_v0, %v6370_v22  ;;  %v7380_v22 = vld [vmem:[%s1251_s2] ss:$0 sm:$0xff] }
 0xe36   : > { %v7586_v49 = vpop.f32.mrb[80].mxu1 }
 0xe37   : > { %v7587_v63 = vpop.f32.mrb[81].mxu1 }
 0xe38   : > { %v7588_v61 = vadd.f32 %v7587_v63, %v7586_v49  ;;  %v7589_v13 = vpop.f32.mrb[82].mxu1  ;;  %v6742_v63 = vld [vmem:[#allocation3] sm:$0x1] (!%p7381_p1) }
 0xe39   : > { %v7590_v41 = vpop.f32.mrb[83].mxu1 }
 0xe3a   : > { %v6450_v5 = vadd.f32 %v7588_v61, %v6410_v10  ;;  %v8529_v10 = vmov (!%p7381_p1), 0  }
 0xe3b   : > { %8389 = vset.pattern.permute.xlu0 (!%p7381_p1), %v8529_v10 }
 0xe50   : > { %v7608_v7 = vpop.f32.mrb[84].mxu0 }
 0xe51   : > { %v7609_v8 = vpop.f32.mrb[85].mxu0 }
 0xe52   : > { %v7610_v25 = vadd.f32 %v7609_v8, %v7608_v7  ;;  %v7611_v4 = vpop.f32.mrb[86].mxu0 }
 0xe53   : > { %v7612_v21 = vpop.f32.mrb[87].mxu0  ;;  %v10342_v4 = vlaneseq (!%p7381_p1) }
 0xe54   : > { %v6490_v53 = vadd.f32 %v7610_v25, %v6450_v5 }
 0xe55   : > { %v6761_v21 = vand.u32 (!%p7381_p1), 127, %v10342_v4 }
 0xe56   : > { %v7630_v26 = vpop.f32.mrb[84].mxu1 }
 0xe57   : > { %v7631_v58 = vpop.f32.mrb[85].mxu1 }
 0xe58   : > { %v7632_v36 = vadd.f32 %v7631_v58, %v7630_v26  ;;  %v7633_v18 = vpop.f32.mrb[86].mxu1 }
 0xe59   : > { %v7634_v19 = vpop.f32.mrb[87].mxu1 }
 0xe5a   : > { %v6530_v6 = vadd.f32 %v7632_v36, %v6490_v53  ;;  %v10343_v53 = vld [vmem:[#allocation44_spill] sm:$0xff] (!%p7381_p1) }
 0xe5b   : > { %v6764_v26 = vsub.s32 (!%p7381_p1), %v6761_v21, %v10343_v53 }
 0xe70   : > { %v7652_v29 = vpop.f32.mrb[88].mxu0 }
 0xe71   : > { %v7653_v44 = vpop.f32.mrb[89].mxu0 }
 0xe72   : > { %v7654_v23 = vadd.f32 %v7653_v44, %v7652_v29  ;;  %v7655_v28 = vpop.f32.mrb[90].mxu0 }
 0xe73   : > { %v7656_v48 = vpop.f32.mrb[91].mxu0 }
 0xe74   : > { %v6570_v51 = vadd.f32 %v7654_v23, %v6530_v6 }
 0xe76   : > { %v7674_v17 = vpop.f32.mrb[88].mxu1 }
 0xe77   : > { %v7675_v60 = vpop.f32.mrb[89].mxu1 }
 0xe78   : > { %v7676_v45 = vadd.f32 %v7675_v60, %v7674_v17  ;;  %v7677_v46 = vpop.f32.mrb[90].mxu1 }
 0xe79   : > { %v7678_v37 = vpop.f32.mrb[91].mxu1 }
 0xe7a   : > { %v6610_v14 = vadd.f32 %v7676_v45, %v6570_v51 }
 0xe90   : > { %v7696_v27 = vpop.f32.mrb[92].mxu0 }
 0xe91   : > { %v7697_v24 = vpop.f32.mrb[93].mxu0 }
 0xe92   : > { %v7698_v38 = vadd.f32 %v7697_v24, %v7696_v27  ;;  %v7699_v43 = vpop.f32.mrb[94].mxu0 }
 0xe93   : > { %v7700_v15 = vpop.f32.mrb[95].mxu0 }
 0xe94   : > { %v6650_v1 = vadd.f32 %v7698_v38, %v6610_v14 }
 0xe96   : > { %v7718_v54 = vpop.f32.mrb[92].mxu1 }
 0xe97   : > { %v7719_v33 = vpop.f32.mrb[93].mxu1 }
 0xe98   : > { %v7720_v11 = vadd.f32 %v7719_v33, %v7718_v54  ;;  %v7721_v34 = vpop.f32.mrb[94].mxu1 }
 0xe99   : > { %v7722_v35 = vpop.f32.mrb[95].mxu1 }
 0xe9a   : > { %v6690_v16 = vadd.f32 %v7720_v11, %v6650_v1 }
 0xe9c   : > { %v6695_v32 = vadd.f32 %v6690_v16, %v10339_v55 }
 0xe9e   : > { %v6698_v56 = vsel %vm1792_vm7, %v6695_v32, 0.0 }
 0xe9f   : > { %6699 = vadd.xlane.f32.xlu0 %v6698_v56 }
 0xf2c   : > { %v6700_v42 = vpop.xlane.xlu0 %6699 }
 0xf2d   : > { %v6701_v59 = vmul.f32 0.03125, %v6700_v42 }
 0xf2f   : > { %v6702_v2 = vsub.f32 %v6695_v32, %v6701_v59 }
 0xf31   : > { %v6703_v47 = vmul.f32 %v6702_v2, %v6702_v2 }
 0xf33   : > { %v6704_v9 = vsel %vm1792_vm7, %v6703_v47, 0.0 }
 0xf34   : > { %6705 = vadd.xlane.f32.xlu1 %v6704_v9 }
 0xfc1   : > { %v6706_v50 = vpop.xlane.xlu1 %6705 }
 0xfc2   : > { %v6707_v52 = vmul.f32 0.03125, %v6706_v50 }
 0xfc4   : > { %v6708_v12 = vadd.f32 1e-12, %v6707_v52 }
 0xfc6   : > { %8385 = vrsqrt.f32 %v6708_v12 }
 0xfd0   : > { %v8386_v40 = vpop.eup %8385 }
 0xfd1   : > { %v6710_v39 = vmul.f32 %v8386_v40, %v6702_v2  ;;  %6729 = sbr.rel (%p7381_p1) target bundleno = 4249 (0x1099), region = 160 }
 0xfd3   : > { %v6717_v20 = vmul.f32 %v7379_v31, %v6710_v39 }
 0xfd5   : > { %v6724_v57 = vadd.f32 %v7380_v22, %v6717_v20 }
 0xfd7   : > { %6725 = vst.msk [vmem:[#allocation2] sm:$0xff] %vm1792_vm7, %v6724_v57 }
 0xfde   : > { %v6730_v0 = vld [vmem:[#allocation2] sm:$0xff] }
 0xfdf   : > { %v6738_v3 = vmul.f32 %v7382_v62, %v6730_v0 }
 0xfe1   : > { %v6739_v49 = vsel %vm1792_vm7, %v6738_v3, 0.0  ;;  %vm6767_vm7 = vcmask 57344  }
 0xfe2   : > { %6740 = vadd.xlane.f32.xlu0 %v6739_v49 }
 0xff8   : > { %6745 = vperm.xlu0 %8389, %v6742_v63  }
0x106f   : > { %v6741_v61 = vpop.xlane.xlu0 %6740 }
0x1077   : > { %v6746_v13 = vpop.permute.xlu0 %6745 }
0x1078   : > { %v6751_v41 = vrot.slane %v6746_v13, %v9030_v30 }
0x107a   : > { %v6752_v5 = vadd.f32 %v6751_v41, %v6741_v61 }
0x107c   : > { %v7383_v7 = vmul.f32 -1.442695, %v6752_v5 }
0x107e   : > { %8390 = vpow2.f32 %v7383_v7 }
0x1088   : > { %v8391_v8 = vpop.eup %8390 }
0x1089   : > { %v6756_v25 = vadd.f32 1.0, %v8391_v8 }
0x108b   : > { %8392 = vrcp.f32 %v6756_v25 }
0x1095   : > { %v8393_v58 = vpop.eup %8392 }
0x1096   : > { %v6765_v36 = vrot.slane %v8393_v58, %v6764_v26 }
0x1098   : > { %6768 = vst.msk [vmem:[%s8829_s11] sm:$0x1] %vm6767_vm7, %v6765_v36 }
0x1099 PF: > { %s10344_s18 = sld [smem:[#allocation32_spill]]  ;;  %s10345_s8 = sld [smem:[#allocation28_spill]] }
0x109a   : > { %s6782_s23 = sshll.u32 %s8829_s11, 4  ;;  %s10347_s28 = sand.u32 1, %s8464_s10   ;;  %s6783_s23 = int_to_ptr.vmem [resolvable:$true] %s6782_s23 }
0x109b   : > { %s6770_s9 = scalar_lea.sflag [#allocation5], %s10347_s28  ;;  %s8394_s13 = scalar_lea.vmem %s6783_s23, 16 }
0x109c   : > { %p8395_p2 = scmp.ne.s32.totalorder %s6783_s23, %s8394_s13  ;;  %s8530_s21 = smov [#allocation4]  }
0x109d   : > { %s8398_s0 = sshll.u32 %s8530_s21, 4  ;;  %s8399_s0 = int_to_ptr.vmem [resolvable:$false] %s8398_s0 }
0x109e   : > { %p8396_p4 = pnand %p8395_p2, %p8753_p3  ;;  %s8400_s16 = scalar_lea.vmem %s8399_s0, 32 }
0x109f   : > { %s7384_s1 = sshll.u32 %s10344_s18, 4  ;;  %p8401_p6 = scmp.lt.s32.totalorder %s6783_s23, %s8399_s0 }
0x10a0   : > { %s10128_s7 = scalar_lea.hbm %s10345_s8, %s7384_s1  ;;  %p8397_p5 = pneg %p8396_p4 }
0x10a1   : > { %p8402_p7 = scmp.lt.s32.totalorder %s8400_s16, %s8394_s13 }
0x10a3   : > { %p8403_p8 = por %p8402_p7, %p8401_p6 }
0x10a5   : > { %p8404_p10 = pnand %p8403_p8, %p8397_p5 }
0x10a7   : > { %8407 = shalt.err (!%p8404_p10)
}
0x10a8   : > { %s8408_s11 = scalar_lea.hbm %s10128_s7, 16  ;;  %s8412_s22 = scalar_lea.hbm %s10345_s8, 32 }
0x10a9   : > { %p8409_p11 = scmp.ne.s32.totalorder %s10128_s7, %s8408_s11  ;;  %p8413_p0 = scmp.lt.u32.totalorder %s10128_s7, %s10345_s8 }
0x10aa   : > { %p8414_p1 = scmp.lt.u32.totalorder %s8412_s22, %s8408_s11  ;;  %p8416_p4 = scmp.lt.u32.totalorder %s8408_s11, %s10128_s7 }
0x10ab   : > { %p8410_p12 = pnand %p8409_p11, %p8753_p3 }
0x10ac   : > { %p8415_p2 = por %p8414_p1, %p8413_p0 }
0x10ad   : > { %p8411_p13 = pneg %p8410_p12 }
0x10ae   : > { %p8417_p6 = por %p8416_p4, %p8415_p2 }
0x10b0   : > { %p8418_p5 = pnand %p8417_p6, %p8411_p13 }
0x10b2   : > { %8421 = shalt.err (!%p8418_p5)
}
0x10b3   : > { %7929 = dma.vmem_to_hbm [thread:$0]  (%p8753_p3), %s6783_s23, 16, %s10128_s7, %s6770_s9  }
0x10b4 PF: > { %s10348_s15 = sld [smem:[#allocation35_spill]]  ;;  %s10349_s26 = sld [smem:[#allocation29_spill]] }
0x10ba   : > { %p7935_p7 = scmp.ge.s32.totalorder %s10348_s15, 2  ;;  %s6794_s1 = sand.u32 1, %s10349_s26  }
0x10bb   : > { %s6795_s28 = scalar_lea.sflag [#allocation5], %s6794_s1 }
0x10bc   : > { %p7932_p8 = pnand %p7935_p7, %p8763_p9 }
0x10be   : > { %8455 = dma.done.wait (!%p7932_p8), %s6795_s28, 16  }
0x10bf   : > { %8457 = vsyncadd (!%p7932_p8), %s6795_s28, 4294967280  ;;  %s82_s0 = sadd.s32 1, %s10348_s15   ;;  %s10351_s13 = sld [smem:[#allocation30_spill]] }
0x10c0   : > { %p79_p10 = scmp.ge.s32.totalorder %s82_s0, 6   ;;  %s10352_s11 = sld [smem:[#allocation40_spill]] }
0x10c1   : > { %s10353_s15 = sld [smem:[#allocation33_spill]]  ;;  %s10354_s16 = sld [smem:[#allocation34_spill]] }
0x10c2   : > { %s10355_s18 = sld [smem:[#allocation36_spill]]  ;;  %s10356_s22 = sld [smem:[#allocation38_spill]] }
0x10c3   : > { %s10357_s7 = smov %s8464_s10  ;;  %81 = sbr.rel (!%p79_p10) target bundleno = 66 (0x42), region = 270 }
0x10c5   : > { %s10358_s10 = smov %s10351_s13 }
0x10ca   :  { %6799 = vsyncpa [#allocation5], 1 }
0x10cb   :  { %6801 = vsyncpa [#allocation5 + $0x1], 1 }

</bundles_post_ra>
